<compile_context>
chip_gen: v6e
topology: v6e:2x2x1
jax: 0.10.0
libtpu: 0.0.40
codegen_flags: <defaults>
</compile_context>

<pallas_src>
import functools

import jax
import jax.numpy as jnp
from jax.experimental import pallas as pl
from jax.experimental.pallas import tpu as pltpu

_EPS = 1e-5
_TM_DEFAULT = 256                      # multiple of 128 (v5e MXU) and 256 (v6e MXU)
_VMEM_LIMIT = 48 * 1024 * 1024         # safe on v5e/v6e (128 MiB) and v7x (64 MiB)


# --------------------------------------------------------------------------- utils
def _rup(x, m):
    return (x + m - 1) // m * m


def _pick_tm(n_rows):
    return min(_TM_DEFAULT, _rup(max(n_rows, 1), 128))


def _pad2d(a, rows, cols, dtype=None):
    r, c = a.shape
    a = jnp.pad(a, ((0, rows - r), (0, cols - c)))
    return a.astype(dtype) if dtype is not None else a


def _pad_vec(v, cols):
    v = v.reshape(1, -1).astype(jnp.float32)
    return jnp.pad(v, ((0, 0), (0, cols - v.shape[1])))


def _bn_from_sums(s, q, n_rows, eps=_EPS):
    # tiny (1, C) finalize, done in plain JAX between the two passes
    mean = s / float(n_rows)
    var = jnp.maximum(q / float(n_rows) - mean * mean, 0.0)
    return mean, jax.lax.rsqrt(var + eps)


# ------------------------------------------------------------------------- kernels
def _conv_stats_kernel(x_ref, w_ref, sum_ref, sq_ref, acc_ref, *, n_valid):
    """Pass 1: y = x @ w accumulated over the K-chunk axis; per-channel sum/sumsq."""
    i = pl.program_id(0)
    k = pl.program_id(1)
    nk = pl.num_programs(1)
    tm, kc = x_ref.shape

    @pl.when(jnp.logical_and(i == 0, k == 0))
    def _():
        sum_ref[...] = jnp.zeros_like(sum_ref)
        sq_ref[...] = jnp.zeros_like(sq_ref)

    @pl.when(k == 0)
    def _():
        acc_ref[...] = jnp.zeros_like(acc_ref)

    start = pl.multiple_of(k * kc, kc)
    acc_ref[...] += jnp.dot(x_ref[...], w_ref[pl.ds(start, kc), :],
                            preferred_element_type=jnp.float32)

    @pl.when(k == nk - 1)
    def _():
        rows = i * tm + jax.lax.broadcasted_iota(jnp.int32, (tm, 1), 0)
        y = jnp.where(rows < n_valid, acc_ref[...], 0.0)   # mask padded rows
        sum_ref[...] += jnp.sum(y, axis=0, keepdims=True)
        sq_ref[...] += jnp.sum(y * y, axis=0, keepdims=True)


def _conv_bn_apply_kernel(x_ref, w_ref, m_ref, r_ref, g_ref, b_ref, o_ref,
                          acc_ref, *, relu):
    """Pass 2: recompute y = x @ w, normalize with precomputed mean/rstd, affine, ReLU."""
    k = pl.program_id(1)
    nk = pl.num_programs(1)
    kc = x_ref.shape[-1]

    @pl.when(k == 0)
    def _():
        acc_ref[...] = jnp.zeros_like(acc_ref)

    start = pl.multiple_of(k * kc, kc)
    acc_ref[...] += jnp.dot(x_ref[...], w_ref[pl.ds(start, kc), :],
                            preferred_element_type=jnp.float32)

    @pl.when(k == nk - 1)
    def _():
        y = (acc_ref[...] - m_ref[...]) * (r_ref[...] * g_ref[...]) + b_ref[...]
        if relu:
            y = jnp.maximum(y, 0.0)
        o_ref[...] = y.astype(o_ref.dtype)


def _conv_bn_apply_res_kernel(x_ref, w_ref, m_ref, r_ref, g_ref, b_ref, res_ref,
                              o_ref, acc_ref, *, relu):
    """Pass 2 with a fused residual add (identity-shortcut path)."""
    k = pl.program_id(1)
    nk = pl.num_programs(1)
    kc = x_ref.shape[-1]

    @pl.when(k == 0)
    def _():
        acc_ref[...] = jnp.zeros_like(acc_ref)

    start = pl.multiple_of(k * kc, kc)
    acc_ref[...] += jnp.dot(x_ref[...], w_ref[pl.ds(start, kc), :],
                            preferred_element_type=jnp.float32)

    @pl.when(k == nk - 1)
    def _():
        y = (acc_ref[...] - m_ref[...]) * (r_ref[...] * g_ref[...]) + b_ref[...]
        y = y + res_ref[...].astype(jnp.float32)
        if relu:
            y = jnp.maximum(y, 0.0)
        o_ref[...] = y.astype(o_ref.dtype)


def _fused_stats_kernel(y2_ref, w3_ref, xs_ref, ws_ref,
                        s3_ref, q3_ref, ss_ref, qs_ref, *, n_valid):
    """Stats for conv3 and the shortcut conv in one streamed pass."""
    i = pl.program_id(0)
    tm = y2_ref.shape[0]

    @pl.when(i == 0)
    def _():
        s3_ref[...] = jnp.zeros_like(s3_ref)
        q3_ref[...] = jnp.zeros_like(q3_ref)
        ss_ref[...] = jnp.zeros_like(ss_ref)
        qs_ref[...] = jnp.zeros_like(qs_ref)

    rows = i * tm + jax.lax.broadcasted_iota(jnp.int32, (tm, 1), 0)
    mask = rows < n_valid

    y3 = jnp.dot(y2_ref[...], w3_ref[...], preferred_element_type=jnp.float32)
    y3 = jnp.where(mask, y3, 0.0)
    s3_ref[...] += jnp.sum(y3, axis=0, keepdims=True)
    q3_ref[...] += jnp.sum(y3 * y3, axis=0, keepdims=True)

    ys = jnp.dot(xs_ref[...], ws_ref[...], preferred_element_type=jnp.float32)
    ys = jnp.where(mask, ys, 0.0)
    ss_ref[...] += jnp.sum(ys, axis=0, keepdims=True)
    qs_ref[...] += jnp.sum(ys * ys, axis=0, keepdims=True)


def _fused_apply_kernel(y2_ref, w3_ref, xs_ref, ws_ref,
                        m3_ref, r3_ref, g3_ref, b3_ref,
                        ms_ref, rs_ref, gs_ref, bs_ref, o_ref):
    """conv3+bn3 and shortcut conv+bn fused with the residual add + final ReLU."""
    y3 = jnp.dot(y2_ref[...], w3_ref[...], preferred_element_type=jnp.float32)
    y3 = (y3 - m3_ref[...]) * (r3_ref[...] * g3_ref[...]) + b3_ref[...]
    ys = jnp.dot(xs_ref[...], ws_ref[...], preferred_element_type=jnp.float32)
    ys = (ys - ms_ref[...]) * (rs_ref[...] * gs_ref[...]) + bs_ref[...]
    o_ref[...] = jnp.maximum(y3 + ys, 0.0).astype(o_ref.dtype)


# ------------------------------------------------------------------------ wrappers
def _x_block_kwargs(nrt):
    # Deep input buffering only helps (and is only enabled) with enough row tiles.
    return {"pipeline_mode": pl.Buffered(3)} if nrt >= 4 else {}


def _conv_stats(x3d, w2d, tm, n_valid):
    nk, rp, kc = x3d.shape
    c = w2d.shape[1]
    nrt = rp // tm
    x_spec = pl.BlockSpec((None, tm, kc), lambda i, k: (k, i, 0),
                          **_x_block_kwargs(nrt))
    w_spec = pl.BlockSpec((nk * kc, c), lambda i, k: (0, 0))
    stat_spec = pl.BlockSpec((1, c), lambda i, k: (0, 0))
    flops = 2 * rp * nk * kc * c + 4 * rp * c
    bytes_accessed = (x3d.size * x3d.dtype.itemsize
                      + w2d.size * w2d.dtype.itemsize + 2 * c * 4)
    return pl.pallas_call(
        functools.partial(_conv_stats_kernel, n_valid=n_valid),
        out_shape=[jax.ShapeDtypeStruct((1, c), jnp.float32)] * 2,
        grid=(nrt, nk),
        in_specs=[x_spec, w_spec],
        out_specs=[stat_spec, stat_spec],
        scratch_shapes=[pltpu.VMEM((tm, c), jnp.float32)],
        compiler_params=pltpu.CompilerParams(
            dimension_semantics=("arbitrary", "arbitrary"),
            vmem_limit_bytes=_VMEM_LIMIT),
        cost_estimate=pl.CostEstimate(flops=int(flops), transcendentals=0,
                                      bytes_accessed=int(bytes_accessed)),
    )(x3d, w2d)


def _conv_bn_apply(x3d, w2d, mean, rstd, gamma, beta, tm, relu, out_dtype,
                   residual=None):
    nk, rp, kc = x3d.shape
    c = w2d.shape[1]
    nrt = rp // tm
    x_spec = pl.BlockSpec((None, tm, kc), lambda i, k: (k, i, 0),
                          **_x_block_kwargs(nrt))
    w_spec = pl.BlockSpec((nk * kc, c), lambda i, k: (0, 0))
    vec_spec = pl.BlockSpec((1, c), lambda i, k: (0, 0))
    out_spec = pl.BlockSpec((tm, c), lambda i, k: (i, 0))

    in_specs = [x_spec, w_spec, vec_spec, vec_spec, vec_spec, vec_spec]
    args = [x3d, w2d, mean, rstd, gamma, beta]
    if residual is None:
        kernel = functools.partial(_conv_bn_apply_kernel, relu=relu)
    else:
        kernel = functools.partial(_conv_bn_apply_res_kernel, relu=relu)
        in_specs.append(pl.BlockSpec((tm, c), lambda i, k: (i, 0)))
        args.append(residual)

    flops = 2 * rp * nk * kc * c + 6 * rp * c
    bytes_accessed = (sum(a.size * a.dtype.itemsize for a in args)
                      + rp * c * jnp.dtype(out_dtype).itemsize)
    return pl.pallas_call(
        kernel,
        out_shape=jax.ShapeDtypeStruct((rp, c), out_dtype),
        grid=(nrt, nk),
        in_specs=in_specs,
        out_specs=out_spec,
        scratch_shapes=[pltpu.VMEM((tm, c), jnp.float32)],
        compiler_params=pltpu.CompilerParams(
            dimension_semantics=("parallel", "arbitrary"),
            vmem_limit_bytes=_VMEM_LIMIT),
        cost_estimate=pl.CostEstimate(flops=int(flops), transcendentals=0,
                                      bytes_accessed=int(bytes_accessed)),
    )(*args)


def _fused_shortcut_conv(y2, w3, g3, b3, xs, ws, gs, bs, tm, n_valid):
    rp, pp = y2.shape
    cinp = xs.shape[1]
    c = w3.shape[1]
    nrt = rp // tm

    y2_spec = pl.BlockSpec((tm, pp), lambda i: (i, 0), **_x_block_kwargs(nrt))
    xs_spec = pl.BlockSpec((tm, cinp), lambda i: (i, 0), **_x_block_kwargs(nrt))
    w3_spec = pl.BlockSpec((pp, c), lambda i: (0, 0))
    ws_spec = pl.BlockSpec((cinp, c), lambda i: (0, 0))
    vec_spec = pl.BlockSpec((1, c), lambda i: (0, 0))
    out_spec = pl.BlockSpec((tm, c), lambda i: (i, 0))

    flops_mm = 2 * rp * (pp + cinp) * c
    bytes_in = (y2.size * y2.dtype.itemsize + xs.size * xs.dtype.itemsize
                + w3.size * w3.dtype.itemsize + ws.size * ws.dtype.itemsize)

    s3, q3, ss, qs = pl.pallas_call(
        functools.partial(_fused_stats_kernel, n_valid=n_valid),
        out_shape=[jax.ShapeDtypeStruct((1, c), jnp.float32)] * 4,
        grid=(nrt,),
        in_specs=[y2_spec, w3_spec, xs_spec, ws_spec],
        out_specs=[vec_spec] * 4,
        compiler_params=pltpu.CompilerParams(
            dimension_semantics=("arbitrary",),
            vmem_limit_bytes=_VMEM_LIMIT),
        cost_estimate=pl.CostEstimate(flops=int(flops_mm + 8 * rp * c),
                                      transcendentals=0,
                                      bytes_accessed=int(bytes_in + 4 * c * 4)),
    )(y2, w3, xs, ws)

    m3, r3 = _bn_from_sums(s3, q3, n_valid)
    ms, rs = _bn_from_sums(ss, qs, n_valid)

    return pl.pallas_call(
        _fused_apply_kernel,
        out_shape=jax.ShapeDtypeStruct((rp, c), jnp.float32),
        grid=(nrt,),
        in_specs=[y2_spec, w3_spec, xs_spec, ws_spec] + [vec_spec] * 8,
        out_specs=out_spec,
        compiler_params=pltpu.CompilerParams(
            dimension_semantics=("parallel",),
            vmem_limit_bytes=_VMEM_LIMIT),
        cost_estimate=pl.CostEstimate(flops=int(flops_mm + 10 * rp * c),
                                      transcendentals=0,
                                      bytes_accessed=int(bytes_in + rp * c * 4)),
    )(y2, w3, xs, ws, m3, r3, g3, b3, ms, rs, gs, bs)


# --------------------------------------------------------------------- host-side glue
def _conv2_taps(y1_nhwc, stride):
    """9 shifted/strided bf16 views of the (padded) conv1 output, stacked on axis 0."""
    n, h, w, c = y1_nhwc.shape
    xp = jnp.pad(y1_nhwc, ((0, 0), (1, 1), (1, 1), (0, 0)))
    ho = (h + 2 - 3) // stride + 1
    wo = (w + 2 - 3) // stride + 1
    taps = []
    for kh in range(3):
        for kw in range(3):
            t = xp[:, kh:kh + stride * (ho - 1) + 1:stride,
                      kw:kw + stride * (wo - 1) + 1:stride, :]
            taps.append(t.reshape(n * ho * wo, c))
    return jnp.stack(taps, axis=0), ho, wo


def _prep_w2(w2, p_p):
    """(planes, c_in, 3, 3) torch layout -> (9*p_p, p_p) bf16, tap order kh*3+kw."""
    blocks = []
    for kh in range(3):
        for kw in range(3):
            blocks.append(_pad2d(w2[:, :, kh, kw].T, p_p, p_p))
    return jnp.concatenate(blocks, axis=0).astype(jnp.bfloat16)


def bottleneck_forward(x_nchw, params, stride):
    """Exact forward of the PyTorch Bottleneck (training-mode BN), tiled Pallas kernels."""
    expansion = 4
    # TODO(synk): fold the NCHW<->NHWC transposes into the first/last kernels' index_maps.
    x = jnp.transpose(x_nchw, (0, 2, 3, 1)).astype(jnp.float32)
    n, h, w, cin = x.shape
    planes = params["w1"].shape[0]
    cout = expansion * planes
    c2_in = params["w2"].shape[1]
    assert c2_in == planes, (
        "reference Bottleneck.conv2 takes `inplanes` channels but is fed `planes`; "
        "it only runs when inplanes == planes")

    cin_p, p_p, cout_p = _rup(cin, 128), _rup(planes, 128), _rup(cout, 128)

    # ---- conv1 (1x1) + bn1 + relu -------------------------------------------------
    r1 = n * h * w
    tm1 = _pick_tm(r1)
    rp1 = _rup(r1, tm1)
    x1 = _pad2d(x.reshape(r1, cin), rp1, cin_p, jnp.bfloat16)[None]      # (1, rp1, cin_p)
    w1 = _pad2d(params["w1"].reshape(planes, cin).T, cin_p, p_p, jnp.bfloat16)
    g1, b1 = _pad_vec(params["g1"], p_p), _pad_vec(params["b1"], p_p)
    s1, q1 = _conv_stats(x1, w1, tm1, r1)
    m1, rs1 = _bn_from_sums(s1, q1, r1)
    y1 = _conv_bn_apply(x1, w1, m1, rs1, g1, b1, tm1, relu=True,
                        out_dtype=jnp.bfloat16)
    y1 = y1[:r1].reshape(n, h, w, p_p)

    # ---- conv2 (3x3, stride, pad 1) + bn2 + relu ----------------------------------
    taps, ho, wo = _conv2_taps(y1, stride)                               # (9, r2, p_p)
    r2 = n * ho * wo
    tm2 = _pick_tm(r2)
    rp2 = _rup(r2, tm2)
    taps = jnp.pad(taps, ((0, 0), (0, rp2 - r2), (0, 0)))
    w2 = _prep_w2(params["w2"], p_p)
    g2, b2 = _pad_vec(params["g2"], p_p), _pad_vec(params["b2"], p_p)
    s2, q2 = _conv_stats(taps, w2, tm2, r2)
    m2, rs2 = _bn_from_sums(s2, q2, r2)
    y2 = _conv_bn_apply(taps, w2, m2, rs2, g2, b2, tm2, relu=True,
                        out_dtype=jnp.bfloat16)                          # (rp2, p_p)

    # ---- conv3 (1x1) + bn3, fused with shortcut + add + relu -----------------------
    w3 = _pad2d(params["w3"].reshape(cout, planes).T, p_p, cout_p, jnp.bfloat16)
    g3, b3 = _pad_vec(params["g3"], cout_p), _pad_vec(params["b3"], cout_p)
    # TODO(synk): gather the strided shortcut rows via the kernel index_map instead of
    # materializing this output-resolution slice here.
    xs = x[:, ::stride, ::stride, :].reshape(r2, cin)

    if "ws" in params:
        ws = _pad2d(params["ws"].reshape(cout, cin).T, cin_p, cout_p, jnp.bfloat16)
        gs, bs = _pad_vec(params["gs"], cout_p), _pad_vec(params["bs"], cout_p)
        xsb = _pad2d(xs, rp2, cin_p, jnp.bfloat16)
        out = _fused_shortcut_conv(y2, w3, g3, b3, xsb, ws, gs, bs, tm2, r2)
    else:
        assert cin == cout, "identity shortcut requires inplanes == 4 * planes"
        res = _pad2d(xs, rp2, cout_p)                                    # f32 residual
        s3, q3 = _conv_stats(y2[None], w3, tm2, r2)
        m3, rs3 = _bn_from_sums(s3, q3, r2)
        out = _conv_bn_apply(y2[None], w3, m3, rs3, g3, b3, tm2, relu=True,
                             out_dtype=jnp.float32, residual=res)

    out = out[:r2, :cout].reshape(n, ho, wo, cout)
    return jnp.transpose(out, (0, 3, 1, 2))


# ----------------------------------------------------------------- reference / demo
def _reference_forward(x_nchw, params, stride):
    """Independent f32 reference (lax.conv + training-mode BN) for a tolerance check."""
    x = jnp.transpose(x_nchw, (0, 2, 3, 1)).astype(jnp.float32)

    def bn(y, g, b):
        m = jnp.mean(y, axis=(0, 1, 2))
        v = jnp.mean(jnp.square(y - m), axis=(0, 1, 2))
        return (y - m) * jax.lax.rsqrt(v + _EPS) * g + b

    def conv(y, wt, s, p):
        wh = jnp.transpose(wt, (2, 3, 1, 0))
        return jax.lax.conv_general_dilated(
            y, wh, window_strides=(s, s), padding=[(p, p), (p, p)],
            dimension_numbers=("NHWC", "HWIO", "NHWC"))

    out = jax.nn.relu(bn(conv(x, params["w1"], 1, 0), params["g1"], params["b1"]))
    out = jax.nn.relu(bn(conv(out, params["w2"], stride, 1), params["g2"], params["b2"]))
    out = bn(conv(out, params["w3"], 1, 0), params["g3"], params["b3"])
    if "ws" in params:
        sc = bn(conv(x, params["ws"], stride, 0), params["gs"], params["bs"])
    else:
        sc = x
    out = jax.nn.relu(out + sc)
    return jnp.transpose(out, (0, 3, 1, 2))


def init_params(key, inplanes, planes, stride):
    expansion = 4
    ks = jax.random.split(key, 12)
    p = {
        "w1": 0.1 * jax.random.normal(ks[0], (planes, inplanes, 1, 1), jnp.float32),
        "g1": 1.0 + 0.1 * jax.random.normal(ks[1], (planes,), jnp.float32),
        "b1": 0.1 * jax.random.normal(ks[2], (planes,), jnp.float32),
        "w2": 0.1 * jax.random.normal(ks[3], (planes, inplanes, 3, 3), jnp.float32),
        "g2": 1.0 + 0.1 * jax.random.normal(ks[4], (planes,), jnp.float32),
        "b2": 0.1 * jax.random.normal(ks[5], (planes,), jnp.float32),
        "w3": 0.1 * jax.random.normal(ks[6], (expansion * planes, planes, 1, 1), jnp.float32),
        "g3": 1.0 + 0.1 * jax.random.normal(ks[7], (expansion * planes,), jnp.float32),
        "b3": 0.1 * jax.random.normal(ks[8], (expansion * planes,), jnp.float32),
    }
    if stride != 1 or inplanes != expansion * planes:
        p["ws"] = 0.1 * jax.random.normal(ks[9], (expansion * planes, inplanes, 1, 1), jnp.float32)
        p["gs"] = 1.0 + 0.1 * jax.random.normal(ks[10], (expansion * planes,), jnp.float32)
        p["bs"] = 0.1 * jax.random.normal(ks[11], (expansion * planes,), jnp.float32)
    return p


if __name__ == "__main__":
    # Small shapes; inplanes == planes (required by the reference module's conv2 defn)
    N, inplanes, planes, H, W, stride = 2, 8, 8, 16, 16, 2
    key = jax.random.PRNGKey(0)
    kx, kp = jax.random.split(key)
    x = jax.random.normal(kx, (N, inplanes, H, W), jnp.float32)
    params = init_params(kp, inplanes, planes, stride)

    fwd = jax.jit(bottleneck_forward, static_argnums=(2,))
    out = jax.block_until_ready(fwd(x, params, stride))

    assert out.shape == (N, 4 * planes, H // stride, W // stride), out.shape
    assert bool(jnp.all(out >= 0.0))  # final ReLU

    ref = _reference_forward(x, params, stride)
    max_err = float(jnp.max(jnp.abs(out - ref)))
    assert jnp.allclose(out, ref, rtol=0.1, atol=0.15), f"max abs err {max_err}"

    print("KERNEL_OK")
</pallas_src>

<mosaic_0001>
module attributes {stable_mosaic.version = 11 : i64} {
  func.func @_conv_bn_apply_kernel(%arg0: i32, %arg1: i32, %arg2: memref<1x256x128xbf16, #tpu.memory_space<vmem>>, %arg3: memref<128x128xbf16, #tpu.memory_space<vmem>>, %arg4: memref<1x128xf32, #tpu.memory_space<vmem>>, %arg5: memref<1x128xf32, #tpu.memory_space<vmem>>, %arg6: memref<1x128xf32, #tpu.memory_space<vmem>>, %arg7: memref<1x128xf32, #tpu.memory_space<vmem>>, %arg8: memref<256x128xbf16, #tpu.memory_space<vmem>>, %arg9: memref<256x128xf32, #tpu.memory_space<vmem>>) attributes {dimension_semantics = [#tpu.dimension_semantics<parallel>, #tpu.dimension_semantics<arbitrary>], iteration_bounds = array<i64: 2, 1>, scalar_prefetch = 0 : i64, scratch_operands = 1 : i64, tpu.core_type = #tpu.core_type<tc>, window_params = [{transform_indices = @transform_0, window_bounds = array<i64: 1, 256, 128>}, {pipeline_mode = #tpu.pipeline_mode<synchronous>, transform_indices = @transform_1, window_bounds = array<i64: 128, 128>}, {pipeline_mode = #tpu.pipeline_mode<synchronous>, transform_indices = @transform_2, window_bounds = array<i64: 1, 128>}, {pipeline_mode = #tpu.pipeline_mode<synchronous>, transform_indices = @transform_3, window_bounds = array<i64: 1, 128>}, {pipeline_mode = #tpu.pipeline_mode<synchronous>, transform_indices = @transform_4, window_bounds = array<i64: 1, 128>}, {pipeline_mode = #tpu.pipeline_mode<synchronous>, transform_indices = @transform_5, window_bounds = array<i64: 1, 128>}, {transform_indices = @transform_6, window_bounds = array<i64: 256, 128>}]} {
    %c0_i32 = arith.constant 0 : i32
    %0 = arith.cmpi eq, %arg1, %c0_i32 : i32
    %1 = arith.extui %0 : i1 to i32
    %c0_i32_0 = arith.constant 0 : i32
    %2 = arith.cmpi ne, %1, %c0_i32_0 : i32
    scf.if %2 {
      %cst_10 = arith.constant 0.000000e+00 : f32
      %16 = vector.broadcast %cst_10 : f32 to vector<256x128xf32>
      %c0_11 = arith.constant 0 : index
      %c0_12 = arith.constant 0 : index
      %17 = vector.load %arg9[%c0_11, %c0_12] : memref<256x128xf32, #tpu.memory_space<vmem>>, vector<256x128xf32>
      tpu.vector_store %arg9[%c0_11, %c0_12], %16 {strides = array<i32>} : memref<256x128xf32, #tpu.memory_space<vmem>>, vector<256x128xf32>,
    } else {
    }
    %c128_i32 = arith.constant 128 : i32
    %3 = arith.muli %arg1, %c128_i32 : i32
    %4 = tpu.assume_multiple %3, 128 : i32
    %c0 = arith.constant 0 : index
    %c0_1 = arith.constant 0 : index
    %5 = vector.load %arg9[%c0, %c0_1] : memref<256x128xf32, #tpu.memory_space<vmem>>, vector<256x128xf32>
    %c0_2 = arith.constant 0 : index
    %c0_3 = arith.constant 0 : index
    %c0_4 = arith.constant 0 : index
    %6 = vector.load %arg2[%c0_2, %c0_3, %c0_4] : memref<1x256x128xbf16, #tpu.memory_space<vmem>>, vector<1x256x128xbf16>
    %7 = vector.shape_cast %6 : vector<1x256x128xbf16> to vector<256x128xbf16>
    %8 = arith.index_cast %4 : i32 to index
    %c0_5 = arith.constant 0 : index
    %9 = vector.load %arg3[%8, %c0_5] : memref<128x128xbf16, #tpu.memory_space<vmem>>, vector<128x128xbf16>
    %cst = arith.constant dense<0.000000e+00> : vector<256x128xf32>
    %10 = tpu.matmul %7, %9, %cst {dimension_numbers = #tpu.dot_dimension_numbers<[1], [0], [0], [1], [0, 0, 1, 1], [], []>} : vector<256x128xbf16>, vector<128x128xbf16>, vector<256x128xf32> -> vector<256x128xf32>
    %11 = arith.addf %5, %10 : vector<256x128xf32>
    %c0_6 = arith.constant 0 : index
    %c0_7 = arith.constant 0 : index
    %12 = vector.load %arg9[%c0_6, %c0_7] : memref<256x128xf32, #tpu.memory_space<vmem>>, vector<256x128xf32>
    tpu.vector_store %arg9[%c0_6, %c0_7], %11 {strides = array<i32>} : memref<256x128xf32, #tpu.memory_space<vmem>>, vector<256x128xf32>,
    %c0_i32_8 = arith.constant 0 : i32
    %13 = arith.cmpi eq, %arg1, %c0_i32_8 : i32
    %14 = arith.extui %13 : i1 to i32
    %c0_i32_9 = arith.constant 0 : i32
    %15 = arith.cmpi ne, %14, %c0_i32_9 : i32
    scf.if %15 {
      %c0_10 = arith.constant 0 : index
      %c0_11 = arith.constant 0 : index
      %16 = vector.load %arg9[%c0_10, %c0_11] : memref<256x128xf32, #tpu.memory_space<vmem>>, vector<256x128xf32>
      %c0_12 = arith.constant 0 : index
      %c0_13 = arith.constant 0 : index
      %17 = vector.load %arg4[%c0_12, %c0_13] : memref<1x128xf32, #tpu.memory_space<vmem>>, vector<1x128xf32>
      %18 = vector.broadcast %17 : vector<1x128xf32> to vector<256x128xf32>
      %19 = arith.subf %16, %18 : vector<256x128xf32>
      %c0_14 = arith.constant 0 : index
      %c0_15 = arith.constant 0 : index
      %20 = vector.load %arg5[%c0_14, %c0_15] : memref<1x128xf32, #tpu.memory_space<vmem>>, vector<1x128xf32>
      %c0_16 = arith.constant 0 : index
      %c0_17 = arith.constant 0 : index
      %21 = vector.load %arg6[%c0_16, %c0_17] : memref<1x128xf32, #tpu.memory_space<vmem>>, vector<1x128xf32>
      %22 = arith.mulf %20, %21 : vector<1x128xf32>
      %23 = vector.broadcast %22 : vector<1x128xf32> to vector<256x128xf32>
      %24 = arith.mulf %19, %23 : vector<256x128xf32>
      %c0_18 = arith.constant 0 : index
      %c0_19 = arith.constant 0 : index
      %25 = vector.load %arg7[%c0_18, %c0_19] : memref<1x128xf32, #tpu.memory_space<vmem>>, vector<1x128xf32>
      %26 = vector.broadcast %25 : vector<1x128xf32> to vector<256x128xf32>
      %27 = arith.addf %24, %26 : vector<256x128xf32>
      %cst_20 = arith.constant 0.000000e+00 : f32
      %28 = vector.broadcast %cst_20 : f32 to vector<256x128xf32>
      %29 = arith.maximumf %27, %28 : vector<256x128xf32>
      %30 = arith.truncf %29 : vector<256x128xf32> to vector<256x128xbf16>
      %c0_21 = arith.constant 0 : index
      %c0_22 = arith.constant 0 : index
      %31 = vector.load %arg8[%c0_21, %c0_22] : memref<256x128xbf16, #tpu.memory_space<vmem>>, vector<256x128xbf16>
      tpu.vector_store %arg8[%c0_21, %c0_22], %30 {strides = array<i32>} : memref<256x128xbf16, #tpu.memory_space<vmem>>, vector<256x128xbf16>,
    } else {
    }
    return
  }
  func.func @transform_0(%arg0: i32, %arg1: i32) -> (i32, i32, i32) {
    %c0_i32 = arith.constant 0 : i32
    %c0_i32_0 = arith.constant 0 : i32
    return %arg1, %arg0, %c0_i32 : i32, i32, i32
  }
  func.func @transform_1(%arg0: i32, %arg1: i32) -> (i32, i32) {
    %c0_i32 = arith.constant 0 : i32
    %c0_i32_0 = arith.constant 0 : i32
    %c0_i32_1 = arith.constant 0 : i32
    return %c0_i32, %c0_i32_0 : i32, i32
  }
  func.func @transform_2(%arg0: i32, %arg1: i32) -> (i32, i32) {
    %c0_i32 = arith.constant 0 : i32
    %c0_i32_0 = arith.constant 0 : i32
    %c0_i32_1 = arith.constant 0 : i32
    return %c0_i32, %c0_i32_0 : i32, i32
  }
  func.func @transform_3(%arg0: i32, %arg1: i32) -> (i32, i32) {
    %c0_i32 = arith.constant 0 : i32
    %c0_i32_0 = arith.constant 0 : i32
    %c0_i32_1 = arith.constant 0 : i32
    return %c0_i32, %c0_i32_0 : i32, i32
  }
  func.func @transform_4(%arg0: i32, %arg1: i32) -> (i32, i32) {
    %c0_i32 = arith.constant 0 : i32
    %c0_i32_0 = arith.constant 0 : i32
    %c0_i32_1 = arith.constant 0 : i32
    return %c0_i32, %c0_i32_0 : i32, i32
  }
  func.func @transform_5(%arg0: i32, %arg1: i32) -> (i32, i32) {
    %c0_i32 = arith.constant 0 : i32
    %c0_i32_0 = arith.constant 0 : i32
    %c0_i32_1 = arith.constant 0 : i32
    return %c0_i32, %c0_i32_0 : i32, i32
  }
  func.func @transform_6(%arg0: i32, %arg1: i32) -> (i32, i32) {
    %c0_i32 = arith.constant 0 : i32
    %c0_i32_0 = arith.constant 0 : i32
    return %arg0, %c0_i32 : i32, i32
  }
}

module attributes {stable_mosaic.version = 11 : i64} {
  func.func @_conv_stats_kernel(%arg0: i32, %arg1: i32, %arg2: memref<1x256x128xbf16, #tpu.memory_space<vmem>>, %arg3: memref<128x128xbf16, #tpu.memory_space<vmem>>, %arg4: memref<1x128xf32, #tpu.memory_space<vmem>>, %arg5: memref<1x128xf32, #tpu.memory_space<vmem>>, %arg6: memref<256x128xf32, #tpu.memory_space<vmem>>) attributes {dimension_semantics = [#tpu.dimension_semantics<arbitrary>, #tpu.dimension_semantics<arbitrary>], iteration_bounds = array<i64: 2, 1>, scalar_prefetch = 0 : i64, scratch_operands = 1 : i64, tpu.core_type = #tpu.core_type<tc>, window_params = [{transform_indices = @transform_0, window_bounds = array<i64: 1, 256, 128>}, {pipeline_mode = #tpu.pipeline_mode<synchronous>, transform_indices = @transform_1, window_bounds = array<i64: 128, 128>}, {pipeline_mode = #tpu.pipeline_mode<synchronous>, transform_indices = @transform_2, window_bounds = array<i64: 1, 128>}, {pipeline_mode = #tpu.pipeline_mode<synchronous>, transform_indices = @transform_3, window_bounds = array<i64: 1, 128>}]} {
    %c0_i32 = arith.constant 0 : i32
    %0 = arith.cmpi eq, %arg0, %c0_i32 : i32
    %c0_i32_0 = arith.constant 0 : i32
    %1 = arith.cmpi eq, %arg1, %c0_i32_0 : i32
    %2 = arith.andi %0, %1 : i1
    %3 = arith.extui %2 : i1 to i32
    %c0_i32_1 = arith.constant 0 : i32
    %4 = arith.cmpi ne, %3, %c0_i32_1 : i32
    scf.if %4 {
      %cst_13 = arith.constant 0.000000e+00 : f32
      %21 = vector.broadcast %cst_13 : f32 to vector<1x128xf32>
      %c0_14 = arith.constant 0 : index
      %c0_15 = arith.constant 0 : index
      %22 = vector.load %arg4[%c0_14, %c0_15] : memref<1x128xf32, #tpu.memory_space<vmem>>, vector<1x128xf32>
      tpu.vector_store %arg4[%c0_14, %c0_15], %21 {strides = array<i32>} : memref<1x128xf32, #tpu.memory_space<vmem>>, vector<1x128xf32>,
      %cst_16 = arith.constant 0.000000e+00 : f32
      %23 = vector.broadcast %cst_16 : f32 to vector<1x128xf32>
      %c0_17 = arith.constant 0 : index
      %c0_18 = arith.constant 0 : index
      %24 = vector.load %arg5[%c0_17, %c0_18] : memref<1x128xf32, #tpu.memory_space<vmem>>, vector<1x128xf32>
      tpu.vector_store %arg5[%c0_17, %c0_18], %23 {strides = array<i32>} : memref<1x128xf32, #tpu.memory_space<vmem>>, vector<1x128xf32>,
    } else {
    }
    %c0_i32_2 = arith.constant 0 : i32
    %5 = arith.cmpi eq, %arg1, %c0_i32_2 : i32
    %6 = arith.extui %5 : i1 to i32
    %c0_i32_3 = arith.constant 0 : i32
    %7 = arith.cmpi ne, %6, %c0_i32_3 : i32
    scf.if %7 {
      %cst_13 = arith.constant 0.000000e+00 : f32
      %21 = vector.broadcast %cst_13 : f32 to vector<256x128xf32>
      %c0_14 = arith.constant 0 : index
      %c0_15 = arith.constant 0 : index
      %22 = vector.load %arg6[%c0_14, %c0_15] : memref<256x128xf32, #tpu.memory_space<vmem>>, vector<256x128xf32>
      tpu.vector_store %arg6[%c0_14, %c0_15], %21 {strides = array<i32>} : memref<256x128xf32, #tpu.memory_space<vmem>>, vector<256x128xf32>,
    } else {
    }
    %c128_i32 = arith.constant 128 : i32
    %8 = arith.muli %arg1, %c128_i32 : i32
    %9 = tpu.assume_multiple %8, 128 : i32
    %c0 = arith.constant 0 : index
    %c0_4 = arith.constant 0 : index
    %10 = vector.load %arg6[%c0, %c0_4] : memref<256x128xf32, #tpu.memory_space<vmem>>, vector<256x128xf32>
    %c0_5 = arith.constant 0 : index
    %c0_6 = arith.constant 0 : index
    %c0_7 = arith.constant 0 : index
    %11 = vector.load %arg2[%c0_5, %c0_6, %c0_7] : memref<1x256x128xbf16, #tpu.memory_space<vmem>>, vector<1x256x128xbf16>
    %12 = vector.shape_cast %11 : vector<1x256x128xbf16> to vector<256x128xbf16>
    %13 = arith.index_cast %9 : i32 to index
    %c0_8 = arith.constant 0 : index
    %14 = vector.load %arg3[%13, %c0_8] : memref<128x128xbf16, #tpu.memory_space<vmem>>, vector<128x128xbf16>
    %cst = arith.constant dense<0.000000e+00> : vector<256x128xf32>
    %15 = tpu.matmul %12, %14, %cst {dimension_numbers = #tpu.dot_dimension_numbers<[1], [0], [0], [1], [0, 0, 1, 1], [], []>} : vector<256x128xbf16>, vector<128x128xbf16>, vector<256x128xf32> -> vector<256x128xf32>
    %16 = arith.addf %10, %15 : vector<256x128xf32>
    %c0_9 = arith.constant 0 : index
    %c0_10 = arith.constant 0 : index
    %17 = vector.load %arg6[%c0_9, %c0_10] : memref<256x128xf32, #tpu.memory_space<vmem>>, vector<256x128xf32>
    tpu.vector_store %arg6[%c0_9, %c0_10], %16 {strides = array<i32>} : memref<256x128xf32, #tpu.memory_space<vmem>>, vector<256x128xf32>,
    %c0_i32_11 = arith.constant 0 : i32
    %18 = arith.cmpi eq, %arg1, %c0_i32_11 : i32
    %19 = arith.extui %18 : i1 to i32
    %c0_i32_12 = arith.constant 0 : i32
    %20 = arith.cmpi ne, %19, %c0_i32_12 : i32
    scf.if %20 {
      %c256_i32 = arith.constant 256 : i32
      %21 = arith.muli %arg0, %c256_i32 : i32
      %22 = tpu.iota {dimensions = array<i32: 0>} : vector<256x1xi32>
      %23 = vector.broadcast %21 : i32 to vector<256x1xi32>
      %24 = arith.addi %23, %22 : vector<256x1xi32>
      %c512_i32 = arith.constant 512 : i32
      %25 = vector.broadcast %c512_i32 : i32 to vector<256x1xi32>
      %26 = arith.cmpi slt, %24, %25 : vector<256x1xi32>
      %c0_13 = arith.constant 0 : index
      %c0_14 = arith.constant 0 : index
      %27 = vector.load %arg6[%c0_13, %c0_14] : memref<256x128xf32, #tpu.memory_space<vmem>>, vector<256x128xf32>
      %cst_15 = arith.constant 0.000000e+00 : f32
      %28 = vector.shape_cast %26 : vector<256x1xi1> to vector<256x1xi1>
      %29 = vector.broadcast %28 : vector<256x1xi1> to vector<256x128xi1>
      %30 = vector.broadcast %cst_15 : f32 to vector<256x128xf32>
      %31 = arith.select %29, %27, %30 : vector<256x128xi1>, vector<256x128xf32>
      %c0_16 = arith.constant 0 : index
      %c0_17 = arith.constant 0 : index
      %32 = vector.load %arg4[%c0_16, %c0_17] : memref<1x128xf32, #tpu.memory_space<vmem>>, vector<1x128xf32>
      %cst_18 = arith.constant dense<0.000000e+00> : vector<128xf32>
      %33 = vector.multi_reduction <add>, %31, %cst_18 [0] : vector<256x128xf32> to vector<128xf32>
      %34 = vector.shape_cast %33 : vector<128xf32> to vector<1x128xf32>
      %35 = arith.addf %32, %34 : vector<1x128xf32>
      %c0_19 = arith.constant 0 : index
      %c0_20 = arith.constant 0 : index
      %36 = vector.load %arg4[%c0_19, %c0_20] : memref<1x128xf32, #tpu.memory_space<vmem>>, vector<1x128xf32>
      tpu.vector_store %arg4[%c0_19, %c0_20], %35 {strides = array<i32>} : memref<1x128xf32, #tpu.memory_space<vmem>>, vector<1x128xf32>,
      %c0_21 = arith.constant 0 : index
      %c0_22 = arith.constant 0 : index
      %37 = vector.load %arg5[%c0_21, %c0_22] : memref<1x128xf32, #tpu.memory_space<vmem>>, vector<1x128xf32>
      %38 = arith.mulf %31, %31 : vector<256x128xf32>
      %cst_23 = arith.constant dense<0.000000e+00> : vector<128xf32>
      %39 = vector.multi_reduction <add>, %38, %cst_23 [0] : vector<256x128xf32> to vector<128xf32>
      %40 = vector.shape_cast %39 : vector<128xf32> to vector<1x128xf32>
      %41 = arith.addf %37, %40 : vector<1x128xf32>
      %c0_24 = arith.constant 0 : index
      %c0_25 = arith.constant 0 : index
      %42 = vector.load %arg5[%c0_24, %c0_25] : memref<1x128xf32, #tpu.memory_space<vmem>>, vector<1x128xf32>
      tpu.vector_store %arg5[%c0_24, %c0_25], %41 {strides = array<i32>} : memref<1x128xf32, #tpu.memory_space<vmem>>, vector<1x128xf32>,
    } else {
    }
    return
  }
  func.func @transform_0(%arg0: i32, %arg1: i32) -> (i32, i32, i32) {
    %c0_i32 = arith.constant 0 : i32
    %c0_i32_0 = arith.constant 0 : i32
    return %arg1, %arg0, %c0_i32 : i32, i32, i32
  }
  func.func @transform_1(%arg0: i32, %arg1: i32) -> (i32, i32) {
    %c0_i32 = arith.constant 0 : i32
    %c0_i32_0 = arith.constant 0 : i32
    %c0_i32_1 = arith.constant 0 : i32
    return %c0_i32, %c0_i32_0 : i32, i32
  }
  func.func @transform_2(%arg0: i32, %arg1: i32) -> (i32, i32) {
    %c0_i32 = arith.constant 0 : i32
    %c0_i32_0 = arith.constant 0 : i32
    %c0_i32_1 = arith.constant 0 : i32
    return %c0_i32, %c0_i32_0 : i32, i32
  }
  func.func @transform_3(%arg0: i32, %arg1: i32) -> (i32, i32) {
    %c0_i32 = arith.constant 0 : i32
    %c0_i32_0 = arith.constant 0 : i32
    %c0_i32_1 = arith.constant 0 : i32
    return %c0_i32, %c0_i32_0 : i32, i32
  }
}

module attributes {stable_mosaic.version = 11 : i64} {
  func.func @_conv_bn_apply_kernel(%arg0: i32, %arg1: i32, %arg2: memref<1x128x128xbf16, #tpu.memory_space<vmem>>, %arg3: memref<1152x128xbf16, #tpu.memory_space<vmem>>, %arg4: memref<1x128xf32, #tpu.memory_space<vmem>>, %arg5: memref<1x128xf32, #tpu.memory_space<vmem>>, %arg6: memref<1x128xf32, #tpu.memory_space<vmem>>, %arg7: memref<1x128xf32, #tpu.memory_space<vmem>>, %arg8: memref<128x128xbf16, #tpu.memory_space<vmem>>, %arg9: memref<128x128xf32, #tpu.memory_space<vmem>>) attributes {dimension_semantics = [#tpu.dimension_semantics<parallel>, #tpu.dimension_semantics<arbitrary>], iteration_bounds = array<i64: 1, 9>, scalar_prefetch = 0 : i64, scratch_operands = 1 : i64, tpu.core_type = #tpu.core_type<tc>, window_params = [{transform_indices = @transform_0, window_bounds = array<i64: 1, 128, 128>}, {pipeline_mode = #tpu.pipeline_mode<synchronous>, transform_indices = @transform_1, window_bounds = array<i64: 1152, 128>}, {pipeline_mode = #tpu.pipeline_mode<synchronous>, transform_indices = @transform_2, window_bounds = array<i64: 1, 128>}, {pipeline_mode = #tpu.pipeline_mode<synchronous>, transform_indices = @transform_3, window_bounds = array<i64: 1, 128>}, {pipeline_mode = #tpu.pipeline_mode<synchronous>, transform_indices = @transform_4, window_bounds = array<i64: 1, 128>}, {pipeline_mode = #tpu.pipeline_mode<synchronous>, transform_indices = @transform_5, window_bounds = array<i64: 1, 128>}, {transform_indices = @transform_6, window_bounds = array<i64: 128, 128>}]} {
    %c0_i32 = arith.constant 0 : i32
    %0 = arith.cmpi eq, %arg1, %c0_i32 : i32
    %1 = arith.extui %0 : i1 to i32
    %c0_i32_0 = arith.constant 0 : i32
    %2 = arith.cmpi ne, %1, %c0_i32_0 : i32
    scf.if %2 {
      %cst_9 = arith.constant 0.000000e+00 : f32
      %16 = vector.broadcast %cst_9 : f32 to vector<128x128xf32>
      %c0_10 = arith.constant 0 : index
      %c0_11 = arith.constant 0 : index
      %17 = vector.load %arg9[%c0_10, %c0_11] : memref<128x128xf32, #tpu.memory_space<vmem>>, vector<128x128xf32>
      tpu.vector_store %arg9[%c0_10, %c0_11], %16 {strides = array<i32>} : memref<128x128xf32, #tpu.memory_space<vmem>>, vector<128x128xf32>,
    } else {
    }
    %c128_i32 = arith.constant 128 : i32
    %3 = arith.muli %arg1, %c128_i32 : i32
    %4 = tpu.assume_multiple %3, 128 : i32
    %c0 = arith.constant 0 : index
    %c0_1 = arith.constant 0 : index
    %5 = vector.load %arg9[%c0, %c0_1] : memref<128x128xf32, #tpu.memory_space<vmem>>, vector<128x128xf32>
    %c0_2 = arith.constant 0 : index
    %c0_3 = arith.constant 0 : index
    %c0_4 = arith.constant 0 : index
    %6 = vector.load %arg2[%c0_2, %c0_3, %c0_4] : memref<1x128x128xbf16, #tpu.memory_space<vmem>>, vector<1x128x128xbf16>
    %7 = vector.shape_cast %6 : vector<1x128x128xbf16> to vector<128x128xbf16>
    %8 = arith.index_cast %4 : i32 to index
    %c0_5 = arith.constant 0 : index
    %9 = vector.load %arg3[%8, %c0_5] : memref<1152x128xbf16, #tpu.memory_space<vmem>>, vector<128x128xbf16>
    %cst = arith.constant dense<0.000000e+00> : vector<128x128xf32>
    %10 = tpu.matmul %7, %9, %cst {dimension_numbers = #tpu.dot_dimension_numbers<[1], [0], [0], [1], [0, 0, 1, 1], [], []>} : vector<128x128xbf16>, vector<128x128xbf16>, vector<128x128xf32> -> vector<128x128xf32>
    %11 = arith.addf %5, %10 : vector<128x128xf32>
    %c0_6 = arith.constant 0 : index
    %c0_7 = arith.constant 0 : index
    %12 = vector.load %arg9[%c0_6, %c0_7] : memref<128x128xf32, #tpu.memory_space<vmem>>, vector<128x128xf32>
    tpu.vector_store %arg9[%c0_6, %c0_7], %11 {strides = array<i32>} : memref<128x128xf32, #tpu.memory_space<vmem>>, vector<128x128xf32>,
    %c8_i32 = arith.constant 8 : i32
    %13 = arith.cmpi eq, %arg1, %c8_i32 : i32
    %14 = arith.extui %13 : i1 to i32
    %c0_i32_8 = arith.constant 0 : i32
    %15 = arith.cmpi ne, %14, %c0_i32_8 : i32
    scf.if %15 {
      %c0_9 = arith.constant 0 : index
      %c0_10 = arith.constant 0 : index
      %16 = vector.load %arg9[%c0_9, %c0_10] : memref<128x128xf32, #tpu.memory_space<vmem>>, vector<128x128xf32>
      %c0_11 = arith.constant 0 : index
      %c0_12 = arith.constant 0 : index
      %17 = vector.load %arg4[%c0_11, %c0_12] : memref<1x128xf32, #tpu.memory_space<vmem>>, vector<1x128xf32>
      %18 = vector.broadcast %17 : vector<1x128xf32> to vector<128x128xf32>
      %19 = arith.subf %16, %18 : vector<128x128xf32>
      %c0_13 = arith.constant 0 : index
      %c0_14 = arith.constant 0 : index
      %20 = vector.load %arg5[%c0_13, %c0_14] : memref<1x128xf32, #tpu.memory_space<vmem>>, vector<1x128xf32>
      %c0_15 = arith.constant 0 : index
      %c0_16 = arith.constant 0 : index
      %21 = vector.load %arg6[%c0_15, %c0_16] : memref<1x128xf32, #tpu.memory_space<vmem>>, vector<1x128xf32>
      %22 = arith.mulf %20, %21 : vector<1x128xf32>
      %23 = vector.broadcast %22 : vector<1x128xf32> to vector<128x128xf32>
      %24 = arith.mulf %19, %23 : vector<128x128xf32>
      %c0_17 = arith.constant 0 : index
      %c0_18 = arith.constant 0 : index
      %25 = vector.load %arg7[%c0_17, %c0_18] : memref<1x128xf32, #tpu.memory_space<vmem>>, vector<1x128xf32>
      %26 = vector.broadcast %25 : vector<1x128xf32> to vector<128x128xf32>
      %27 = arith.addf %24, %26 : vector<128x128xf32>
      %cst_19 = arith.constant 0.000000e+00 : f32
      %28 = vector.broadcast %cst_19 : f32 to vector<128x128xf32>
      %29 = arith.maximumf %27, %28 : vector<128x128xf32>
      %30 = arith.truncf %29 : vector<128x128xf32> to vector<128x128xbf16>
      %c0_20 = arith.constant 0 : index
      %c0_21 = arith.constant 0 : index
      %31 = vector.load %arg8[%c0_20, %c0_21] : memref<128x128xbf16, #tpu.memory_space<vmem>>, vector<128x128xbf16>
      tpu.vector_store %arg8[%c0_20, %c0_21], %30 {strides = array<i32>} : memref<128x128xbf16, #tpu.memory_space<vmem>>, vector<128x128xbf16>,
    } else {
    }
    return
  }
  func.func @transform_0(%arg0: i32, %arg1: i32) -> (i32, i32, i32) {
    %c0_i32 = arith.constant 0 : i32
    %c0_i32_0 = arith.constant 0 : i32
    return %arg1, %arg0, %c0_i32 : i32, i32, i32
  }
  func.func @transform_1(%arg0: i32, %arg1: i32) -> (i32, i32) {
    %c0_i32 = arith.constant 0 : i32
    %c0_i32_0 = arith.constant 0 : i32
    %c0_i32_1 = arith.constant 0 : i32
    return %c0_i32, %c0_i32_0 : i32, i32
  }
  func.func @transform_2(%arg0: i32, %arg1: i32) -> (i32, i32) {
    %c0_i32 = arith.constant 0 : i32
    %c0_i32_0 = arith.constant 0 : i32
    %c0_i32_1 = arith.constant 0 : i32
    return %c0_i32, %c0_i32_0 : i32, i32
  }
  func.func @transform_3(%arg0: i32, %arg1: i32) -> (i32, i32) {
    %c0_i32 = arith.constant 0 : i32
    %c0_i32_0 = arith.constant 0 : i32
    %c0_i32_1 = arith.constant 0 : i32
    return %c0_i32, %c0_i32_0 : i32, i32
  }
  func.func @transform_4(%arg0: i32, %arg1: i32) -> (i32, i32) {
    %c0_i32 = arith.constant 0 : i32
    %c0_i32_0 = arith.constant 0 : i32
    %c0_i32_1 = arith.constant 0 : i32
    return %c0_i32, %c0_i32_0 : i32, i32
  }
  func.func @transform_5(%arg0: i32, %arg1: i32) -> (i32, i32) {
    %c0_i32 = arith.constant 0 : i32
    %c0_i32_0 = arith.constant 0 : i32
    %c0_i32_1 = arith.constant 0 : i32
    return %c0_i32, %c0_i32_0 : i32, i32
  }
  func.func @transform_6(%arg0: i32, %arg1: i32) -> (i32, i32) {
    %c0_i32 = arith.constant 0 : i32
    %c0_i32_0 = arith.constant 0 : i32
    return %arg0, %c0_i32 : i32, i32
  }
}

module attributes {stable_mosaic.version = 11 : i64} {
  func.func @_conv_stats_kernel(%arg0: i32, %arg1: i32, %arg2: memref<1x128x128xbf16, #tpu.memory_space<vmem>>, %arg3: memref<1152x128xbf16, #tpu.memory_space<vmem>>, %arg4: memref<1x128xf32, #tpu.memory_space<vmem>>, %arg5: memref<1x128xf32, #tpu.memory_space<vmem>>, %arg6: memref<128x128xf32, #tpu.memory_space<vmem>>) attributes {dimension_semantics = [#tpu.dimension_semantics<arbitrary>, #tpu.dimension_semantics<arbitrary>], iteration_bounds = array<i64: 1, 9>, scalar_prefetch = 0 : i64, scratch_operands = 1 : i64, tpu.core_type = #tpu.core_type<tc>, window_params = [{transform_indices = @transform_0, window_bounds = array<i64: 1, 128, 128>}, {pipeline_mode = #tpu.pipeline_mode<synchronous>, transform_indices = @transform_1, window_bounds = array<i64: 1152, 128>}, {pipeline_mode = #tpu.pipeline_mode<synchronous>, transform_indices = @transform_2, window_bounds = array<i64: 1, 128>}, {pipeline_mode = #tpu.pipeline_mode<synchronous>, transform_indices = @transform_3, window_bounds = array<i64: 1, 128>}]} {
    %c0_i32 = arith.constant 0 : i32
    %0 = arith.cmpi eq, %arg0, %c0_i32 : i32
    %c0_i32_0 = arith.constant 0 : i32
    %1 = arith.cmpi eq, %arg1, %c0_i32_0 : i32
    %2 = arith.andi %0, %1 : i1
    %3 = arith.extui %2 : i1 to i32
    %c0_i32_1 = arith.constant 0 : i32
    %4 = arith.cmpi ne, %3, %c0_i32_1 : i32
    scf.if %4 {
      %cst_12 = arith.constant 0.000000e+00 : f32
      %21 = vector.broadcast %cst_12 : f32 to vector<1x128xf32>
      %c0_13 = arith.constant 0 : index
      %c0_14 = arith.constant 0 : index
      %22 = vector.load %arg4[%c0_13, %c0_14] : memref<1x128xf32, #tpu.memory_space<vmem>>, vector<1x128xf32>
      tpu.vector_store %arg4[%c0_13, %c0_14], %21 {strides = array<i32>} : memref<1x128xf32, #tpu.memory_space<vmem>>, vector<1x128xf32>,
      %cst_15 = arith.constant 0.000000e+00 : f32
      %23 = vector.broadcast %cst_15 : f32 to vector<1x128xf32>
      %c0_16 = arith.constant 0 : index
      %c0_17 = arith.constant 0 : index
      %24 = vector.load %arg5[%c0_16, %c0_17] : memref<1x128xf32, #tpu.memory_space<vmem>>, vector<1x128xf32>
      tpu.vector_store %arg5[%c0_16, %c0_17], %23 {strides = array<i32>} : memref<1x128xf32, #tpu.memory_space<vmem>>, vector<1x128xf32>,
    } else {
    }
    %c0_i32_2 = arith.constant 0 : i32
    %5 = arith.cmpi eq, %arg1, %c0_i32_2 : i32
    %6 = arith.extui %5 : i1 to i32
    %c0_i32_3 = arith.constant 0 : i32
    %7 = arith.cmpi ne, %6, %c0_i32_3 : i32
    scf.if %7 {
      %cst_12 = arith.constant 0.000000e+00 : f32
      %21 = vector.broadcast %cst_12 : f32 to vector<128x128xf32>
      %c0_13 = arith.constant 0 : index
      %c0_14 = arith.constant 0 : index
      %22 = vector.load %arg6[%c0_13, %c0_14] : memref<128x128xf32, #tpu.memory_space<vmem>>, vector<128x128xf32>
      tpu.vector_store %arg6[%c0_13, %c0_14], %21 {strides = array<i32>} : memref<128x128xf32, #tpu.memory_space<vmem>>, vector<128x128xf32>,
    } else {
    }
    %c128_i32 = arith.constant 128 : i32
    %8 = arith.muli %arg1, %c128_i32 : i32
    %9 = tpu.assume_multiple %8, 128 : i32
    %c0 = arith.constant 0 : index
    %c0_4 = arith.constant 0 : index
    %10 = vector.load %arg6[%c0, %c0_4] : memref<128x128xf32, #tpu.memory_space<vmem>>, vector<128x128xf32>
    %c0_5 = arith.constant 0 : index
    %c0_6 = arith.constant 0 : index
    %c0_7 = arith.constant 0 : index
    %11 = vector.load %arg2[%c0_5, %c0_6, %c0_7] : memref<1x128x128xbf16, #tpu.memory_space<vmem>>, vector<1x128x128xbf16>
    %12 = vector.shape_cast %11 : vector<1x128x128xbf16> to vector<128x128xbf16>
    %13 = arith.index_cast %9 : i32 to index
    %c0_8 = arith.constant 0 : index
    %14 = vector.load %arg3[%13, %c0_8] : memref<1152x128xbf16, #tpu.memory_space<vmem>>, vector<128x128xbf16>
    %cst = arith.constant dense<0.000000e+00> : vector<128x128xf32>
    %15 = tpu.matmul %12, %14, %cst {dimension_numbers = #tpu.dot_dimension_numbers<[1], [0], [0], [1], [0, 0, 1, 1], [], []>} : vector<128x128xbf16>, vector<128x128xbf16>, vector<128x128xf32> -> vector<128x128xf32>
    %16 = arith.addf %10, %15 : vector<128x128xf32>
    %c0_9 = arith.constant 0 : index
    %c0_10 = arith.constant 0 : index
    %17 = vector.load %arg6[%c0_9, %c0_10] : memref<128x128xf32, #tpu.memory_space<vmem>>, vector<128x128xf32>
    tpu.vector_store %arg6[%c0_9, %c0_10], %16 {strides = array<i32>} : memref<128x128xf32, #tpu.memory_space<vmem>>, vector<128x128xf32>,
    %c8_i32 = arith.constant 8 : i32
    %18 = arith.cmpi eq, %arg1, %c8_i32 : i32
    %19 = arith.extui %18 : i1 to i32
    %c0_i32_11 = arith.constant 0 : i32
    %20 = arith.cmpi ne, %19, %c0_i32_11 : i32
    scf.if %20 {
      %c128_i32_12 = arith.constant 128 : i32
      %21 = arith.muli %arg0, %c128_i32_12 : i32
      %22 = tpu.iota {dimensions = array<i32: 0>} : vector<128x1xi32>
      %23 = vector.broadcast %21 : i32 to vector<128x1xi32>
      %24 = arith.addi %23, %22 : vector<128x1xi32>
      %c128_i32_13 = arith.constant 128 : i32
      %25 = vector.broadcast %c128_i32_13 : i32 to vector<128x1xi32>
      %26 = arith.cmpi slt, %24, %25 : vector<128x1xi32>
      %c0_14 = arith.constant 0 : index
      %c0_15 = arith.constant 0 : index
      %27 = vector.load %arg6[%c0_14, %c0_15] : memref<128x128xf32, #tpu.memory_space<vmem>>, vector<128x128xf32>
      %cst_16 = arith.constant 0.000000e+00 : f32
      %28 = vector.shape_cast %26 : vector<128x1xi1> to vector<128x1xi1>
      %29 = vector.broadcast %28 : vector<128x1xi1> to vector<128x128xi1>
      %30 = vector.broadcast %cst_16 : f32 to vector<128x128xf32>
      %31 = arith.select %29, %27, %30 : vector<128x128xi1>, vector<128x128xf32>
      %c0_17 = arith.constant 0 : index
      %c0_18 = arith.constant 0 : index
      %32 = vector.load %arg4[%c0_17, %c0_18] : memref<1x128xf32, #tpu.memory_space<vmem>>, vector<1x128xf32>
      %cst_19 = arith.constant dense<0.000000e+00> : vector<128xf32>
      %33 = vector.multi_reduction <add>, %31, %cst_19 [0] : vector<128x128xf32> to vector<128xf32>
      %34 = vector.shape_cast %33 : vector<128xf32> to vector<1x128xf32>
      %35 = arith.addf %32, %34 : vector<1x128xf32>
      %c0_20 = arith.constant 0 : index
      %c0_21 = arith.constant 0 : index
      %36 = vector.load %arg4[%c0_20, %c0_21] : memref<1x128xf32, #tpu.memory_space<vmem>>, vector<1x128xf32>
      tpu.vector_store %arg4[%c0_20, %c0_21], %35 {strides = array<i32>} : memref<1x128xf32, #tpu.memory_space<vmem>>, vector<1x128xf32>,
      %c0_22 = arith.constant 0 : index
      %c0_23 = arith.constant 0 : index
      %37 = vector.load %arg5[%c0_22, %c0_23] : memref<1x128xf32, #tpu.memory_space<vmem>>, vector<1x128xf32>
      %38 = arith.mulf %31, %31 : vector<128x128xf32>
      %cst_24 = arith.constant dense<0.000000e+00> : vector<128xf32>
      %39 = vector.multi_reduction <add>, %38, %cst_24 [0] : vector<128x128xf32> to vector<128xf32>
      %40 = vector.shape_cast %39 : vector<128xf32> to vector<1x128xf32>
      %41 = arith.addf %37, %40 : vector<1x128xf32>
      %c0_25 = arith.constant 0 : index
      %c0_26 = arith.constant 0 : index
      %42 = vector.load %arg5[%c0_25, %c0_26] : memref<1x128xf32, #tpu.memory_space<vmem>>, vector<1x128xf32>
      tpu.vector_store %arg5[%c0_25, %c0_26], %41 {strides = array<i32>} : memref<1x128xf32, #tpu.memory_space<vmem>>, vector<1x128xf32>,
    } else {
    }
    return
  }
  func.func @transform_0(%arg0: i32, %arg1: i32) -> (i32, i32, i32) {
    %c0_i32 = arith.constant 0 : i32
    %c0_i32_0 = arith.constant 0 : i32
    return %arg1, %arg0, %c0_i32 : i32, i32, i32
  }
  func.func @transform_1(%arg0: i32, %arg1: i32) -> (i32, i32) {
    %c0_i32 = arith.constant 0 : i32
    %c0_i32_0 = arith.constant 0 : i32
    %c0_i32_1 = arith.constant 0 : i32
    return %c0_i32, %c0_i32_0 : i32, i32
  }
  func.func @transform_2(%arg0: i32, %arg1: i32) -> (i32, i32) {
    %c0_i32 = arith.constant 0 : i32
    %c0_i32_0 = arith.constant 0 : i32
    %c0_i32_1 = arith.constant 0 : i32
    return %c0_i32, %c0_i32_0 : i32, i32
  }
  func.func @transform_3(%arg0: i32, %arg1: i32) -> (i32, i32) {
    %c0_i32 = arith.constant 0 : i32
    %c0_i32_0 = arith.constant 0 : i32
    %c0_i32_1 = arith.constant 0 : i32
    return %c0_i32, %c0_i32_0 : i32, i32
  }
}

module attributes {stable_mosaic.version = 11 : i64} {
  func.func @_fused_stats_kernel(%arg0: i32, %arg1: memref<128x128xbf16, #tpu.memory_space<vmem>>, %arg2: memref<128x128xbf16, #tpu.memory_space<vmem>>, %arg3: memref<128x128xbf16, #tpu.memory_space<vmem>>, %arg4: memref<128x128xbf16, #tpu.memory_space<vmem>>, %arg5: memref<1x128xf32, #tpu.memory_space<vmem>>, %arg6: memref<1x128xf32, #tpu.memory_space<vmem>>, %arg7: memref<1x128xf32, #tpu.memory_space<vmem>>, %arg8: memref<1x128xf32, #tpu.memory_space<vmem>>) attributes {dimension_semantics = [#tpu.dimension_semantics<arbitrary>], iteration_bounds = array<i64: 1>, scalar_prefetch = 0 : i64, scratch_operands = 0 : i64, tpu.core_type = #tpu.core_type<tc>, window_params = [{transform_indices = @transform_0, window_bounds = array<i64: 128, 128>}, {pipeline_mode = #tpu.pipeline_mode<synchronous>, transform_indices = @transform_1, window_bounds = array<i64: 128, 128>}, {transform_indices = @transform_2, window_bounds = array<i64: 128, 128>}, {pipeline_mode = #tpu.pipeline_mode<synchronous>, transform_indices = @transform_3, window_bounds = array<i64: 128, 128>}, {pipeline_mode = #tpu.pipeline_mode<synchronous>, transform_indices = @transform_4, window_bounds = array<i64: 1, 128>}, {pipeline_mode = #tpu.pipeline_mode<synchronous>, transform_indices = @transform_5, window_bounds = array<i64: 1, 128>}, {pipeline_mode = #tpu.pipeline_mode<synchronous>, transform_indices = @transform_6, window_bounds = array<i64: 1, 128>}, {pipeline_mode = #tpu.pipeline_mode<synchronous>, transform_indices = @transform_7, window_bounds = array<i64: 1, 128>}]} {
    %c0_i32 = arith.constant 0 : i32
    %0 = arith.cmpi eq, %arg0, %c0_i32 : i32
    %1 = arith.extui %0 : i1 to i32
    %c0_i32_0 = arith.constant 0 : i32
    %2 = arith.cmpi ne, %1, %c0_i32_0 : i32
    scf.if %2 {
      %cst_32 = arith.constant 0.000000e+00 : f32
      %45 = vector.broadcast %cst_32 : f32 to vector<1x128xf32>
      %c0_33 = arith.constant 0 : index
      %c0_34 = arith.constant 0 : index
      %46 = vector.load %arg5[%c0_33, %c0_34] : memref<1x128xf32, #tpu.memory_space<vmem>>, vector<1x128xf32>
      tpu.vector_store %arg5[%c0_33, %c0_34], %45 {strides = array<i32>} : memref<1x128xf32, #tpu.memory_space<vmem>>, vector<1x128xf32>,
      %cst_35 = arith.constant 0.000000e+00 : f32
      %47 = vector.broadcast %cst_35 : f32 to vector<1x128xf32>
      %c0_36 = arith.constant 0 : index
      %c0_37 = arith.constant 0 : index
      %48 = vector.load %arg6[%c0_36, %c0_37] : memref<1x128xf32, #tpu.memory_space<vmem>>, vector<1x128xf32>
      tpu.vector_store %arg6[%c0_36, %c0_37], %47 {strides = array<i32>} : memref<1x128xf32, #tpu.memory_space<vmem>>, vector<1x128xf32>,
      %cst_38 = arith.constant 0.000000e+00 : f32
      %49 = vector.broadcast %cst_38 : f32 to vector<1x128xf32>
      %c0_39 = arith.constant 0 : index
      %c0_40 = arith.constant 0 : index
      %50 = vector.load %arg7[%c0_39, %c0_40] : memref<1x128xf32, #tpu.memory_space<vmem>>, vector<1x128xf32>
      tpu.vector_store %arg7[%c0_39, %c0_40], %49 {strides = array<i32>} : memref<1x128xf32, #tpu.memory_space<vmem>>, vector<1x128xf32>,
      %cst_41 = arith.constant 0.000000e+00 : f32
      %51 = vector.broadcast %cst_41 : f32 to vector<1x128xf32>
      %c0_42 = arith.constant 0 : index
      %c0_43 = arith.constant 0 : index
      %52 = vector.load %arg8[%c0_42, %c0_43] : memref<1x128xf32, #tpu.memory_space<vmem>>, vector<1x128xf32>
      tpu.vector_store %arg8[%c0_42, %c0_43], %51 {strides = array<i32>} : memref<1x128xf32, #tpu.memory_space<vmem>>, vector<1x128xf32>,
    } else {
    }
    %c128_i32 = arith.constant 128 : i32
    %3 = arith.muli %arg0, %c128_i32 : i32
    %4 = tpu.iota {dimensions = array<i32: 0>} : vector<128x1xi32>
    %5 = vector.broadcast %3 : i32 to vector<128x1xi32>
    %6 = arith.addi %5, %4 : vector<128x1xi32>
    %c128_i32_1 = arith.constant 128 : i32
    %7 = vector.broadcast %c128_i32_1 : i32 to vector<128x1xi32>
    %8 = arith.cmpi slt, %6, %7 : vector<128x1xi32>
    %c0 = arith.constant 0 : index
    %c0_2 = arith.constant 0 : index
    %9 = vector.load %arg1[%c0, %c0_2] : memref<128x128xbf16, #tpu.memory_space<vmem>>, vector<128x128xbf16>
    %c0_3 = arith.constant 0 : index
    %c0_4 = arith.constant 0 : index
    %10 = vector.load %arg2[%c0_3, %c0_4] : memref<128x128xbf16, #tpu.memory_space<vmem>>, vector<128x128xbf16>
    %cst = arith.constant dense<0.000000e+00> : vector<128x128xf32>
    %11 = tpu.matmul %9, %10, %cst {dimension_numbers = #tpu.dot_dimension_numbers<[1], [0], [0], [1], [0, 0, 1, 1], [], []>} : vector<128x128xbf16>, vector<128x128xbf16>, vector<128x128xf32> -> vector<128x128xf32>
    %cst_5 = arith.constant 0.000000e+00 : f32
    %12 = vector.shape_cast %8 : vector<128x1xi1> to vector<128x1xi1>
    %13 = vector.broadcast %12 : vector<128x1xi1> to vector<128x128xi1>
    %14 = vector.broadcast %cst_5 : f32 to vector<128x128xf32>
    %15 = arith.select %13, %11, %14 : vector<128x128xi1>, vector<128x128xf32>
    %c0_6 = arith.constant 0 : index
    %c0_7 = arith.constant 0 : index
    %16 = vector.load %arg5[%c0_6, %c0_7] : memref<1x128xf32, #tpu.memory_space<vmem>>, vector<1x128xf32>
    %cst_8 = arith.constant dense<0.000000e+00> : vector<128xf32>
    %17 = vector.multi_reduction <add>, %15, %cst_8 [0] : vector<128x128xf32> to vector<128xf32>
    %18 = vector.shape_cast %17 : vector<128xf32> to vector<1x128xf32>
    %19 = arith.addf %16, %18 : vector<1x128xf32>
    %c0_9 = arith.constant 0 : index
    %c0_10 = arith.constant 0 : index
    %20 = vector.load %arg5[%c0_9, %c0_10] : memref<1x128xf32, #tpu.memory_space<vmem>>, vector<1x128xf32>
    tpu.vector_store %arg5[%c0_9, %c0_10], %19 {strides = array<i32>} : memref<1x128xf32, #tpu.memory_space<vmem>>, vector<1x128xf32>,
    %c0_11 = arith.constant 0 : index
    %c0_12 = arith.constant 0 : index
    %21 = vector.load %arg6[%c0_11, %c0_12] : memref<1x128xf32, #tpu.memory_space<vmem>>, vector<1x128xf32>
    %22 = arith.mulf %15, %15 : vector<128x128xf32>
    %cst_13 = arith.constant dense<0.000000e+00> : vector<128xf32>
    %23 = vector.multi_reduction <add>, %22, %cst_13 [0] : vector<128x128xf32> to vector<128xf32>
    %24 = vector.shape_cast %23 : vector<128xf32> to vector<1x128xf32>
    %25 = arith.addf %21, %24 : vector<1x128xf32>
    %c0_14 = arith.constant 0 : index
    %c0_15 = arith.constant 0 : index
    %26 = vector.load %arg6[%c0_14, %c0_15] : memref<1x128xf32, #tpu.memory_space<vmem>>, vector<1x128xf32>
    tpu.vector_store %arg6[%c0_14, %c0_15], %25 {strides = array<i32>} : memref<1x128xf32, #tpu.memory_space<vmem>>, vector<1x128xf32>,
    %c0_16 = arith.constant 0 : index
    %c0_17 = arith.constant 0 : index
    %27 = vector.load %arg3[%c0_16, %c0_17] : memref<128x128xbf16, #tpu.memory_space<vmem>>, vector<128x128xbf16>
    %c0_18 = arith.constant 0 : index
    %c0_19 = arith.constant 0 : index
    %28 = vector.load %arg4[%c0_18, %c0_19] : memref<128x128xbf16, #tpu.memory_space<vmem>>, vector<128x128xbf16>
    %cst_20 = arith.constant dense<0.000000e+00> : vector<128x128xf32>
    %29 = tpu.matmul %27, %28, %cst_20 {dimension_numbers = #tpu.dot_dimension_numbers<[1], [0], [0], [1], [0, 0, 1, 1], [], []>} : vector<128x128xbf16>, vector<128x128xbf16>, vector<128x128xf32> -> vector<128x128xf32>
    %cst_21 = arith.constant 0.000000e+00 : f32
    %30 = vector.shape_cast %8 : vector<128x1xi1> to vector<128x1xi1>
    %31 = vector.broadcast %30 : vector<128x1xi1> to vector<128x128xi1>
    %32 = vector.broadcast %cst_21 : f32 to vector<128x128xf32>
    %33 = arith.select %31, %29, %32 : vector<128x128xi1>, vector<128x128xf32>
    %c0_22 = arith.constant 0 : index
    %c0_23 = arith.constant 0 : index
    %34 = vector.load %arg7[%c0_22, %c0_23] : memref<1x128xf32, #tpu.memory_space<vmem>>, vector<1x128xf32>
    %cst_24 = arith.constant dense<0.000000e+00> : vector<128xf32>
    %35 = vector.multi_reduction <add>, %33, %cst_24 [0] : vector<128x128xf32> to vector<128xf32>
    %36 = vector.shape_cast %35 : vector<128xf32> to vector<1x128xf32>
    %37 = arith.addf %34, %36 : vector<1x128xf32>
    %c0_25 = arith.constant 0 : index
    %c0_26 = arith.constant 0 : index
    %38 = vector.load %arg7[%c0_25, %c0_26] : memref<1x128xf32, #tpu.memory_space<vmem>>, vector<1x128xf32>
    tpu.vector_store %arg7[%c0_25, %c0_26], %37 {strides = array<i32>} : memref<1x128xf32, #tpu.memory_space<vmem>>, vector<1x128xf32>,
    %c0_27 = arith.constant 0 : index
    %c0_28 = arith.constant 0 : index
    %39 = vector.load %arg8[%c0_27, %c0_28] : memref<1x128xf32, #tpu.memory_space<vmem>>, vector<1x128xf32>
    %40 = arith.mulf %33, %33 : vector<128x128xf32>
    %cst_29 = arith.constant dense<0.000000e+00> : vector<128xf32>
    %41 = vector.multi_reduction <add>, %40, %cst_29 [0] : vector<128x128xf32> to vector<128xf32>
    %42 = vector.shape_cast %41 : vector<128xf32> to vector<1x128xf32>
    %43 = arith.addf %39, %42 : vector<1x128xf32>
    %c0_30 = arith.constant 0 : index
    %c0_31 = arith.constant 0 : index
    %44 = vector.load %arg8[%c0_30, %c0_31] : memref<1x128xf32, #tpu.memory_space<vmem>>, vector<1x128xf32>
    tpu.vector_store %arg8[%c0_30, %c0_31], %43 {strides = array<i32>} : memref<1x128xf32, #tpu.memory_space<vmem>>, vector<1x128xf32>,
    return
  }
  func.func @transform_0(%arg0: i32) -> (i32, i32) {
    %c0_i32 = arith.constant 0 : i32
    %c0_i32_0 = arith.constant 0 : i32
    return %arg0, %c0_i32 : i32, i32
  }
  func.func @transform_1(%arg0: i32) -> (i32, i32) {
    %c0_i32 = arith.constant 0 : i32
    %c0_i32_0 = arith.constant 0 : i32
    %c0_i32_1 = arith.constant 0 : i32
    return %c0_i32, %c0_i32_0 : i32, i32
  }
  func.func @transform_2(%arg0: i32) -> (i32, i32) {
    %c0_i32 = arith.constant 0 : i32
    %c0_i32_0 = arith.constant 0 : i32
    return %arg0, %c0_i32 : i32, i32
  }
  func.func @transform_3(%arg0: i32) -> (i32, i32) {
    %c0_i32 = arith.constant 0 : i32
    %c0_i32_0 = arith.constant 0 : i32
    %c0_i32_1 = arith.constant 0 : i32
    return %c0_i32, %c0_i32_0 : i32, i32
  }
  func.func @transform_4(%arg0: i32) -> (i32, i32) {
    %c0_i32 = arith.constant 0 : i32
    %c0_i32_0 = arith.constant 0 : i32
    %c0_i32_1 = arith.constant 0 : i32
    return %c0_i32, %c0_i32_0 : i32, i32
  }
  func.func @transform_5(%arg0: i32) -> (i32, i32) {
    %c0_i32 = arith.constant 0 : i32
    %c0_i32_0 = arith.constant 0 : i32
    %c0_i32_1 = arith.constant 0 : i32
    return %c0_i32, %c0_i32_0 : i32, i32
  }
  func.func @transform_6(%arg0: i32) -> (i32, i32) {
    %c0_i32 = arith.constant 0 : i32
    %c0_i32_0 = arith.constant 0 : i32
    %c0_i32_1 = arith.constant 0 : i32
    return %c0_i32, %c0_i32_0 : i32, i32
  }
  func.func @transform_7(%arg0: i32) -> (i32, i32) {
    %c0_i32 = arith.constant 0 : i32
    %c0_i32_0 = arith.constant 0 : i32
    %c0_i32_1 = arith.constant 0 : i32
    return %c0_i32, %c0_i32_0 : i32, i32
  }
}

module attributes {stable_mosaic.version = 11 : i64} {
  func.func @_fused_apply_kernel(%arg0: i32, %arg1: memref<128x128xbf16, #tpu.memory_space<vmem>>, %arg2: memref<128x128xbf16, #tpu.memory_space<vmem>>, %arg3: memref<128x128xbf16, #tpu.memory_space<vmem>>, %arg4: memref<128x128xbf16, #tpu.memory_space<vmem>>, %arg5: memref<1x128xf32, #tpu.memory_space<vmem>>, %arg6: memref<1x128xf32, #tpu.memory_space<vmem>>, %arg7: memref<1x128xf32, #tpu.memory_space<vmem>>, %arg8: memref<1x128xf32, #tpu.memory_space<vmem>>, %arg9: memref<1x128xf32, #tpu.memory_space<vmem>>, %arg10: memref<1x128xf32, #tpu.memory_space<vmem>>, %arg11: memref<1x128xf32, #tpu.memory_space<vmem>>, %arg12: memref<1x128xf32, #tpu.memory_space<vmem>>, %arg13: memref<128x128xf32, #tpu.memory_space<vmem>>) attributes {dimension_semantics = [#tpu.dimension_semantics<parallel>], iteration_bounds = array<i64: 1>, scalar_prefetch = 0 : i64, scratch_operands = 0 : i64, tpu.core_type = #tpu.core_type<tc>, window_params = [{transform_indices = @transform_0, window_bounds = array<i64: 128, 128>}, {pipeline_mode = #tpu.pipeline_mode<synchronous>, transform_indices = @transform_1, window_bounds = array<i64: 128, 128>}, {transform_indices = @transform_2, window_bounds = array<i64: 128, 128>}, {pipeline_mode = #tpu.pipeline_mode<synchronous>, transform_indices = @transform_3, window_bounds = array<i64: 128, 128>}, {pipeline_mode = #tpu.pipeline_mode<synchronous>, transform_indices = @transform_4, window_bounds = array<i64: 1, 128>}, {pipeline_mode = #tpu.pipeline_mode<synchronous>, transform_indices = @transform_5, window_bounds = array<i64: 1, 128>}, {pipeline_mode = #tpu.pipeline_mode<synchronous>, transform_indices = @transform_6, window_bounds = array<i64: 1, 128>}, {pipeline_mode = #tpu.pipeline_mode<synchronous>, transform_indices = @transform_7, window_bounds = array<i64: 1, 128>}, {pipeline_mode = #tpu.pipeline_mode<synchronous>, transform_indices = @transform_8, window_bounds = array<i64: 1, 128>}, {pipeline_mode = #tpu.pipeline_mode<synchronous>, transform_indices = @transform_9, window_bounds = array<i64: 1, 128>}, {pipeline_mode = #tpu.pipeline_mode<synchronous>, transform_indices = @transform_10, window_bounds = array<i64: 1, 128>}, {pipeline_mode = #tpu.pipeline_mode<synchronous>, transform_indices = @transform_11, window_bounds = array<i64: 1, 128>}, {transform_indices = @transform_12, window_bounds = array<i64: 128, 128>}]} {
    %c0 = arith.constant 0 : index
    %c0_0 = arith.constant 0 : index
    %0 = vector.load %arg1[%c0, %c0_0] : memref<128x128xbf16, #tpu.memory_space<vmem>>, vector<128x128xbf16>
    %c0_1 = arith.constant 0 : index
    %c0_2 = arith.constant 0 : index
    %1 = vector.load %arg2[%c0_1, %c0_2] : memref<128x128xbf16, #tpu.memory_space<vmem>>, vector<128x128xbf16>
    %cst = arith.constant dense<0.000000e+00> : vector<128x128xf32>
    %2 = tpu.matmul %0, %1, %cst {dimension_numbers = #tpu.dot_dimension_numbers<[1], [0], [0], [1], [0, 0, 1, 1], [], []>} : vector<128x128xbf16>, vector<128x128xbf16>, vector<128x128xf32> -> vector<128x128xf32>
    %c0_3 = arith.constant 0 : index
    %c0_4 = arith.constant 0 : index
    %3 = vector.load %arg5[%c0_3, %c0_4] : memref<1x128xf32, #tpu.memory_space<vmem>>, vector<1x128xf32>
    %4 = vector.broadcast %3 : vector<1x128xf32> to vector<128x128xf32>
    %5 = arith.subf %2, %4 : vector<128x128xf32>
    %c0_5 = arith.constant 0 : index
    %c0_6 = arith.constant 0 : index
    %6 = vector.load %arg6[%c0_5, %c0_6] : memref<1x128xf32, #tpu.memory_space<vmem>>, vector<1x128xf32>
    %c0_7 = arith.constant 0 : index
    %c0_8 = arith.constant 0 : index
    %7 = vector.load %arg7[%c0_7, %c0_8] : memref<1x128xf32, #tpu.memory_space<vmem>>, vector<1x128xf32>
    %8 = arith.mulf %6, %7 : vector<1x128xf32>
    %9 = vector.broadcast %8 : vector<1x128xf32> to vector<128x128xf32>
    %10 = arith.mulf %5, %9 : vector<128x128xf32>
    %c0_9 = arith.constant 0 : index
    %c0_10 = arith.constant 0 : index
    %11 = vector.load %arg8[%c0_9, %c0_10] : memref<1x128xf32, #tpu.memory_space<vmem>>, vector<1x128xf32>
    %12 = vector.broadcast %11 : vector<1x128xf32> to vector<128x128xf32>
    %13 = arith.addf %10, %12 : vector<128x128xf32>
    %c0_11 = arith.constant 0 : index
    %c0_12 = arith.constant 0 : index
    %14 = vector.load %arg3[%c0_11, %c0_12] : memref<128x128xbf16, #tpu.memory_space<vmem>>, vector<128x128xbf16>
    %c0_13 = arith.constant 0 : index
    %c0_14 = arith.constant 0 : index
    %15 = vector.load %arg4[%c0_13, %c0_14] : memref<128x128xbf16, #tpu.memory_space<vmem>>, vector<128x128xbf16>
    %cst_15 = arith.constant dense<0.000000e+00> : vector<128x128xf32>
    %16 = tpu.matmul %14, %15, %cst_15 {dimension_numbers = #tpu.dot_dimension_numbers<[1], [0], [0], [1], [0, 0, 1, 1], [], []>} : vector<128x128xbf16>, vector<128x128xbf16>, vector<128x128xf32> -> vector<128x128xf32>
    %c0_16 = arith.constant 0 : index
    %c0_17 = arith.constant 0 : index
    %17 = vector.load %arg9[%c0_16, %c0_17] : memref<1x128xf32, #tpu.memory_space<vmem>>, vector<1x128xf32>
    %18 = vector.broadcast %17 : vector<1x128xf32> to vector<128x128xf32>
    %19 = arith.subf %16, %18 : vector<128x128xf32>
    %c0_18 = arith.constant 0 : index
    %c0_19 = arith.constant 0 : index
    %20 = vector.load %arg10[%c0_18, %c0_19] : memref<1x128xf32, #tpu.memory_space<vmem>>, vector<1x128xf32>
    %c0_20 = arith.constant 0 : index
    %c0_21 = arith.constant 0 : index
    %21 = vector.load %arg11[%c0_20, %c0_21] : memref<1x128xf32, #tpu.memory_space<vmem>>, vector<1x128xf32>
    %22 = arith.mulf %20, %21 : vector<1x128xf32>
    %23 = vector.broadcast %22 : vector<1x128xf32> to vector<128x128xf32>
    %24 = arith.mulf %19, %23 : vector<128x128xf32>
    %c0_22 = arith.constant 0 : index
    %c0_23 = arith.constant 0 : index
    %25 = vector.load %arg12[%c0_22, %c0_23] : memref<1x128xf32, #tpu.memory_space<vmem>>, vector<1x128xf32>
    %26 = vector.broadcast %25 : vector<1x128xf32> to vector<128x128xf32>
    %27 = arith.addf %24, %26 : vector<128x128xf32>
    %28 = arith.addf %13, %27 : vector<128x128xf32>
    %cst_24 = arith.constant 0.000000e+00 : f32
    %29 = vector.broadcast %cst_24 : f32 to vector<128x128xf32>
    %30 = arith.maximumf %28, %29 : vector<128x128xf32>
    %c0_25 = arith.constant 0 : index
    %c0_26 = arith.constant 0 : index
    %31 = vector.load %arg13[%c0_25, %c0_26] : memref<128x128xf32, #tpu.memory_space<vmem>>, vector<128x128xf32>
    tpu.vector_store %arg13[%c0_25, %c0_26], %30 {strides = array<i32>} : memref<128x128xf32, #tpu.memory_space<vmem>>, vector<128x128xf32>,
    return
  }
  func.func @transform_0(%arg0: i32) -> (i32, i32) {
    %c0_i32 = arith.constant 0 : i32
    %c0_i32_0 = arith.constant 0 : i32
    return %arg0, %c0_i32 : i32, i32
  }
  func.func @transform_1(%arg0: i32) -> (i32, i32) {
    %c0_i32 = arith.constant 0 : i32
    %c0_i32_0 = arith.constant 0 : i32
    %c0_i32_1 = arith.constant 0 : i32
    return %c0_i32, %c0_i32_0 : i32, i32
  }
  func.func @transform_2(%arg0: i32) -> (i32, i32) {
    %c0_i32 = arith.constant 0 : i32
    %c0_i32_0 = arith.constant 0 : i32
    return %arg0, %c0_i32 : i32, i32
  }
  func.func @transform_3(%arg0: i32) -> (i32, i32) {
    %c0_i32 = arith.constant 0 : i32
    %c0_i32_0 = arith.constant 0 : i32
    %c0_i32_1 = arith.constant 0 : i32
    return %c0_i32, %c0_i32_0 : i32, i32
  }
  func.func @transform_4(%arg0: i32) -> (i32, i32) {
    %c0_i32 = arith.constant 0 : i32
    %c0_i32_0 = arith.constant 0 : i32
    %c0_i32_1 = arith.constant 0 : i32
    return %c0_i32, %c0_i32_0 : i32, i32
  }
  func.func @transform_5(%arg0: i32) -> (i32, i32) {
    %c0_i32 = arith.constant 0 : i32
    %c0_i32_0 = arith.constant 0 : i32
    %c0_i32_1 = arith.constant 0 : i32
    return %c0_i32, %c0_i32_0 : i32, i32
  }
  func.func @transform_6(%arg0: i32) -> (i32, i32) {
    %c0_i32 = arith.constant 0 : i32
    %c0_i32_0 = arith.constant 0 : i32
    %c0_i32_1 = arith.constant 0 : i32
    return %c0_i32, %c0_i32_0 : i32, i32
  }
  func.func @transform_7(%arg0: i32) -> (i32, i32) {
    %c0_i32 = arith.constant 0 : i32
    %c0_i32_0 = arith.constant 0 : i32
    %c0_i32_1 = arith.constant 0 : i32
    return %c0_i32, %c0_i32_0 : i32, i32
  }
  func.func @transform_8(%arg0: i32) -> (i32, i32) {
    %c0_i32 = arith.constant 0 : i32
    %c0_i32_0 = arith.constant 0 : i32
    %c0_i32_1 = arith.constant 0 : i32
    return %c0_i32, %c0_i32_0 : i32, i32
  }
  func.func @transform_9(%arg0: i32) -> (i32, i32) {
    %c0_i32 = arith.constant 0 : i32
    %c0_i32_0 = arith.constant 0 : i32
    %c0_i32_1 = arith.constant 0 : i32
    return %c0_i32, %c0_i32_0 : i32, i32
  }
  func.func @transform_10(%arg0: i32) -> (i32, i32) {
    %c0_i32 = arith.constant 0 : i32
    %c0_i32_0 = arith.constant 0 : i32
    %c0_i32_1 = arith.constant 0 : i32
    return %c0_i32, %c0_i32_0 : i32, i32
  }
  func.func @transform_11(%arg0: i32) -> (i32, i32) {
    %c0_i32 = arith.constant 0 : i32
    %c0_i32_0 = arith.constant 0 : i32
    %c0_i32_1 = arith.constant 0 : i32
    return %c0_i32, %c0_i32_0 : i32, i32
  }
  func.func @transform_12(%arg0: i32) -> (i32, i32) {
    %c0_i32 = arith.constant 0 : i32
    %c0_i32_0 = arith.constant 0 : i32
    return %arg0, %c0_i32 : i32, i32
  }
}

</mosaic_0001>

<bundles_post_ra>
// kernel: bottleneck_forward.7
= control target key start
LH: loop header
LB: loop body
LE: loop exit
PB: predicated region body
PF: predicated region fallthrough
CT: control target
= control target key end

     0   :  { %s1582_s21 = smov 0   ;;  %s1584_s22 = smov 0   ;;  %s1796_s0 = inlined_call_operand.vmem [shape: bf16[1,512,128], index: 0, kind: input, shape index: {}]   ;;  %s1797_s1 = inlined_call_operand.vmem [shape: bf16[128,128], index: 1, kind: input, shape index: {}]   ;;  %s1798_s2 = inlined_call_operand.vmem [shape: f32[1,128], index: 2, kind: input, shape index: {}]   ;;  %s1799_s3 = inlined_call_operand.vmem [shape: f32[1,128], index: 3, kind: input, shape index: {}]   ;;  %s1800_s4 = inlined_call_operand.vmem [shape: f32[1,128], index: 4, kind: input, shape index: {}]   ;;  %s1801_s5 = inlined_call_operand.vmem [shape: f32[1,128], index: 5, kind: input, shape index: {}]   ;;  %s1802_s6 = inlined_call_operand.vmem [shape: bf16[512,128], index: 6, kind: output, shape index: {}]  }
   0x1   :  { %s1586_s23 = smov 0  }
   0x2 LB: > { %s28_s24 = sadd.s32 1, %s1541_s22  ;;  %p1195_p0 = scmp.ge.s32.totalorder %s1545_s23, 1  ;;  %s1545_s23 = sphi %s1586_s23, %s16_s23   ;;  %s1541_s22 = sphi %s1584_s22, %s1804_s22   ;;  %s1537_s21 = sphi %s1582_s21, %s1803_s21  }
   0x3   : > { %p30_p1 = scmp.ge.s32.totalorder %s28_s24, 2  ;;  %p231_p2 = scmp.lt.s32.totalorder %s1545_s23, 3 }
   0x5   : > { %s1806_s24 = smov (%p30_p1, %s28_s24), 0  ;;  %p232_p3 = pnand %p1195_p0, %p231_p2 }
   0x6   : > { %s1196_s27 = sshll.u32 (!%p232_p3), %s1537_s21, 5 }
   0x7   : > { %235 = sbr.rel (%p232_p3) target bundleno = 282 (0x11a), region = 44  ;;  %p268_p4 = scmp.lt.s32.totalorder (!%p232_p3), %s1196_s27, 63 }
   0xc   : > { %v1499_v0 = vld [vmem:[%s1797_s1 + $0x38] sm:$0xff]   ;;  %v1500_v1 = vld [vmem:[%s1797_s1 + $0x30] sm:$0xff]   ;;  %s1808_s27 = smov (!%p268_p4, %s1196_s27), 63  ;;  %v1501_v2 = vld [vmem:[%s1797_s1 + $0x28] sm:$0xff]   ;;  %v850_v24 = vlaneseq }
   0xd   : > { %1411 = vmatprep.subr.bf16.mxu0 %v1499_v0  ;;  %1459 = vmatprep.subr.bf16.mxu1 %v1499_v0  ;;  %s1197_s8 = sshll.u32 %s1808_s27, 2  ;;  %v1502_v3 = vld [vmem:[%s1797_s1 + $0x20] sm:$0xff]   ;;  %v1503_v6 = vld [vmem:[%s1797_s1 + $0x18] sm:$0xff]   ;;  %v1504_v7 = vld [vmem:[%s1797_s1 + $0x10] sm:$0xff]  }
   0xe   : > { %1412 = vmatpush3.bf16.msra.mxu0 %v1499_v0  ;;  %1467 = vmatpush3.bf16.msra.mxu1 %v1499_v0  ;;  %s1617_s11 = scalar_lea.vmem %s1796_s0, %s1197_s8  ;;  %v1505_v8 = vld [vmem:[%s1797_s1 + $0x8] sm:$0xff]   ;;  %v1506_v9 = vld [vmem:[%s1797_s1] sm:$0xff]   ;;  %v851_v25 = vshrl.u32 %v850_v24, 7  ;;  %s1703_s13 = scalar_lea.vmem %s1802_s6, %s1197_s8 }
   0xf   : > { %1413 = vmatprep.subr.bf16.mxu0 %v1500_v1  ;;  %1460 = vmatprep.subr.bf16.mxu1 %v1500_v1  ;;  %v1507_v4 = vld [vmem:[%s1617_s11] sm:$0xff]   ;;  %v1509_v10 = vld [vmem:[%s1617_s11 + $0x8] sm:$0xff]   ;;  %v1511_v12 = vld [vmem:[%s1617_s11 + $0x10] sm:$0xff]  }
  0x10   : > { %v1508_v5 = vld [vmem:[%s1617_s11 + $0x40] sm:$0xff]   ;;  %1427 = vmatprep.mubr.bf16.mxu0 %v1507_v4  ;;  %v1510_v11 = vld [vmem:[%s1617_s11 + $0x48] sm:$0xff]   ;;  %v1512_v13 = vld [vmem:[%s1617_s11 + $0x50] sm:$0xff]   ;;  %v852_v29 = vsub.s32 0, %v851_v25 }
  0x11   : > { %1443 = vmatprep.mubr.bf16.mxu1 %v1508_v5  ;;  %v1513_v14 = vld [vmem:[%s1617_s11 + $0x18] sm:$0xff]   ;;  %v1515_v16 = vld [vmem:[%s1617_s11 + $0x20] sm:$0xff]   ;;  %v1517_v18 = vld [vmem:[%s1617_s11 + $0x28] sm:$0xff]  }
  0x12   : > { %1414 = vmatpush3.bf16.msra.mxu0 %v1500_v1  ;;  %1468 = vmatpush3.bf16.msra.mxu1 %v1500_v1  ;;  %v1514_v15 = vld [vmem:[%s1617_s11 + $0x58] sm:$0xff]   ;;  %v1516_v17 = vld [vmem:[%s1617_s11 + $0x60] sm:$0xff]   ;;  %v1518_v19 = vld [vmem:[%s1617_s11 + $0x68] sm:$0xff]  }
  0x13   : > { %1415 = vmatprep.subr.bf16.mxu0 %v1501_v2  ;;  %1461 = vmatprep.subr.bf16.mxu1 %v1501_v2  ;;  %v1519_v20 = vld [vmem:[%s1617_s11 + $0x30] sm:$0xff]   ;;  %v1521_v22 = vld [vmem:[%s1617_s11 + $0x38] sm:$0xff]   ;;  %v846_v26 = vld [vmem:[%s1799_s3] sm:$0x1] }
  0x14   : > { %v1520_v21 = vld [vmem:[%s1617_s11 + $0x70] sm:$0xff]   ;;  %v1522_v23 = vld [vmem:[%s1617_s11 + $0x78] sm:$0xff]   ;;  %v847_v27 = vld [vmem:[%s1800_s4] sm:$0x1] }
  0x15   : > { %v848_v28 = vmul.f32 %v847_v27, %v846_v26  ;;  %v1659_v30 = vld [vmem:[%s1798_s2] ss:$0 sm:$0xff] }
  0x16   : > { %1416 = vmatpush3.bf16.msra.mxu0 %v1501_v2  ;;  %1469 = vmatpush3.bf16.msra.mxu1 %v1501_v2  ;;  %v1668_v36 = vld [vmem:[%s1801_s5] ss:$0 sm:$0xff] }
  0x17   : > { %1417 = vmatprep.subr.bf16.mxu0 %v1502_v3  ;;  %1462 = vmatprep.subr.bf16.mxu1 %v1502_v3  ;;  %v1661_v31 = vrot.slane %v848_v28, %v852_v29 }
  0x1a   : > { %1418 = vmatpush3.bf16.msra.mxu0 %v1502_v3  ;;  %1470 = vmatpush3.bf16.msra.mxu1 %v1502_v3 }
  0x1b   : > { %1419 = vmatprep.subr.bf16.mxu0 %v1503_v6  ;;  %1463 = vmatprep.subr.bf16.mxu1 %v1503_v6 }
  0x1e   : > { %1420 = vmatpush3.bf16.msra.mxu0 %v1503_v6  ;;  %1471 = vmatpush3.bf16.msra.mxu1 %v1503_v6 }
  0x1f   : > { %1421 = vmatprep.subr.bf16.mxu0 %v1504_v7  ;;  %1464 = vmatprep.subr.bf16.mxu1 %v1504_v7 }
  0x22   : > { %1422 = vmatpush3.bf16.msra.mxu0 %v1504_v7  ;;  %1472 = vmatpush3.bf16.msra.mxu1 %v1504_v7 }
  0x23   : > { %1423 = vmatprep.subr.bf16.mxu0 %v1505_v8  ;;  %1465 = vmatprep.subr.bf16.mxu1 %v1505_v8 }
  0x26   : > { %1424 = vmatpush3.bf16.msra.mxu0 %v1505_v8  ;;  %1473 = vmatpush3.bf16.msra.mxu1 %v1505_v8 }
  0x27   : > { %1425 = vmatprep.subr.bf16.mxu0 %v1506_v9  ;;  %1466 = vmatprep.subr.bf16.mxu1 %v1506_v9 }
  0x2a   : > { %1426 = vmatpush3.bf16.msra.mxu0 %v1506_v9  ;;  %1474 = vmatpush3.bf16.msra.mxu1 %v1506_v9 }
  0x2d   : > { %1428 = vmatmul.mubr.bf16.vlgmr.msra.gmra.mxu0 %v1509_v10  ;;  %1444 = vmatmul.mubr.bf16.vlgmr.msra.gmra.mxu1 %v1510_v11 }
  0x2e   : > { %1431 = vmatprep.mubr.bf16.mxu0 %v1511_v12  ;;  %1447 = vmatprep.mubr.bf16.mxu1 %v1512_v13 }
  0x35   : > { %1432 = vmatmul.mubr.bf16.gmra.mxu0 %v1513_v14  ;;  %1448 = vmatmul.mubr.bf16.gmra.mxu1 %v1514_v15 }
  0x36   : > { %1435 = vmatprep.mubr.bf16.mxu0 %v1515_v16  ;;  %1451 = vmatprep.mubr.bf16.mxu1 %v1516_v17 }
  0x3d   : > { %1436 = vmatmul.mubr.bf16.gmra.mxu0 %v1517_v18  ;;  %1452 = vmatmul.mubr.bf16.gmra.mxu1 %v1518_v19 }
  0x3e   : > { %1439 = vmatprep.mubr.bf16.mxu0 %v1519_v20  ;;  %1455 = vmatprep.mubr.bf16.mxu1 %v1520_v21 }
  0x45   : > { %1440 = vmatmul.mubr.bf16.gmra.mxu0 %v1521_v22  ;;  %1456 = vmatmul.mubr.bf16.gmra.mxu1 %v1522_v23 }
  0xed   : > { %v1429_v32 = vpop.f32.mrf.mxu0  ;;  %v1445_v33 = vpop.f32.mrf.mxu1 }
  0xee   : > { %v816_v34 = vsub.f32 %v1429_v32, %v1659_v30  ;;  %v832_v35 = vsub.f32 %v1445_v33, %v1659_v30 }
  0xef   : > { %v581_v37 = vpop.f32.mrf.mxu0  ;;  %v645_v38 = vpop.f32.mrf.mxu1 }
  0xf0   : > { %v857_v39 = vmul.f32 %v1661_v31, %v816_v34  ;;  %v873_v40 = vmul.f32 %v1661_v31, %v832_v35  ;;  %v814_v41 = vsub.f32 %v581_v37, %v1659_v30  ;;  %v830_v42 = vsub.f32 %v645_v38, %v1659_v30 }
  0xf1   : > { %v1430_v43 = vpop.f32.mrf.mxu0  ;;  %v1446_v44 = vpop.f32.mrf.mxu1 }
  0xf2   : > { %v896_v45 = vadd.f32 %v1668_v36, %v857_v39  ;;  %v912_v46 = vadd.f32 %v1668_v36, %v873_v40  ;;  %v855_v47 = vmul.f32 %v1661_v31, %v814_v41  ;;  %v871_v48 = vmul.f32 %v1661_v31, %v830_v42 }
  0xf3   : > { %v817_v49 = vsub.f32 %v1430_v43, %v1659_v30  ;;  %v833_v50 = vsub.f32 %v1446_v44, %v1659_v30  ;;  %v584_v51 = vpop.f32.mrf.mxu0  ;;  %v648_v52 = vpop.f32.mrf.mxu1 }
  0xf4   : > { %v928_v53 = vmax.f32 %v896_v45, 0.0  ;;  %v944_v54 = vmax.f32 %v912_v46, 0.0  ;;  %v815_v57 = vsub.f32 %v584_v51, %v1659_v30  ;;  %v831_v58 = vsub.f32 %v648_v52, %v1659_v30 }
  0xf5   : > { %v858_v55 = vmul.f32 %v1661_v31, %v817_v49  ;;  %v874_v56 = vmul.f32 %v1661_v31, %v833_v50  ;;  %v1433_v59 = vpop.f32.mrf.mxu0  ;;  %v1449_v60 = vpop.f32.mrf.mxu1  ;;  %v894_v61 = vadd.f32 %v1668_v36, %v855_v47  ;;  %v910_v62 = vadd.f32 %v1668_v36, %v871_v48 }
  0xf6   : > { %v820_v63 = vsub.f32 %v1433_v59, %v1659_v30  ;;  %v836_v0 = vsub.f32 %v1449_v60, %v1659_v30  ;;  %v856_v3 = vmul.f32 %v1661_v31, %v815_v57  ;;  %v872_v4 = vmul.f32 %v1661_v31, %v831_v58 }
  0xf7   : > { %v897_v1 = vadd.f32 %v1668_v36, %v858_v55  ;;  %v913_v2 = vadd.f32 %v1668_v36, %v874_v56  ;;  %v597_v5 = vpop.f32.mrf.mxu0  ;;  %v661_v6 = vpop.f32.mrf.mxu1  ;;  %v926_v17 = vmax.f32 %v894_v61, 0.0  ;;  %v942_v18 = vmax.f32 %v910_v62, 0.0 }
  0xf8   : > { %v861_v7 = vmul.f32 %v1661_v31, %v820_v63  ;;  %v877_v8 = vmul.f32 %v1661_v31, %v836_v0  ;;  %v818_v9 = vsub.f32 %v597_v5, %v1659_v30  ;;  %v834_v10 = vsub.f32 %v661_v6, %v1659_v30 }
  0xf9   : > { %v929_v11 = vmax.f32 %v897_v1, 0.0  ;;  %v945_v12 = vmax.f32 %v913_v2, 0.0  ;;  %v895_v13 = vadd.f32 %v1668_v36, %v856_v3  ;;  %v911_v14 = vadd.f32 %v1668_v36, %v872_v4  ;;  %v1434_v15 = vpop.f32.mrf.mxu0  ;;  %v1450_v16 = vpop.f32.mrf.mxu1 }
  0xfa   : > { %v859_v19 = vmul.f32 %v1661_v31, %v818_v9  ;;  %v875_v20 = vmul.f32 %v1661_v31, %v834_v10  ;;  %v900_v27 = vadd.f32 %v1668_v36, %v861_v7  ;;  %v916_v28 = vadd.f32 %v1668_v36, %v877_v8 }
  0xfb   : > { %v1300_v21 = vpack.c.bf16 %v929_v11, %v928_v53  ;;  %v1340_v22 = vpack.c.bf16 %v945_v12, %v944_v54  ;;  %v927_v23 = vmax.f32 %v895_v13, 0.0  ;;  %v943_v24 = vmax.f32 %v911_v14, 0.0  ;;  %v600_v25 = vpop.f32.mrf.mxu0  ;;  %v664_v26 = vpop.f32.mrf.mxu1 }
  0xfc   : > { %v821_v33 = vsub.f32 %v1434_v15, %v1659_v30  ;;  %v837_v34 = vsub.f32 %v1450_v16, %v1659_v30  ;;  %v898_v38 = vadd.f32 %v1668_v36, %v859_v19  ;;  %v914_v39 = vadd.f32 %v1668_v36, %v875_v20 }
  0xfd   : > { %1372 = vst [vmem:[%s1703_s13 + $0x8] sm:$0xff] %v1300_v21   ;;  %1380 = vst [vmem:[%s1703_s13 + $0x48] sm:$0xff] %v1340_v22   ;;  %v1295_v29 = vpack.c.bf16 %v927_v23, %v926_v17  ;;  %v1335_v32 = vpack.c.bf16 %v943_v24, %v942_v18  ;;  %v1437_v35 = vpop.f32.mrf.mxu0  ;;  %v1453_v37 = vpop.f32.mrf.mxu1  ;;  %v819_v40 = vsub.f32 %v600_v25, %v1659_v30  ;;  %v932_v62 = vmax.f32 %v900_v27, 0.0 }
  0xfe   : > { %v835_v41 = vsub.f32 %v664_v26, %v1659_v30  ;;  %v862_v42 = vmul.f32 %v1661_v31, %v821_v33  ;;  %v878_v43 = vmul.f32 %v1661_v31, %v837_v34  ;;  %v824_v44 = vsub.f32 %v1437_v35, %v1659_v30 }
  0xff   : > { %1296 = vst [vmem:[%s1703_s13] sm:$0xff] %v1295_v29   ;;  %1379 = vst [vmem:[%s1703_s13 + $0x40] sm:$0xff] %v1335_v32   ;;  %v840_v45 = vsub.f32 %v1453_v37, %v1659_v30  ;;  %v613_v46 = vpop.f32.mrf.mxu0  ;;  %v677_v47 = vpop.f32.mrf.mxu1  ;;  %v860_v48 = vmul.f32 %v1661_v31, %v819_v40  ;;  %v948_v63 = vmax.f32 %v916_v28, 0.0  ;;  %v930_v4 = vmax.f32 %v898_v38, 0.0 }
 0x100   : > { %v876_v49 = vmul.f32 %v1661_v31, %v835_v41  ;;  %v822_v50 = vsub.f32 %v613_v46, %v1659_v30  ;;  %v838_v51 = vsub.f32 %v677_v47, %v1659_v30  ;;  %v901_v52 = vadd.f32 %v1668_v36, %v862_v42 }
 0x101   : > { %v917_v53 = vadd.f32 %v1668_v36, %v878_v43  ;;  %v865_v54 = vmul.f32 %v1661_v31, %v824_v44  ;;  %v881_v55 = vmul.f32 %v1661_v31, %v840_v45  ;;  %v1438_v56 = vpop.f32.mrf.mxu0  ;;  %v1454_v57 = vpop.f32.mrf.mxu1  ;;  %v899_v58 = vadd.f32 %v1668_v36, %v860_v48 }
 0x102   : > { %v915_v59 = vadd.f32 %v1668_v36, %v876_v49  ;;  %v863_v60 = vmul.f32 %v1661_v31, %v822_v50  ;;  %v879_v61 = vmul.f32 %v1661_v31, %v838_v51  ;;  %v933_v0 = vmax.f32 %v901_v52, 0.0 }
 0x103   : > { %v949_v1 = vmax.f32 %v917_v53, 0.0  ;;  %v616_v2 = vpop.f32.mrf.mxu0  ;;  %v680_v3 = vpop.f32.mrf.mxu1  ;;  %v946_v5 = vmax.f32 %v914_v39, 0.0  ;;  %v931_v6 = vmax.f32 %v899_v58, 0.0  ;;  %v904_v10 = vadd.f32 %v1668_v36, %v865_v54 }
 0x104   : > { %v947_v7 = vmax.f32 %v915_v59, 0.0  ;;  %v1310_v8 = vpack.c.bf16 %v933_v0, %v932_v62  ;;  %v920_v11 = vadd.f32 %v1668_v36, %v881_v55  ;;  %v902_v16 = vadd.f32 %v1668_v36, %v863_v60 }
 0x105   : > { %v1350_v9 = vpack.c.bf16 %v949_v1, %v948_v63  ;;  %v1441_v12 = vpop.f32.mrf.mxu0  ;;  %v1457_v13 = vpop.f32.mrf.mxu1  ;;  %v1305_v14 = vpack.c.bf16 %v931_v6, %v930_v4  ;;  %v918_v17 = vadd.f32 %v1668_v36, %v879_v61  ;;  %v825_v18 = vsub.f32 %v1438_v56, %v1659_v30 }
 0x106   : > { %v1345_v15 = vpack.c.bf16 %v947_v7, %v946_v5  ;;  %1374 = vst [vmem:[%s1703_s13 + $0x18] sm:$0xff] %v1310_v8   ;;  %v841_v19 = vsub.f32 %v1454_v57, %v1659_v30  ;;  %v823_v20 = vsub.f32 %v616_v2, %v1659_v30  ;;  %v839_v21 = vsub.f32 %v680_v3, %v1659_v30 }
 0x107   : > { %1382 = vst [vmem:[%s1703_s13 + $0x58] sm:$0xff] %v1350_v9   ;;  %v629_v22 = vpop.f32.mrf.mxu0  ;;  %v693_v23 = vpop.f32.mrf.mxu1  ;;  %1373 = vst [vmem:[%s1703_s13 + $0x10] sm:$0xff] %v1305_v14   ;;  %v828_v24 = vsub.f32 %v1441_v12, %v1659_v30  ;;  %v844_v25 = vsub.f32 %v1457_v13, %v1659_v30  ;;  %v866_v28 = vmul.f32 %v1661_v31, %v825_v18  ;;  %v936_v37 = vmax.f32 %v904_v10, 0.0 }
 0x108   : > { %1381 = vst [vmem:[%s1703_s13 + $0x50] sm:$0xff] %v1345_v15   ;;  %v826_v26 = vsub.f32 %v629_v22, %v1659_v30  ;;  %v842_v27 = vsub.f32 %v693_v23, %v1659_v30  ;;  %v882_v29 = vmul.f32 %v1661_v31, %v841_v19  ;;  %v864_v32 = vmul.f32 %v1661_v31, %v823_v20 }
 0x109   : > { %v880_v33 = vmul.f32 %v1661_v31, %v839_v21  ;;  %v1442_v34 = vpop.f32.mrf.mxu0  ;;  %v1458_v35 = vpop.f32.mrf.mxu1  ;;  %v952_v38 = vmax.f32 %v920_v11, 0.0  ;;  %v934_v39 = vmax.f32 %v902_v16, 0.0  ;;  %v950_v40 = vmax.f32 %v918_v17, 0.0 }
 0x10a   : > { %v905_v41 = vadd.f32 %v1668_v36, %v866_v28  ;;  %v921_v42 = vadd.f32 %v1668_v36, %v882_v29  ;;  %v903_v43 = vadd.f32 %v1668_v36, %v864_v32  ;;  %v869_v45 = vmul.f32 %v1661_v31, %v828_v24 }
 0x10b   : > { %v919_v44 = vadd.f32 %v1668_v36, %v880_v33  ;;  %v885_v46 = vmul.f32 %v1661_v31, %v844_v25  ;;  %v867_v47 = vmul.f32 %v1661_v31, %v826_v26  ;;  %v883_v48 = vmul.f32 %v1661_v31, %v842_v27  ;;  %v632_v53 = vpop.f32.mrf.mxu0  ;;  %v696_v54 = vpop.f32.mrf.mxu1 }
 0x10c   : > { %v937_v49 = vmax.f32 %v905_v41, 0.0  ;;  %v953_v50 = vmax.f32 %v921_v42, 0.0  ;;  %v935_v51 = vmax.f32 %v903_v43, 0.0  ;;  %v829_v59 = vsub.f32 %v1442_v34, %v1659_v30 }
 0x10d   : > { %v951_v52 = vmax.f32 %v919_v44, 0.0  ;;  %v845_v60 = vsub.f32 %v1458_v35, %v1659_v30  ;;  %v827_v61 = vsub.f32 %v632_v53, %v1659_v30  ;;  %v843_v62 = vsub.f32 %v696_v54, %v1659_v30 }
 0x10e   : > { %v1320_v55 = vpack.c.bf16 %v937_v49, %v936_v37  ;;  %v1360_v56 = vpack.c.bf16 %v953_v50, %v952_v38  ;;  %v1315_v57 = vpack.c.bf16 %v935_v51, %v934_v39  ;;  %v908_v63 = vadd.f32 %v1668_v36, %v869_v45 }
 0x10f   : > { %v1355_v58 = vpack.c.bf16 %v951_v52, %v950_v40  ;;  %v924_v0 = vadd.f32 %v1668_v36, %v885_v46  ;;  %v906_v1 = vadd.f32 %v1668_v36, %v867_v47  ;;  %v922_v2 = vadd.f32 %v1668_v36, %v883_v48 }
 0x110   : > { %1376 = vst [vmem:[%s1703_s13 + $0x28] sm:$0xff] %v1320_v55   ;;  %1384 = vst [vmem:[%s1703_s13 + $0x68] sm:$0xff] %v1360_v56   ;;  %v870_v3 = vmul.f32 %v1661_v31, %v829_v59  ;;  %v886_v4 = vmul.f32 %v1661_v31, %v845_v60  ;;  %v868_v5 = vmul.f32 %v1661_v31, %v827_v61  ;;  %v940_v10 = vmax.f32 %v908_v63, 0.0 }
 0x111   : > { %1375 = vst [vmem:[%s1703_s13 + $0x20] sm:$0xff] %v1315_v57   ;;  %1383 = vst [vmem:[%s1703_s13 + $0x60] sm:$0xff] %v1355_v58   ;;  %v884_v30 = vmul.f32 %v1661_v31, %v843_v62  ;;  %v956_v11 = vmax.f32 %v924_v0, 0.0  ;;  %v938_v12 = vmax.f32 %v906_v1, 0.0  ;;  %v954_v13 = vmax.f32 %v922_v2, 0.0 }
 0x112   : > { %v909_v6 = vadd.f32 %v1668_v36, %v870_v3  ;;  %v925_v7 = vadd.f32 %v1668_v36, %v886_v4  ;;  %v907_v8 = vadd.f32 %v1668_v36, %v868_v5 }
 0x113   : > { %v923_v9 = vadd.f32 %v1668_v36, %v884_v30 }
 0x114   : > { %v941_v14 = vmax.f32 %v909_v6, 0.0  ;;  %v957_v15 = vmax.f32 %v925_v7, 0.0  ;;  %v939_v16 = vmax.f32 %v907_v8, 0.0 }
 0x115   : > { %v955_v31 = vmax.f32 %v923_v9, 0.0 }
 0x116   : > { %v1330_v17 = vpack.c.bf16 %v941_v14, %v940_v10  ;;  %v1370_v18 = vpack.c.bf16 %v957_v15, %v956_v11  ;;  %v1325_v19 = vpack.c.bf16 %v939_v16, %v938_v12 }
 0x117   : > { %v1365_v20 = vpack.c.bf16 %v955_v31, %v954_v13 }
 0x118   : > { %1378 = vst [vmem:[%s1703_s13 + $0x38] sm:$0xff] %v1330_v17   ;;  %1386 = vst [vmem:[%s1703_s13 + $0x78] sm:$0xff] %v1370_v18  }
 0x119   : > { %1377 = vst [vmem:[%s1703_s13 + $0x30] sm:$0xff] %v1325_v19   ;;  %1385 = vst [vmem:[%s1703_s13 + $0x70] sm:$0xff] %v1365_v20  }
 0x11a PF: > { %s16_s23 = sadd.s32 1, %s1545_s23   ;;  %s1803_s21 = smov %s1541_s22 }
 0x11b   : > { %p13_p5 = scmp.ge.s32.totalorder %s16_s23, 4   ;;  %s1804_s22 = smov %s1806_s24 }
 0x11d   :  { %15 = sbr.rel (!%p13_p5) target bundleno = 2 (0x2), region = 83 }

// kernel: bottleneck_forward.6
= control target key start
LH: loop header
LB: loop body
LE: loop exit
PB: predicated region body
PF: predicated region fallthrough
CT: control target
= control target key end

     0   :  { %s1289_s12 = smov 0   ;;  %s1291_s13 = smov 0   ;;  %s1491_s0 = inlined_call_operand.vmem [shape: bf16[1,512,128], index: 0, kind: input, shape index: {}]   ;;  %s1492_s1 = inlined_call_operand.vmem [shape: bf16[128,128], index: 1, kind: input, shape index: {}]   ;;  %s1493_s2 = inlined_call_operand.vmem [shape: f32[1,128], index: 2, kind: output, shape index: {0}]   ;;  %s1494_s3 = inlined_call_operand.vmem [shape: f32[1,128], index: 3, kind: output, shape index: {1}]  }
   0x1   :  { %s1293_s14 = smov 0  }
   0x2 LB: > { %s26_s15 = sadd.s32 1, %s1262_s13  ;;  %p1075_p0 = scmp.ge.s32.totalorder %s1266_s14, 1  ;;  %s1266_s14 = sphi %s1293_s14, %s14_s14   ;;  %s1262_s13 = sphi %s1291_s13, %s1496_s13   ;;  %s1258_s12 = sphi %s1289_s12, %s1495_s12  }
   0x3   : > { %p28_p1 = scmp.ge.s32.totalorder %s26_s15, 2  ;;  %p149_p2 = scmp.lt.s32.totalorder %s1266_s14, 3 }
   0x5   : > { %s1498_s15 = smov (%p28_p1, %s26_s15), 0  ;;  %p150_p3 = pnand %p1075_p0, %p149_p2 }
   0x6   : > { %s1076_s16 = sshll.u32 (!%p150_p3), %s1258_s12, 5  ;;  %p183_p4 = scmp.eq.s32.totalorder (!%p150_p3), %s1258_s12, 0 }
   0x7   : > { %153 = sbr.rel (%p150_p3) target bundleno = 329 (0x149), region = 28  ;;  %p175_p5 = scmp.lt.s32.totalorder (!%p150_p3), %s1076_s16, 63 }
   0xc   : > { %s1500_s16 = smov (!%p175_p5, %s1076_s16), 63  ;;  %188 = sbr.rel (!%p183_p4) target bundleno = 17 (0x11), region = 32  ;;  %v1268_v0 = vmov (%p183_p4), 0.0  }
   0xd   : > { %s1077_s17 = sshll.u32 %s1500_s16, 2  ;;  %189 = vst [vmem:[%s1493_s2] sm:$0x1] (%p183_p4), %v1268_v0  ;;  %190 = vst [vmem:[%s1494_s3] sm:$0x1] (%p183_p4), %v1268_v0 }
   0xe   : > { %s1314_s20 = scalar_lea.vmem %s1491_s0, %s1077_s17 }
  0x11 PF: > { %v1220_v1 = vld [vmem:[%s1492_s1 + $0x38] sm:$0xff]   ;;  %v1221_v2 = vld [vmem:[%s1492_s1 + $0x30] sm:$0xff]   ;;  %v1222_v3 = vld [vmem:[%s1492_s1 + $0x28] sm:$0xff]   ;;  %v684_v25 = vlaneseq  ;;  %s1103_s18 = sshll.u32 %s1258_s12, 8 }
  0x12   : > { %1131 = vmatprep.subr.bf16.mxu0 %v1220_v1  ;;  %1179 = vmatprep.subr.bf16.mxu1 %v1220_v1  ;;  %v1223_v4 = vld [vmem:[%s1492_s1 + $0x20] sm:$0xff]   ;;  %v1224_v6 = vld [vmem:[%s1492_s1 + $0x18] sm:$0xff]   ;;  %v1225_v7 = vld [vmem:[%s1492_s1 + $0x10] sm:$0xff]   ;;  %v1367_v29 = vstv %s1103_s18 }
  0x13   : > { %1132 = vmatpush3.bf16.msra.mxu0 %v1220_v1  ;;  %1187 = vmatpush3.bf16.msra.mxu1 %v1220_v1  ;;  %v1228_v5 = vld [vmem:[%s1314_s20] sm:$0xff]   ;;  %v1226_v9 = vld [vmem:[%s1492_s1 + $0x8] sm:$0xff]   ;;  %v1230_v13 = vld [vmem:[%s1314_s20 + $0x10] sm:$0xff]   ;;  %v1362_v26 = vshrl.u32 %v684_v25, 7 }
  0x14   : > { %1133 = vmatprep.subr.bf16.mxu0 %v1221_v2  ;;  %1180 = vmatprep.subr.bf16.mxu1 %v1221_v2  ;;  %v1236_v8 = vld [vmem:[%s1314_s20 + $0x40] sm:$0xff]   ;;  %v1229_v11 = vld [vmem:[%s1314_s20 + $0x8] sm:$0xff]   ;;  %v1238_v14 = vld [vmem:[%s1314_s20 + $0x50] sm:$0xff]  }
  0x15   : > { %1147 = vmatprep.mubr.bf16.mxu0 %v1228_v5  ;;  %1163 = vmatprep.mubr.bf16.mxu1 %v1236_v8  ;;  %v1227_v10 = vld [vmem:[%s1492_s1] sm:$0xff]   ;;  %v1237_v12 = vld [vmem:[%s1314_s20 + $0x48] sm:$0xff]   ;;  %v1231_v15 = vld [vmem:[%s1314_s20 + $0x18] sm:$0xff]   ;;  %v687_v27 = vadd.s32 16, %v1362_v26  ;;  %v686_v28 = vadd.s32 8, %v1362_v26  ;;  %v718_v30 = vadd.s32 %v1367_v29, %v1362_v26  ;;  %v688_v31 = vadd.s32 24, %v1362_v26 }
  0x16   : > { %v1239_v16 = vld [vmem:[%s1314_s20 + $0x58] sm:$0xff]   ;;  %v1232_v17 = vld [vmem:[%s1314_s20 + $0x20] sm:$0xff]   ;;  %v1233_v19 = vld [vmem:[%s1314_s20 + $0x28] sm:$0xff]   ;;  %v689_v32 = vadd.s32 32, %v1362_v26  ;;  %v691_v39 = vadd.s32 48, %v1362_v26  ;;  %v690_v42 = vadd.s32 40, %v1362_v26 }
  0x17   : > { %1134 = vmatpush3.bf16.msra.mxu0 %v1221_v2  ;;  %1188 = vmatpush3.bf16.msra.mxu1 %v1221_v2  ;;  %v1240_v18 = vld [vmem:[%s1314_s20 + $0x60] sm:$0xff]   ;;  %v1241_v20 = vld [vmem:[%s1314_s20 + $0x68] sm:$0xff]   ;;  %v1234_v21 = vld [vmem:[%s1314_s20 + $0x30] sm:$0xff]   ;;  %v720_v34 = vadd.s32 %v1367_v29, %v687_v27  ;;  %v719_v35 = vadd.s32 %v1367_v29, %v686_v28  ;;  %vm750_vm0 = vcmp.lt.s32.totalorder %v718_v30, 512  ;;  %v721_v38 = vadd.s32 %v1367_v29, %v688_v31 }
  0x18   : > { %1135 = vmatprep.subr.bf16.mxu0 %v1222_v3  ;;  %1181 = vmatprep.subr.bf16.mxu1 %v1222_v3  ;;  %v1242_v22 = vld [vmem:[%s1314_s20 + $0x70] sm:$0xff]   ;;  %v1235_v23 = vld [vmem:[%s1314_s20 + $0x38] sm:$0xff]   ;;  %v722_v41 = vadd.s32 %v1367_v29, %v689_v32  ;;  %v692_v45 = vadd.s32 56, %v1362_v26  ;;  %v724_v47 = vadd.s32 %v1367_v29, %v691_v39  ;;  %v723_v51 = vadd.s32 %v1367_v29, %v690_v42 }
  0x19   : > { %v1243_v24 = vld [vmem:[%s1314_s20 + $0x78] sm:$0xff]   ;;  %vm752_vm1 = vcmp.lt.s32.totalorder %v720_v34, 512  ;;  %vm751_vm2 = vcmp.lt.s32.totalorder %v719_v35, 512  ;;  %vm753_vm3 = vcmp.lt.s32.totalorder %v721_v38, 512  ;;  %v693_v56 = vadd.s32 64, %v1362_v26 }
  0x1a   : > { %vm754_vm4 = vcmp.lt.s32.totalorder %v722_v41, 512  ;;  %v725_v58 = vadd.s32 %v1367_v29, %v692_v45  ;;  %v695_v63 = vadd.s32 80, %v1362_v26  ;;  %vm756_vm5 = vcmp.lt.s32.totalorder %v724_v47, 512 }
  0x1b   : > { %1136 = vmatpush3.bf16.msra.mxu0 %v1222_v3  ;;  %1189 = vmatpush3.bf16.msra.mxu1 %v1222_v3  ;;  %vm755_vm6 = vcmp.lt.s32.totalorder %v723_v51, 512  ;;  %v694_v2 = vadd.s32 72, %v1362_v26  ;;  %v696_v8 = vadd.s32 88, %v1362_v26  ;;  %v699_v25 = vadd.s32 112, %v1362_v26 }
  0x1c   : > { %1137 = vmatprep.subr.bf16.mxu0 %v1223_v4  ;;  %1182 = vmatprep.subr.bf16.mxu1 %v1223_v4  ;;  %vm757_vm7 = vcmp.lt.s32.totalorder %v725_v58, 512  ;;  %v698_v41 = vadd.s32 104, %v1362_v26  ;;  %v700_v47 = vadd.s32 120, %v1362_v26 }
  0x1d   : > { %v732_v42 = vadd.s32 %v1367_v29, %v699_v25 }
  0x1f   : > { %1138 = vmatpush3.bf16.msra.mxu0 %v1223_v4  ;;  %1190 = vmatpush3.bf16.msra.mxu1 %v1223_v4  ;;  %vm764_vm13 = vcmp.lt.s32.totalorder %v732_v42, 512 }
  0x20   : > { %1139 = vmatprep.subr.bf16.mxu0 %v1224_v6  ;;  %1183 = vmatprep.subr.bf16.mxu1 %v1224_v6 }
  0x23   : > { %1140 = vmatpush3.bf16.msra.mxu0 %v1224_v6  ;;  %1191 = vmatpush3.bf16.msra.mxu1 %v1224_v6 }
  0x24   : > { %1141 = vmatprep.subr.bf16.mxu0 %v1225_v7  ;;  %1184 = vmatprep.subr.bf16.mxu1 %v1225_v7 }
  0x27   : > { %1142 = vmatpush3.bf16.msra.mxu0 %v1225_v7  ;;  %1192 = vmatpush3.bf16.msra.mxu1 %v1225_v7  ;;  %v726_v7 = vadd.s32 %v1367_v29, %v693_v56 }
  0x28   : > { %1143 = vmatprep.subr.bf16.mxu0 %v1226_v9  ;;  %1185 = vmatprep.subr.bf16.mxu1 %v1226_v9 }
  0x29   : > { %vm758_vm8 = vcmp.lt.s32.totalorder %v726_v7, 512 }
  0x2b   : > { %1144 = vmatpush3.bf16.msra.mxu0 %v1226_v9  ;;  %1193 = vmatpush3.bf16.msra.mxu1 %v1226_v9 }
  0x2c   : > { %1145 = vmatprep.subr.bf16.mxu0 %v1227_v10  ;;  %1186 = vmatprep.subr.bf16.mxu1 %v1227_v10 }
  0x2f   : > { %1146 = vmatpush3.bf16.msra.mxu0 %v1227_v10  ;;  %1194 = vmatpush3.bf16.msra.mxu1 %v1227_v10 }
  0x32   : > { %1148 = vmatmul.mubr.bf16.vlgmr.msra.gmra.mxu0 %v1229_v11  ;;  %1164 = vmatmul.mubr.bf16.vlgmr.msra.gmra.mxu1 %v1237_v12 }
  0x33   : > { %1151 = vmatprep.mubr.bf16.mxu0 %v1230_v13  ;;  %1167 = vmatprep.mubr.bf16.mxu1 %v1238_v14  ;;  %v728_v13 = vadd.s32 %v1367_v29, %v695_v63 }
  0x35   : > { %vm760_vm9 = vcmp.lt.s32.totalorder %v728_v13, 512 }
  0x3a   : > { %1152 = vmatmul.mubr.bf16.gmra.mxu0 %v1231_v15  ;;  %1168 = vmatmul.mubr.bf16.gmra.mxu1 %v1239_v16 }
  0x3b   : > { %1155 = vmatprep.mubr.bf16.mxu0 %v1232_v17  ;;  %1171 = vmatprep.mubr.bf16.mxu1 %v1240_v18  ;;  %v727_v17 = vadd.s32 %v1367_v29, %v694_v2  ;;  %v697_v18 = vadd.s32 96, %v1362_v26 }
  0x3d   : > { %vm759_vm10 = vcmp.lt.s32.totalorder %v727_v17, 512  ;;  %v730_v34 = vadd.s32 %v1367_v29, %v697_v18 }
  0x3f   : > { %vm762_vm12 = vcmp.lt.s32.totalorder %v730_v34, 512 }
  0x42   : > { %1156 = vmatmul.mubr.bf16.gmra.mxu0 %v1233_v19  ;;  %1172 = vmatmul.mubr.bf16.gmra.mxu1 %v1241_v20 }
  0x43   : > { %1159 = vmatprep.mubr.bf16.mxu0 %v1234_v21  ;;  %1175 = vmatprep.mubr.bf16.mxu1 %v1242_v22 }
  0x4a   : > { %1160 = vmatmul.mubr.bf16.gmra.mxu0 %v1235_v23  ;;  %1176 = vmatmul.mubr.bf16.gmra.mxu1 %v1243_v24  ;;  %v729_v24 = vadd.s32 %v1367_v29, %v696_v8 }
  0x4c   : > { %vm761_vm11 = vcmp.lt.s32.totalorder %v729_v24, 512  ;;  %v705_v24 = vadd.s32 160, %v1362_v26 }
  0x4e   : > { %v738_v42 = vadd.s32 %v1367_v29, %v705_v24  ;;  %v714_v24 = vadd.s32 232, %v1362_v26 }
  0xf2   : > { %v1149_v33 = vpop.f32.mrf.mxu0  ;;  %v1375_v36 = vpop.f32.mrf.mxu1 }
  0xf3   : > { %v880_v49 = vsel %vm752_vm1, %v1149_v33, 0.0 }
  0xf4   : > { %v489_v37 = vpop.f32.mrf.mxu0  ;;  %v1379_v40 = vpop.f32.mrf.mxu1  ;;  %v953_v59 = vmul.f32 %v880_v49, %v880_v49 }
  0xf5   : > { %v878_v44 = vsel %vm750_vm0, %v489_v37, 0.0 }
  0xf6   : > { %v1150_v43 = vpop.f32.mrf.mxu0  ;;  %v1385_v48 = vpop.f32.mrf.mxu1  ;;  %v951_v52 = vmul.f32 %v878_v44, %v878_v44 }
  0xf7   : > { %v881_v57 = vsel %vm753_vm3, %v1150_v43, 0.0 }
  0xf8   : > { %v492_v46 = vpop.f32.mrf.mxu0  ;;  %v1391_v0 = vpop.f32.mrf.mxu1  ;;  %v954_v3 = vmul.f32 %v881_v57, %v881_v57 }
  0xf9   : > { %v879_v50 = vsel %vm751_vm2, %v492_v46, 0.0 }
  0xfa   : > { %v911_v53 = vadd.f32 %v879_v50, %v878_v44  ;;  %v952_v54 = vmul.f32 %v879_v50, %v879_v50  ;;  %v1153_v55 = vpop.f32.mrf.mxu0  ;;  %v1398_v14 = vpop.f32.mrf.mxu1 }
  0xfb   : > { %v884_v15 = vsel %vm756_vm5, %v1153_v55, 0.0 }
  0xfc   : > { %v912_v60 = vadd.f32 %v911_v53, %v880_v49  ;;  %v983_v61 = vadd.f32 %v952_v54, %v951_v52  ;;  %v505_v62 = vpop.f32.mrf.mxu0  ;;  %v957_v27 = vmul.f32 %v884_v15, %v884_v15  ;;  %v1407_v32 = vpop.f32.mrf.mxu1  ;;  %v701_v52 = vadd.s32 128, %v1362_v26 }
  0xfd   : > { %v882_v1 = vsel %vm754_vm4, %v505_v62, 0.0  ;;  %vm770_vm4 = vcmp.lt.s32.totalorder %v738_v42, 512 }
  0xfe   : > { %v984_v4 = vadd.f32 %v983_v61, %v953_v59  ;;  %v913_v5 = vadd.f32 %v912_v60, %v881_v57  ;;  %v1154_v6 = vpop.f32.mrf.mxu0  ;;  %v955_v10 = vmul.f32 %v882_v1, %v882_v1  ;;  %v1413_v49 = vpop.f32.mrf.mxu1  ;;  %v731_v57 = vadd.s32 %v1367_v29, %v698_v41 }
  0xff   : > { %v885_v23 = vsel %vm757_vm7, %v1154_v6, 0.0  ;;  %v702_v59 = vadd.s32 136, %v1362_v26 }
 0x100   : > { %v914_v9 = vadd.f32 %v913_v5, %v882_v1  ;;  %v985_v11 = vadd.f32 %v984_v4, %v954_v3  ;;  %v508_v12 = vpop.f32.mrf.mxu0  ;;  %v958_v35 = vmul.f32 %v885_v23, %v885_v23  ;;  %v733_v1 = vadd.s32 %v1367_v29, %v700_v47  ;;  %v1422_v2 = vpop.f32.mrf.mxu1 }
 0x101   : > { %v883_v16 = vsel %vm755_vm6, %v508_v12, 0.0  ;;  %v703_v4 = vadd.s32 144, %v1362_v26  ;;  %v734_v5 = vadd.s32 %v1367_v29, %v701_v52  ;;  %vm763_vm14 = vcmp.lt.s32.totalorder %v731_v57, 512 }
 0x102   : > { %v986_v19 = vadd.f32 %v985_v11, %v955_v10  ;;  %v915_v20 = vadd.f32 %v914_v9, %v883_v16  ;;  %v956_v21 = vmul.f32 %v883_v16, %v883_v16  ;;  %v1157_v22 = vpop.f32.mrf.mxu0  ;;  %v704_v10 = vadd.s32 152, %v1362_v26  ;;  %v1429_v17 = vpop.f32.mrf.mxu1 }
 0x103   : > { %v888_v50 = vsel %vm760_vm9, %v1157_v22, 0.0  ;;  %v735_v11 = vadd.s32 %v1367_v29, %v702_v59  ;;  %vm765_vm15 = vcmp.lt.s32.totalorder %v733_v1, 512  ;;  %vm766_vm0 = vcmp.lt.s32.totalorder %v734_v5, 512 }
 0x104   : > { %v916_v28 = vadd.f32 %v915_v20, %v884_v15  ;;  %v987_v30 = vadd.f32 %v986_v19, %v956_v21  ;;  %v521_v31 = vpop.f32.mrf.mxu0  ;;  %v961_v60 = vmul.f32 %v888_v50, %v888_v50  ;;  %v736_v19 = vadd.s32 %v1367_v29, %v703_v4  ;;  %v585_v34 = vpop.f32.mrf.mxu1 }
 0x105   : > { %v886_v33 = vsel %vm758_vm8, %v521_v31, 0.0  ;;  %vm767_vm1 = vcmp.lt.s32.totalorder %v735_v11, 512 }
 0x106   : > { %v988_v37 = vadd.f32 %v987_v30, %v957_v27  ;;  %v917_v38 = vadd.f32 %v916_v28, %v885_v23  ;;  %v1158_v39 = vpop.f32.mrf.mxu0  ;;  %v959_v44 = vmul.f32 %v886_v33, %v886_v33  ;;  %v737_v27 = vadd.s32 %v1367_v29, %v704_v10 }
 0x107   : > { %v889_v58 = vsel %vm761_vm11, %v1158_v39, 0.0  ;;  %vm768_vm2 = vcmp.lt.s32.totalorder %v736_v19, 512 }
 0x108   : > { %v918_v43 = vadd.f32 %v917_v38, %v886_v33  ;;  %v989_v45 = vadd.f32 %v988_v37, %v958_v35  ;;  %v524_v46 = vpop.f32.mrf.mxu0  ;;  %v962_v6 = vmul.f32 %v889_v58, %v889_v58  ;;  %v706_v33 = vadd.s32 168, %v1362_v26 }
 0x109   : > { %v887_v51 = vsel %vm759_vm10, %v524_v46, 0.0  ;;  %v894_v35 = vsel %vm766_vm0, %v1379_v40, 0.0  ;;  %v707_v37 = vadd.s32 176, %v1362_v26  ;;  %vm769_vm3 = vcmp.lt.s32.totalorder %v737_v27, 512 }
 0x10a   : > { %v990_v53 = vadd.f32 %v989_v45, %v959_v44  ;;  %v919_v54 = vadd.f32 %v918_v43, %v887_v51  ;;  %v960_v55 = vmul.f32 %v887_v51, %v887_v51  ;;  %v1161_v56 = vpop.f32.mrf.mxu0  ;;  %v895_v43 = vsel %vm767_vm1, %v1391_v0, 0.0  ;;  %v1442_v51 = vpop.f32.mrf.mxu1 }
 0x10b   : > { %v892_v18 = vsel %vm764_vm13, %v1161_v56, 0.0  ;;  %v708_v44 = vadd.s32 184, %v1362_v26  ;;  %v967_v45 = vmul.f32 %v894_v35, %v894_v35  ;;  %v896_v40 = vsel %vm768_vm2, %v1375_v36, 0.0 }
 0x10c   : > { %v920_v61 = vadd.f32 %v919_v54, %v888_v50  ;;  %v991_v62 = vadd.f32 %v990_v53, %v960_v55  ;;  %v537_v63 = vpop.f32.mrf.mxu0  ;;  %v965_v28 = vmul.f32 %v892_v18, %v892_v18  ;;  %v739_v50 = vadd.s32 %v1367_v29, %v706_v33 }
 0x10d   : > { %v890_v3 = vsel %vm762_vm12, %v537_v63, 0.0  ;;  %v740_v52 = vadd.s32 %v1367_v29, %v707_v37  ;;  %v709_v53 = vadd.s32 192, %v1362_v26  ;;  %v968_v55 = vmul.f32 %v895_v43, %v895_v43 }
 0x10e   : > { %v992_v7 = vadd.f32 %v991_v62, %v961_v60  ;;  %v921_v8 = vadd.f32 %v920_v61, %v889_v58  ;;  %v1162_v9 = vpop.f32.mrf.mxu0  ;;  %v963_v13 = vmul.f32 %v890_v3, %v890_v3  ;;  %v897_v0 = vsel %vm769_vm3, %v1385_v48, 0.0  ;;  %v588_v62 = vpop.f32.mrf.mxu1 }
 0x10f   : > { %v893_v25 = vsel %vm765_vm15, %v1162_v9, 0.0  ;;  %v741_v57 = vadd.s32 %v1367_v29, %v708_v44  ;;  %v710_v58 = vadd.s32 200, %v1362_v26  ;;  %v969_v59 = vmul.f32 %v896_v40, %v896_v40 }
 0x110   : > { %v922_v12 = vadd.f32 %v921_v8, %v890_v3  ;;  %v993_v15 = vadd.f32 %v992_v7, %v962_v6  ;;  %v540_v16 = vpop.f32.mrf.mxu0  ;;  %v966_v38 = vmul.f32 %v893_v25, %v893_v25  ;;  %vm771_vm5 = vcmp.lt.s32.totalorder %v739_v50, 512  ;;  %v1177_v11 = vpop.f32.mrf.mxu1 }
 0x111   : > { %v891_v20 = vsel %vm763_vm14, %v540_v16, 0.0  ;;  %v898_v36 = vsel %vm770_vm4, %v1407_v32, 0.0  ;;  %v711_v63 = vadd.s32 208, %v1362_v26  ;;  %v742_v1 = vadd.s32 %v1367_v29, %v709_v53 }
 0x112   : > { %v994_v21 = vadd.f32 %v993_v15, %v963_v13  ;;  %v923_v22 = vadd.f32 %v922_v12, %v891_v20  ;;  %v964_v23 = vmul.f32 %v891_v20, %v891_v20  ;;  %v970_v3 = vmul.f32 %v897_v0, %v897_v0 }
 0x113   : > { %vm772_vm6 = vcmp.lt.s32.totalorder %v740_v52, 512  ;;  %v899_v48 = vsel %vm771_vm5, %v1422_v2, 0.0  ;;  %v712_v6 = vadd.s32 216, %v1362_v26  ;;  %v743_v7 = vadd.s32 %v1367_v29, %v710_v58 }
 0x114   : > { %v924_v30 = vadd.f32 %v923_v22, %v892_v18  ;;  %v995_v31 = vadd.f32 %v994_v21, %v964_v23  ;;  %v971_v9 = vmul.f32 %v898_v36, %v898_v36  ;;  %vm773_vm7 = vcmp.lt.s32.totalorder %v741_v57, 512  ;;  %v601_v23 = vpop.f32.mrf.mxu1 }
 0x115   : > { %v900_v32 = vsel %vm772_vm6, %v1398_v14, 0.0  ;;  %v744_v12 = vadd.s32 %v1367_v29, %v711_v63  ;;  %vm774_vm8 = vcmp.lt.s32.totalorder %v742_v1, 512  ;;  %v972_v16 = vmul.f32 %v899_v48, %v899_v48 }
 0x116   : > { %v996_v39 = vadd.f32 %v995_v31, %v965_v28  ;;  %v925_v41 = vadd.f32 %v924_v30, %v893_v25  ;;  %v713_v18 = vadd.s32 224, %v1362_v26  ;;  %v901_v2 = vsel %vm773_vm7, %v1413_v49, 0.0 }
 0x117   : > { %v745_v19 = vadd.s32 %v1367_v29, %v712_v6  ;;  %vm775_vm9 = vcmp.lt.s32.totalorder %v743_v7, 512  ;;  %v973_v20 = vmul.f32 %v900_v32, %v900_v32  ;;  %vm776_vm10 = vcmp.lt.s32.totalorder %v744_v12, 512 }
 0x118   : > { %v926_v46 = vadd.f32 %v925_v41, %v894_v35  ;;  %v997_v47 = vadd.f32 %v996_v39, %v966_v38  ;;  %v902_v14 = vsel %vm774_vm8, %v585_v34, 0.0  ;;  %v715_v25 = vadd.s32 240, %v1362_v26  ;;  %v1178_v39 = vpop.f32.mrf.mxu1 }
 0x119   : > { %v974_v27 = vmul.f32 %v901_v2, %v901_v2  ;;  %v746_v31 = vadd.s32 %v1367_v29, %v713_v18  ;;  %vm777_vm11 = vcmp.lt.s32.totalorder %v745_v19, 512  ;;  %v903_v49 = vsel %vm775_vm9, %v588_v62, 0.0  ;;  %v950_v18 = vld [vmem:[%s1494_s3] sm:$0x1] }
 0x11a   : > { %v927_v54 = vadd.f32 %v926_v46, %v895_v43  ;;  %v998_v56 = vadd.f32 %v997_v47, %v967_v45  ;;  %v716_v33 = vadd.s32 248, %v1362_v26  ;;  %v975_v37 = vmul.f32 %v902_v14, %v902_v14  ;;  %v604_v52 = vpop.f32.mrf.mxu1 }
 0x11b   : > { %v747_v41 = vadd.s32 %v1367_v29, %v714_v24  ;;  %v904_v42 = vsel %vm776_vm10, %v1429_v17, 0.0  ;;  %v748_v34 = vadd.s32 %v1367_v29, %v715_v25  ;;  %v976_v45 = vmul.f32 %v903_v49, %v903_v49 }
 0x11c   : > { %v928_v60 = vadd.f32 %v927_v54, %v896_v40  ;;  %v999_v61 = vadd.f32 %v998_v56, %v968_v55  ;;  %vm778_vm12 = vcmp.lt.s32.totalorder %v746_v31, 512  ;;  %v905_v46 = vsel %vm777_vm11, %v1442_v51, 0.0 }
 0x11d   : > { %v749_v47 = vadd.s32 %v1367_v29, %v716_v33  ;;  %v977_v50 = vmul.f32 %v904_v42, %v904_v42  ;;  %vm779_vm13 = vcmp.lt.s32.totalorder %v747_v41, 512  ;;  %v906_v53 = vsel %vm778_vm12, %v601_v23, 0.0 }
 0x11e   : > { %v1000_v4 = vadd.f32 %v999_v61, %v969_v59  ;;  %v929_v5 = vadd.f32 %v928_v60, %v897_v0  ;;  %v978_v54 = vmul.f32 %v905_v46, %v905_v46  ;;  %vm780_vm14 = vcmp.lt.s32.totalorder %v748_v34, 512 }
 0x11f   : > { %v907_v56 = vsel %vm779_vm13, %v604_v52, 0.0  ;;  %v979_v57 = vmul.f32 %v906_v53, %v906_v53  ;;  %vm781_vm15 = vcmp.lt.s32.totalorder %v749_v47, 512  ;;  %v908_v59 = vsel %vm780_vm14, %v1177_v11, 0.0 }
 0x120   : > { %v930_v8 = vadd.f32 %v929_v5, %v898_v36  ;;  %v1001_v10 = vadd.f32 %v1000_v4, %v970_v3  ;;  %v980_v61 = vmul.f32 %v907_v56, %v907_v56  ;;  %v909_v29 = vsel %vm781_vm15, %v1178_v39, 0.0 }
 0x121   : > { %v981_v62 = vmul.f32 %v908_v59, %v908_v59  ;;  %v982_v1 = vmul.f32 %v909_v29, %v909_v29 }
 0x122   : > { %v1002_v13 = vadd.f32 %v1001_v10, %v971_v9  ;;  %v931_v15 = vadd.f32 %v930_v8, %v899_v48 }
 0x124   : > { %v932_v21 = vadd.f32 %v931_v15, %v900_v32  ;;  %v1003_v22 = vadd.f32 %v1002_v13, %v972_v16  ;;  %v910_v13 = vld [vmem:[%s1493_s2] sm:$0x1] }
 0x126   : > { %v1004_v28 = vadd.f32 %v1003_v22, %v973_v20  ;;  %v933_v30 = vadd.f32 %v932_v21, %v901_v2 }
 0x128   : > { %v934_v35 = vadd.f32 %v933_v30, %v902_v14  ;;  %v1005_v38 = vadd.f32 %v1004_v28, %v974_v27 }
 0x12a   : > { %v1006_v43 = vadd.f32 %v1005_v38, %v975_v37  ;;  %v935_v44 = vadd.f32 %v934_v35, %v903_v49 }
 0x12c   : > { %v936_v26 = vadd.f32 %v935_v44, %v904_v42  ;;  %v1007_v40 = vadd.f32 %v1006_v43, %v976_v45 }
 0x12e   : > { %v1008_v55 = vadd.f32 %v1007_v40, %v977_v50  ;;  %v937_v17 = vadd.f32 %v936_v26, %v905_v46 }
 0x130   : > { %v938_v0 = vadd.f32 %v937_v17, %v906_v53  ;;  %v1009_v58 = vadd.f32 %v1008_v55, %v978_v54 }
 0x132   : > { %v1010_v60 = vadd.f32 %v1009_v58, %v979_v57  ;;  %v939_v51 = vadd.f32 %v938_v0, %v907_v56 }
 0x134   : > { %v940_v36 = vadd.f32 %v939_v51, %v908_v59  ;;  %v1011_v63 = vadd.f32 %v1010_v60, %v980_v61 }
 0x136   : > { %v941_v3 = vadd.f32 %v940_v36, %v909_v29  ;;  %v1012_v4 = vadd.f32 %v1011_v63, %v981_v62 }
 0x138   : > { %v942_v5 = vrot.slane %v941_v3, 4  ;;  %v1013_v48 = vadd.f32 %v1012_v4, %v982_v1 }
 0x13a   : > { %v943_v6 = vadd.f32 %v942_v5, %v941_v3  ;;  %v1014_v7 = vrot.slane %v1013_v48, 4 }
 0x13c   : > { %v944_v8 = vrot.slane %v943_v6, 2  ;;  %v1015_v9 = vadd.f32 %v1014_v7, %v1013_v48 }
 0x13e   : > { %v945_v10 = vadd.f32 %v944_v8, %v943_v6  ;;  %v1016_v32 = vrot.slane %v1015_v9, 2 }
 0x140   : > { %v946_v12 = vrot.slane %v945_v10, 1  ;;  %v1017_v11 = vadd.f32 %v1016_v32, %v1015_v9 }
 0x142   : > { %v947_v15 = vadd.f32 %v946_v12, %v945_v10  ;;  %v1018_v16 = vrot.slane %v1017_v11, 1 }
 0x144   : > { %v948_v2 = vadd.f32 %v947_v15, %v910_v13  ;;  %v1019_v19 = vadd.f32 %v1018_v16, %v1017_v11 }
 0x146   : > { %949 = vst [vmem:[%s1493_s2] sm:$0x1] %v948_v2  ;;  %v1020_v20 = vadd.f32 %v1019_v19, %v950_v18 }
 0x148   : > { %1021 = vst [vmem:[%s1494_s3] sm:$0x1] %v1020_v20 }
 0x149 PF: > { %s14_s14 = sadd.s32 1, %s1266_s14   ;;  %s1495_s12 = smov %s1262_s13 }
 0x14a   : > { %p11_p6 = scmp.ge.s32.totalorder %s14_s14, 4   ;;  %s1496_s13 = smov %s1498_s15 }
 0x14c   :  { %13 = sbr.rel (!%p11_p6) target bundleno = 2 (0x2), region = 75 }

// kernel: bottleneck_forward.9
= control target key start
LH: loop header
LB: loop body
LE: loop exit
PB: predicated region body
PF: predicated region fallthrough
CT: control target
= control target key end

     0   :  { %s1114_s21 = smov 0   ;;  %s1116_s22 = smov 0   ;;  %s1228_s0 = inlined_call_operand.vmem [shape: bf16[9,128,128], index: 0, kind: input, shape index: {}]   ;;  %s1229_s1 = inlined_call_operand.vmem [shape: bf16[1152,128], index: 1, kind: input, shape index: {}]   ;;  %s1230_s2 = inlined_call_operand.vmem [shape: f32[1,128], index: 2, kind: input, shape index: {}]   ;;  %s1231_s3 = inlined_call_operand.vmem [shape: f32[1,128], index: 3, kind: input, shape index: {}]   ;;  %s1232_s4 = inlined_call_operand.vmem [shape: f32[1,128], index: 4, kind: input, shape index: {}]   ;;  %s1233_s5 = inlined_call_operand.vmem [shape: f32[1,128], index: 5, kind: input, shape index: {}]   ;;  %s1234_s6 = inlined_call_operand.vmem [shape: bf16[128,128], index: 6, kind: output, shape index: {}]  }
   0x1   :  { %s1118_s23 = smov 0  }
   0x2 LB: > { %s25_s24 = sadd.s32 1, %s1072_s22  ;;  %p840_p0 = scmp.ge.s32.totalorder %s1076_s23, 1  ;;  %s1076_s23 = sphi %s1118_s23, %s16_s23   ;;  %s1072_s22 = sphi %s1116_s22, %s1236_s22   ;;  %s1068_s21 = sphi %s1114_s21, %s1235_s21  }
   0x3   : > { %p26_p1 = scmp.ge.s32.totalorder %s25_s24, 9  ;;  %p231_p2 = scmp.lt.s32.totalorder %s1076_s23, 10 }
   0x5   : > { %s1238_s24 = smov (%p26_p1, %s25_s24), 0  ;;  %p232_p3 = pnand %p840_p0, %p231_p2 }
   0x6   : > { %p266_p4 = scmp.lt.s32.totalorder (!%p232_p3), %s1068_s21, 8  ;;  %p843_p5 = scmp.ne.s32.totalorder (!%p232_p3), %s1068_s21, 0 }
   0x7   : > { %235 = sbr.rel (%p232_p3) target bundleno = 301 (0x12d), region = 44 }
   0xc   : > { %s267_s25 = scalar_select %p266_p4, %s1068_s21, 8 }
   0xd   : > { %285 = sbr.rel (%p843_p5) target bundleno = 27 (0x1b), region = 48 }
   0xe   : > { %s885_s26 = sshll.u32 %s267_s25, 6 }
   0xf   : > { %s1139_s29 = scalar_lea.vmem %s1228_s0, %s885_s26 }
  0x12   : > { %v1078_v0 = vmov 0.0  }
  0x13   : > { %286 = vst [vmem:[#allocation2 + $0x30] sm:$0xff] %v1078_v0  ;;  %287 = vst [vmem:[#allocation2] sm:$0xff] %v1078_v0 }
  0x14   : > { %288 = vst [vmem:[#allocation2 + $0x58] sm:$0xff] %v1078_v0  ;;  %289 = vst [vmem:[#allocation2 + $0x18] sm:$0xff] %v1078_v0 }
  0x15   : > { %290 = vst [vmem:[#allocation2 + $0x50] sm:$0xff] %v1078_v0  ;;  %291 = vst [vmem:[#allocation2 + $0x68] sm:$0xff] %v1078_v0 }
  0x16   : > { %292 = vst [vmem:[#allocation2 + $0x8] sm:$0xff] %v1078_v0  ;;  %293 = vst [vmem:[#allocation2 + $0x48] sm:$0xff] %v1078_v0 }
  0x17   : > { %294 = vst [vmem:[#allocation2 + $0x40] sm:$0xff] %v1078_v0  ;;  %295 = vst [vmem:[#allocation2 + $0x20] sm:$0xff] %v1078_v0 }
  0x18   : > { %296 = vst [vmem:[#allocation2 + $0x10] sm:$0xff] %v1078_v0  ;;  %297 = vst [vmem:[#allocation2 + $0x38] sm:$0xff] %v1078_v0 }
  0x19   : > { %298 = vst [vmem:[#allocation2 + $0x60] sm:$0xff] %v1078_v0  ;;  %299 = vst [vmem:[#allocation2 + $0x70] sm:$0xff] %v1078_v0 }
  0x1a   : > { %300 = vst [vmem:[#allocation2 + $0x78] sm:$0xff] %v1078_v0  ;;  %301 = vst [vmem:[#allocation2 + $0x28] sm:$0xff] %v1078_v0 }
  0x1b PF: > { %s844_s30 = sshll.u32 %s1068_s21, 7  ;;  %v1046_v1 = vld [vmem:[%s1139_s29] sm:$0xff]   ;;  %v1048_v11 = vld [vmem:[%s1139_s29 + $0x8] sm:$0xff]   ;;  %v1050_v13 = vld [vmem:[%s1139_s29 + $0x10] sm:$0xff]   ;;  %p862_p6 = scmp.ne.s32.totalorder %s1068_s21, 8 }
  0x1c   : > { %s335_s7 = sshra.s32 %s844_s30, 3  ;;  %v1047_v2 = vld [vmem:[%s1139_s29 + $0x20] sm:$0xff]   ;;  %981 = vmatprep.mubr.bf16.mxu0 %v1046_v1  ;;  %v1049_v12 = vld [vmem:[%s1139_s29 + $0x28] sm:$0xff]   ;;  %v1051_v14 = vld [vmem:[%s1139_s29 + $0x30] sm:$0xff]  }
  0x1d   : > { %s845_s8 = sshll.u32 %s335_s7, 2  ;;  %989 = vmatprep.mubr.bf16.mxu1 %v1047_v2  ;;  %v1052_v15 = vld [vmem:[%s1139_s29 + $0x18] sm:$0xff]   ;;  %v303_v21 = vld [vmem:[#allocation2 + $0x30] sm:$0xff]  ;;  %v304_v33 = vld [vmem:[#allocation2] sm:$0xff] }
  0x1e   : > { %s1148_s11 = scalar_lea.vmem %s1229_s1, %s845_s8  ;;  %v1053_v16 = vld [vmem:[%s1139_s29 + $0x38] sm:$0xff]   ;;  %v311_v22 = vld [vmem:[#allocation2 + $0x40] sm:$0xff]  ;;  %v309_v39 = vld [vmem:[#allocation2 + $0x8] sm:$0xff] }
  0x1f   : > { %v1038_v3 = vld [vmem:[%s1148_s11 + $0x38] sm:$0xff]   ;;  %v1039_v4 = vld [vmem:[%s1148_s11 + $0x30] sm:$0xff]   ;;  %v1040_v5 = vld [vmem:[%s1148_s11 + $0x28] sm:$0xff]  }
  0x20   : > { %965 = vmatprep.subr.bf16.mxu0 %v1038_v3  ;;  %997 = vmatprep.subr.bf16.mxu1 %v1038_v3  ;;  %v1041_v6 = vld [vmem:[%s1148_s11 + $0x20] sm:$0xff]   ;;  %v1042_v7 = vld [vmem:[%s1148_s11 + $0x18] sm:$0xff]   ;;  %v1043_v8 = vld [vmem:[%s1148_s11 + $0x10] sm:$0xff]  }
  0x21   : > { %966 = vmatpush3.bf16.msra.mxu0 %v1038_v3  ;;  %1005 = vmatpush3.bf16.msra.mxu1 %v1038_v3  ;;  %v1044_v9 = vld [vmem:[%s1148_s11 + $0x8] sm:$0xff]   ;;  %v1045_v10 = vld [vmem:[%s1148_s11] sm:$0xff]   ;;  %v305_v17 = vld [vmem:[#allocation2 + $0x58] sm:$0xff] }
  0x22   : > { %967 = vmatprep.subr.bf16.mxu0 %v1039_v4  ;;  %998 = vmatprep.subr.bf16.mxu1 %v1039_v4  ;;  %v313_v18 = vld [vmem:[#allocation2 + $0x10] sm:$0xff]  ;;  %v306_v27 = vld [vmem:[#allocation2 + $0x18] sm:$0xff]  ;;  %v312_v34 = vld [vmem:[#allocation2 + $0x20] sm:$0xff] }
  0x23   : > { %v314_v28 = vld [vmem:[#allocation2 + $0x38] sm:$0xff]  ;;  %v307_v45 = vld [vmem:[#allocation2 + $0x50] sm:$0xff]  ;;  %v315_v46 = vld [vmem:[#allocation2 + $0x60] sm:$0xff] }
  0x24   : > { %v317_v40 = vld [vmem:[#allocation2 + $0x78] sm:$0xff]  ;;  %v310_v51 = vld [vmem:[#allocation2 + $0x48] sm:$0xff]  ;;  %v316_v58 = vld [vmem:[#allocation2 + $0x70] sm:$0xff] }
  0x25   : > { %968 = vmatpush3.bf16.msra.mxu0 %v1039_v4  ;;  %1006 = vmatpush3.bf16.msra.mxu1 %v1039_v4  ;;  %v318_v52 = vld [vmem:[#allocation2 + $0x28] sm:$0xff] }
  0x26   : > { %969 = vmatprep.subr.bf16.mxu0 %v1040_v5  ;;  %999 = vmatprep.subr.bf16.mxu1 %v1040_v5  ;;  %v308_v57 = vld [vmem:[#allocation2 + $0x68] sm:$0xff] }
  0x29   : > { %970 = vmatpush3.bf16.msra.mxu0 %v1040_v5  ;;  %1007 = vmatpush3.bf16.msra.mxu1 %v1040_v5 }
  0x2a   : > { %971 = vmatprep.subr.bf16.mxu0 %v1041_v6  ;;  %1000 = vmatprep.subr.bf16.mxu1 %v1041_v6 }
  0x2d   : > { %972 = vmatpush3.bf16.msra.mxu0 %v1041_v6  ;;  %1008 = vmatpush3.bf16.msra.mxu1 %v1041_v6 }
  0x2e   : > { %973 = vmatprep.subr.bf16.mxu0 %v1042_v7  ;;  %1001 = vmatprep.subr.bf16.mxu1 %v1042_v7 }
  0x31   : > { %974 = vmatpush3.bf16.msra.mxu0 %v1042_v7  ;;  %1009 = vmatpush3.bf16.msra.mxu1 %v1042_v7 }
  0x32   : > { %975 = vmatprep.subr.bf16.mxu0 %v1043_v8  ;;  %1002 = vmatprep.subr.bf16.mxu1 %v1043_v8 }
  0x35   : > { %976 = vmatpush3.bf16.msra.mxu0 %v1043_v8  ;;  %1010 = vmatpush3.bf16.msra.mxu1 %v1043_v8 }
  0x36   : > { %977 = vmatprep.subr.bf16.mxu0 %v1044_v9  ;;  %1003 = vmatprep.subr.bf16.mxu1 %v1044_v9 }
  0x39   : > { %978 = vmatpush3.bf16.msra.mxu0 %v1044_v9  ;;  %1011 = vmatpush3.bf16.msra.mxu1 %v1044_v9 }
  0x3a   : > { %979 = vmatprep.subr.bf16.mxu0 %v1045_v10  ;;  %1004 = vmatprep.subr.bf16.mxu1 %v1045_v10 }
  0x3d   : > { %980 = vmatpush3.bf16.msra.mxu0 %v1045_v10  ;;  %1012 = vmatpush3.bf16.msra.mxu1 %v1045_v10 }
  0x40   : > { %982 = vmatmul.mubr.bf16.vlgmr.msra.gmra.mxu0 %v1048_v11  ;;  %990 = vmatmul.mubr.bf16.vlgmr.msra.gmra.mxu1 %v1049_v12 }
  0x41   : > { %985 = vmatprep.mubr.bf16.mxu0 %v1050_v13  ;;  %993 = vmatprep.mubr.bf16.mxu1 %v1051_v14 }
  0x48   : > { %986 = vmatmul.mubr.bf16.gmra.mxu0 %v1052_v15  ;;  %994 = vmatmul.mubr.bf16.gmra.mxu1 %v1053_v16 }
 0x100   : > { %v983_v19 = vpop.f32.mrf.mxu0  ;;  %v991_v20 = vpop.f32.mrf.mxu1 }
 0x101   : > { %v550_v23 = vadd.f32 %v983_v19, %v305_v17  ;;  %v558_v24 = vadd.f32 %v991_v20, %v313_v18 }
 0x102   : > { %v485_v25 = vpop.f32.mrf.mxu0  ;;  %v517_v26 = vpop.f32.mrf.mxu1 }
 0x103   : > { %566 = vst [vmem:[#allocation2 + $0x58] sm:$0xff] %v550_v23  ;;  %574 = vst [vmem:[#allocation2 + $0x10] sm:$0xff] %v558_v24  ;;  %v548_v29 = vadd.f32 %v485_v25, %v303_v21  ;;  %v556_v30 = vadd.f32 %v517_v26, %v311_v22 }
 0x104   : > { %v984_v31 = vpop.f32.mrf.mxu0  ;;  %v992_v32 = vpop.f32.mrf.mxu1 }
 0x105   : > { %564 = vst [vmem:[#allocation2 + $0x30] sm:$0xff] %v548_v29  ;;  %572 = vst [vmem:[#allocation2 + $0x40] sm:$0xff] %v556_v30  ;;  %v551_v35 = vadd.f32 %v984_v31, %v306_v27  ;;  %v559_v36 = vadd.f32 %v992_v32, %v314_v28 }
 0x106   : > { %v488_v37 = vpop.f32.mrf.mxu0  ;;  %v520_v38 = vpop.f32.mrf.mxu1 }
 0x107   : > { %567 = vst [vmem:[#allocation2 + $0x18] sm:$0xff] %v551_v35  ;;  %575 = vst [vmem:[#allocation2 + $0x38] sm:$0xff] %v559_v36  ;;  %v549_v41 = vadd.f32 %v488_v37, %v304_v33  ;;  %v557_v42 = vadd.f32 %v520_v38, %v312_v34 }
 0x108   : > { %v987_v43 = vpop.f32.mrf.mxu0  ;;  %v995_v44 = vpop.f32.mrf.mxu1 }
 0x109   : > { %565 = vst [vmem:[#allocation2] sm:$0xff] %v549_v41  ;;  %573 = vst [vmem:[#allocation2 + $0x20] sm:$0xff] %v557_v42  ;;  %v554_v47 = vadd.f32 %v987_v43, %v309_v39  ;;  %v562_v48 = vadd.f32 %v995_v44, %v317_v40 }
 0x10a   : > { %v501_v49 = vpop.f32.mrf.mxu0  ;;  %v533_v50 = vpop.f32.mrf.mxu1 }
 0x10b   : > { %570 = vst [vmem:[#allocation2 + $0x8] sm:$0xff] %v554_v47  ;;  %578 = vst [vmem:[#allocation2 + $0x78] sm:$0xff] %v562_v48  ;;  %v552_v53 = vadd.f32 %v501_v49, %v307_v45  ;;  %v560_v54 = vadd.f32 %v533_v50, %v315_v46 }
 0x10c   : > { %v988_v55 = vpop.f32.mrf.mxu0  ;;  %v996_v56 = vpop.f32.mrf.mxu1 }
 0x10d   : > { %568 = vst [vmem:[#allocation2 + $0x50] sm:$0xff] %v552_v53  ;;  %576 = vst [vmem:[#allocation2 + $0x60] sm:$0xff] %v560_v54  ;;  %v555_v59 = vadd.f32 %v988_v55, %v310_v51  ;;  %v563_v60 = vadd.f32 %v996_v56, %v318_v52  ;;  %583 = sbr.rel (%p862_p6) target bundleno = 301 (0x12d), region = 52 }
 0x10e   : > { %v504_v61 = vpop.f32.mrf.mxu0  ;;  %v536_v62 = vpop.f32.mrf.mxu1 }
 0x10f   : > { %571 = vst [vmem:[#allocation2 + $0x48] sm:$0xff] %v555_v59  ;;  %579 = vst [vmem:[#allocation2 + $0x28] sm:$0xff] %v563_v60  ;;  %v553_v63 = vadd.f32 %v504_v61, %v308_v57  ;;  %v561_v0 = vadd.f32 %v536_v62, %v316_v58 }
 0x111   : > { %569 = vst [vmem:[#allocation2 + $0x68] sm:$0xff] %v553_v63  ;;  %577 = vst [vmem:[#allocation2 + $0x70] sm:$0xff] %v561_v0 }
 0x112   : > { %v584_v1 = vld [vmem:[#allocation2 + $0x30] sm:$0xff]  ;;  %v585_v2 = vld [vmem:[#allocation2] sm:$0xff]  ;;  %v627_v4 = vlaneseq  ;;  %v586_v9 = vld [vmem:[#allocation2 + $0x58] sm:$0xff] }
 0x113   : > { %v1168_v3 = vld [vmem:[%s1230_s2] ss:$0 sm:$0xff]  ;;  %v587_v10 = vld [vmem:[#allocation2 + $0x18] sm:$0xff]  ;;  %v590_v15 = vld [vmem:[#allocation2 + $0x8] sm:$0xff] }
 0x114   : > { %v623_v5 = vld [vmem:[%s1231_s3] sm:$0x1]  ;;  %v628_v8 = vshrl.u32 %v627_v4, 7  ;;  %v588_v11 = vld [vmem:[#allocation2 + $0x50] sm:$0xff]  ;;  %v607_v12 = vsub.f32 %v584_v1, %v1168_v3  ;;  %v608_v13 = vsub.f32 %v585_v2, %v1168_v3  ;;  %v609_v18 = vsub.f32 %v586_v9, %v1168_v3  ;;  %v595_v28 = vld [vmem:[#allocation2 + $0x38] sm:$0xff] }
 0x115   : > { %v624_v6 = vld [vmem:[%s1232_s4] sm:$0x1]  ;;  %v610_v19 = vsub.f32 %v587_v10, %v1168_v3  ;;  %v611_v20 = vsub.f32 %v588_v11, %v1168_v3  ;;  %v594_v23 = vld [vmem:[#allocation2 + $0x10] sm:$0xff]  ;;  %v613_v25 = vsub.f32 %v590_v15, %v1168_v3  ;;  %v618_v34 = vsub.f32 %v595_v28, %v1168_v3  ;;  %v598_v35 = vld [vmem:[#allocation2 + $0x78] sm:$0xff] }
 0x116   : > { %v625_v7 = vmul.f32 %v624_v6, %v623_v5  ;;  %v591_v16 = vld [vmem:[#allocation2 + $0x48] sm:$0xff]  ;;  %v629_v17 = vsub.s32 0, %v628_v8  ;;  %v592_v21 = vld [vmem:[#allocation2 + $0x40] sm:$0xff]  ;;  %v617_v33 = vsub.f32 %v594_v23, %v1168_v3  ;;  %v621_v40 = vsub.f32 %v598_v35, %v1168_v3 }
 0x117   : > { %v593_v22 = vld [vmem:[#allocation2 + $0x20] sm:$0xff]  ;;  %v614_v26 = vsub.f32 %v591_v16, %v1168_v3  ;;  %v615_v27 = vsub.f32 %v592_v21, %v1168_v3  ;;  %v599_v36 = vld [vmem:[#allocation2 + $0x28] sm:$0xff] }
 0x118   : > { %v589_v14 = vld [vmem:[#allocation2 + $0x68] sm:$0xff]  ;;  %v596_v29 = vld [vmem:[#allocation2 + $0x60] sm:$0xff]  ;;  %v597_v30 = vld [vmem:[#allocation2 + $0x70] sm:$0xff]  ;;  %v630_v31 = vrot.slane %v625_v7, %v629_v17  ;;  %v616_v32 = vsub.f32 %v593_v22, %v1168_v3  ;;  %v622_v41 = vsub.f32 %v599_v36, %v1168_v3 }
 0x119   : > { %v612_v24 = vsub.f32 %v589_v14, %v1168_v3  ;;  %v864_v37 = vld [vmem:[%s1233_s5] ss:$0 sm:$0xff]  ;;  %v619_v38 = vsub.f32 %v596_v29, %v1168_v3  ;;  %v620_v39 = vsub.f32 %v597_v30, %v1168_v3 }
 0x11a   : > { %v632_v42 = vmul.f32 %v630_v31, %v607_v12  ;;  %v633_v43 = vmul.f32 %v630_v31, %v608_v13  ;;  %v634_v44 = vmul.f32 %v630_v31, %v609_v18  ;;  %v635_v45 = vmul.f32 %v630_v31, %v610_v19 }
 0x11b   : > { %v636_v46 = vmul.f32 %v630_v31, %v611_v20  ;;  %v637_v47 = vmul.f32 %v630_v31, %v612_v24  ;;  %v638_v48 = vmul.f32 %v630_v31, %v613_v25  ;;  %v639_v49 = vmul.f32 %v630_v31, %v614_v26 }
 0x11c   : > { %v655_v50 = vadd.f32 %v864_v37, %v632_v42  ;;  %v656_v51 = vadd.f32 %v864_v37, %v633_v43  ;;  %v657_v52 = vadd.f32 %v864_v37, %v634_v44  ;;  %v658_v53 = vadd.f32 %v864_v37, %v635_v45 }
 0x11d   : > { %v659_v54 = vadd.f32 %v864_v37, %v636_v46  ;;  %v660_v55 = vadd.f32 %v864_v37, %v637_v47  ;;  %v661_v56 = vadd.f32 %v864_v37, %v638_v48  ;;  %v662_v57 = vadd.f32 %v864_v37, %v639_v49 }
 0x11e   : > { %v671_v58 = vmax.f32 %v655_v50, 0.0  ;;  %v672_v59 = vmax.f32 %v656_v51, 0.0  ;;  %v673_v60 = vmax.f32 %v657_v52, 0.0  ;;  %v674_v61 = vmax.f32 %v658_v53, 0.0 }
 0x11f   : > { %v675_v62 = vmax.f32 %v659_v54, 0.0  ;;  %v676_v63 = vmax.f32 %v660_v55, 0.0  ;;  %v677_v0 = vmax.f32 %v661_v56, 0.0  ;;  %v678_v1 = vmax.f32 %v662_v57, 0.0 }
 0x120   : > { %v905_v2 = vpack.c.bf16 %v672_v59, %v671_v58  ;;  %v910_v3 = vpack.c.bf16 %v674_v61, %v673_v60  ;;  %v640_v4 = vmul.f32 %v630_v31, %v615_v27  ;;  %v641_v5 = vmul.f32 %v630_v31, %v616_v32 }
 0x121   : > { %v915_v6 = vpack.c.bf16 %v676_v63, %v675_v62  ;;  %v920_v7 = vpack.c.bf16 %v678_v1, %v677_v0  ;;  %v642_v8 = vmul.f32 %v630_v31, %v617_v33  ;;  %v643_v9 = vmul.f32 %v630_v31, %v618_v34 }
 0x122   : > { %906 = vst [vmem:[%s1234_s6] sm:$0xff] %v905_v2   ;;  %942 = vst [vmem:[%s1234_s6 + $0x8] sm:$0xff] %v910_v3   ;;  %v663_v10 = vadd.f32 %v864_v37, %v640_v4  ;;  %v664_v11 = vadd.f32 %v864_v37, %v641_v5  ;;  %v644_v12 = vmul.f32 %v630_v31, %v619_v38 }
 0x123   : > { %v645_v13 = vmul.f32 %v630_v31, %v620_v39  ;;  %943 = vst [vmem:[%s1234_s6 + $0x10] sm:$0xff] %v915_v6   ;;  %944 = vst [vmem:[%s1234_s6 + $0x18] sm:$0xff] %v920_v7   ;;  %v665_v14 = vadd.f32 %v864_v37, %v642_v8  ;;  %v666_v15 = vadd.f32 %v864_v37, %v643_v9 }
 0x124   : > { %v646_v16 = vmul.f32 %v630_v31, %v621_v40  ;;  %v647_v17 = vmul.f32 %v630_v31, %v622_v41  ;;  %v679_v18 = vmax.f32 %v663_v10, 0.0  ;;  %v680_v19 = vmax.f32 %v664_v11, 0.0 }
 0x125   : > { %v667_v20 = vadd.f32 %v864_v37, %v644_v12  ;;  %v668_v21 = vadd.f32 %v864_v37, %v645_v13  ;;  %v681_v22 = vmax.f32 %v665_v14, 0.0  ;;  %v682_v23 = vmax.f32 %v666_v15, 0.0 }
 0x126   : > { %v669_v24 = vadd.f32 %v864_v37, %v646_v16  ;;  %v670_v25 = vadd.f32 %v864_v37, %v647_v17  ;;  %v925_v26 = vpack.c.bf16 %v680_v19, %v679_v18 }
 0x127   : > { %v683_v27 = vmax.f32 %v667_v20, 0.0  ;;  %v684_v28 = vmax.f32 %v668_v21, 0.0  ;;  %v930_v29 = vpack.c.bf16 %v682_v23, %v681_v22 }
 0x128   : > { %v685_v30 = vmax.f32 %v669_v24, 0.0  ;;  %v686_v32 = vmax.f32 %v670_v25, 0.0  ;;  %945 = vst [vmem:[%s1234_s6 + $0x20] sm:$0xff] %v925_v26  }
 0x129   : > { %v935_v33 = vpack.c.bf16 %v684_v28, %v683_v27  ;;  %946 = vst [vmem:[%s1234_s6 + $0x28] sm:$0xff] %v930_v29  }
 0x12a   : > { %v940_v31 = vpack.c.bf16 %v686_v32, %v685_v30 }
 0x12b   : > { %947 = vst [vmem:[%s1234_s6 + $0x30] sm:$0xff] %v935_v33  }
 0x12c   : > { %948 = vst [vmem:[%s1234_s6 + $0x38] sm:$0xff] %v940_v31  }
 0x12d PF: > { %s16_s23 = sadd.s32 1, %s1076_s23   ;;  %s1235_s21 = smov %s1072_s22 }
 0x12e   : > { %p13_p7 = scmp.ge.s32.totalorder %s16_s23, 11   ;;  %s1236_s22 = smov %s1238_s24 }
 0x130   :  { %15 = sbr.rel (!%p13_p7) target bundleno = 2 (0x2), region = 83 }

// kernel: bottleneck_forward.8
= control target key start
LH: loop header
LB: loop body
LE: loop exit
PB: predicated region body
PF: predicated region fallthrough
CT: control target
= control target key end

     0   :  { %s904_s12 = smov 0   ;;  %s906_s13 = smov 0   ;;  %s983_s0 = inlined_call_operand.vmem [shape: bf16[9,128,128], index: 0, kind: input, shape index: {}]   ;;  %s984_s1 = inlined_call_operand.vmem [shape: bf16[1152,128], index: 1, kind: input, shape index: {}]   ;;  %s985_s2 = inlined_call_operand.vmem [shape: f32[1,128], index: 2, kind: output, shape index: {0}]   ;;  %s986_s3 = inlined_call_operand.vmem [shape: f32[1,128], index: 3, kind: output, shape index: {1}]  }
   0x1   :  { %s908_s14 = smov 0  }
   0x2 LB: > { %s23_s15 = sadd.s32 1, %s876_s13  ;;  %p724_p0 = scmp.ge.s32.totalorder %s880_s14, 1  ;;  %s880_s14 = sphi %s908_s14, %s14_s14   ;;  %s876_s13 = sphi %s906_s13, %s988_s13   ;;  %s872_s12 = sphi %s904_s12, %s987_s12  }
   0x3   : > { %p24_p1 = scmp.ge.s32.totalorder %s23_s15, 9  ;;  %p149_p2 = scmp.lt.s32.totalorder %s880_s14, 10 }
   0x5   : > { %s990_s15 = smov (%p24_p1, %s23_s15), 0  ;;  %p150_p3 = pnand %p724_p0, %p149_p2 }
   0x6   : > { %p173_p4 = scmp.lt.s32.totalorder (!%p150_p3), %s872_s12, 8  ;;  %p184_p5 = scmp.eq.s32.totalorder (!%p150_p3), %s872_s12, 0 }
   0x7   : > { %153 = sbr.rel (%p150_p3) target bundleno = 329 (0x149), region = 28 }
   0xc   : > { %s174_s16 = scalar_select %p173_p4, %s872_s12, 8  ;;  %v882_v0 = vmov (%p184_p5), 0.0  }
   0xd   : > { %188 = sbr.rel (!%p184_p5) target bundleno = 18 (0x12), region = 32  ;;  %189 = vst [vmem:[%s985_s2] sm:$0x1] (%p184_p5), %v882_v0  ;;  %190 = vst [vmem:[%s986_s3] sm:$0x1] (%p184_p5), %v882_v0 }
   0xe   : > { %s750_s17 = sshll.u32 %s174_s16, 6 }
   0xf   : > { %s930_s20 = scalar_lea.vmem %s983_s0, %s750_s17 }
  0x12 PF: > { %p728_p6 = scmp.ne.s32.totalorder %s872_s12, 0 }
  0x14   : > { %193 = sbr.rel (%p728_p6) target bundleno = 34 (0x22), region = 36 }
  0x19   : > { %v883_v1 = vmov 0.0  }
  0x1a   : > { %194 = vst [vmem:[#allocation2 + $0x30] sm:$0xff] %v883_v1  ;;  %195 = vst [vmem:[#allocation2] sm:$0xff] %v883_v1 }
  0x1b   : > { %196 = vst [vmem:[#allocation2 + $0x58] sm:$0xff] %v883_v1  ;;  %197 = vst [vmem:[#allocation2 + $0x18] sm:$0xff] %v883_v1 }
  0x1c   : > { %198 = vst [vmem:[#allocation2 + $0x50] sm:$0xff] %v883_v1  ;;  %199 = vst [vmem:[#allocation2 + $0x68] sm:$0xff] %v883_v1 }
  0x1d   : > { %200 = vst [vmem:[#allocation2 + $0x8] sm:$0xff] %v883_v1  ;;  %201 = vst [vmem:[#allocation2 + $0x48] sm:$0xff] %v883_v1 }
  0x1e   : > { %202 = vst [vmem:[#allocation2 + $0x40] sm:$0xff] %v883_v1  ;;  %203 = vst [vmem:[#allocation2 + $0x20] sm:$0xff] %v883_v1 }
  0x1f   : > { %204 = vst [vmem:[#allocation2 + $0x10] sm:$0xff] %v883_v1  ;;  %205 = vst [vmem:[#allocation2 + $0x38] sm:$0xff] %v883_v1 }
  0x20   : > { %206 = vst [vmem:[#allocation2 + $0x60] sm:$0xff] %v883_v1  ;;  %207 = vst [vmem:[#allocation2 + $0x70] sm:$0xff] %v883_v1 }
  0x21   : > { %208 = vst [vmem:[#allocation2 + $0x78] sm:$0xff] %v883_v1  ;;  %209 = vst [vmem:[#allocation2 + $0x28] sm:$0xff] %v883_v1 }
  0x22 PF: > { %s729_s25 = sshll.u32 %s872_s12, 7  ;;  %v850_v2 = vld [vmem:[%s930_s20] sm:$0xff]   ;;  %v852_v12 = vld [vmem:[%s930_s20 + $0x8] sm:$0xff]   ;;  %v854_v14 = vld [vmem:[%s930_s20 + $0x10] sm:$0xff]   ;;  %p747_p7 = scmp.ne.s32.totalorder %s872_s12, 8 }
  0x23   : > { %s243_s26 = sshra.s32 %s729_s25, 3  ;;  %v851_v3 = vld [vmem:[%s930_s20 + $0x20] sm:$0xff]   ;;  %784 = vmatprep.mubr.bf16.mxu0 %v850_v2  ;;  %v853_v13 = vld [vmem:[%s930_s20 + $0x28] sm:$0xff]   ;;  %v855_v15 = vld [vmem:[%s930_s20 + $0x30] sm:$0xff]  }
  0x24   : > { %s730_s27 = sshll.u32 %s243_s26, 2  ;;  %792 = vmatprep.mubr.bf16.mxu1 %v851_v3  ;;  %v856_v16 = vld [vmem:[%s930_s20 + $0x18] sm:$0xff]   ;;  %v211_v22 = vld [vmem:[#allocation2 + $0x30] sm:$0xff]  ;;  %v212_v34 = vld [vmem:[#allocation2] sm:$0xff] }
  0x25   : > { %s945_s30 = scalar_lea.vmem %s984_s1, %s730_s27  ;;  %v857_v17 = vld [vmem:[%s930_s20 + $0x38] sm:$0xff]   ;;  %v219_v23 = vld [vmem:[#allocation2 + $0x40] sm:$0xff]  ;;  %v217_v40 = vld [vmem:[#allocation2 + $0x8] sm:$0xff] }
  0x26   : > { %v842_v4 = vld [vmem:[%s945_s30 + $0x38] sm:$0xff]   ;;  %v843_v5 = vld [vmem:[%s945_s30 + $0x30] sm:$0xff]   ;;  %v844_v6 = vld [vmem:[%s945_s30 + $0x28] sm:$0xff]  }
  0x27   : > { %768 = vmatprep.subr.bf16.mxu0 %v842_v4  ;;  %800 = vmatprep.subr.bf16.mxu1 %v842_v4  ;;  %v845_v7 = vld [vmem:[%s945_s30 + $0x20] sm:$0xff]   ;;  %v846_v8 = vld [vmem:[%s945_s30 + $0x18] sm:$0xff]   ;;  %v847_v9 = vld [vmem:[%s945_s30 + $0x10] sm:$0xff]  }
  0x28   : > { %769 = vmatpush3.bf16.msra.mxu0 %v842_v4  ;;  %808 = vmatpush3.bf16.msra.mxu1 %v842_v4  ;;  %v848_v10 = vld [vmem:[%s945_s30 + $0x8] sm:$0xff]   ;;  %v849_v11 = vld [vmem:[%s945_s30] sm:$0xff]   ;;  %v213_v18 = vld [vmem:[#allocation2 + $0x58] sm:$0xff] }
  0x29   : > { %770 = vmatprep.subr.bf16.mxu0 %v843_v5  ;;  %801 = vmatprep.subr.bf16.mxu1 %v843_v5  ;;  %v221_v19 = vld [vmem:[#allocation2 + $0x10] sm:$0xff]  ;;  %v214_v28 = vld [vmem:[#allocation2 + $0x18] sm:$0xff]  ;;  %v220_v35 = vld [vmem:[#allocation2 + $0x20] sm:$0xff] }
  0x2a   : > { %v222_v29 = vld [vmem:[#allocation2 + $0x38] sm:$0xff]  ;;  %v215_v46 = vld [vmem:[#allocation2 + $0x50] sm:$0xff]  ;;  %v223_v47 = vld [vmem:[#allocation2 + $0x60] sm:$0xff] }
  0x2b   : > { %v225_v41 = vld [vmem:[#allocation2 + $0x78] sm:$0xff]  ;;  %v218_v52 = vld [vmem:[#allocation2 + $0x48] sm:$0xff]  ;;  %v224_v59 = vld [vmem:[#allocation2 + $0x70] sm:$0xff] }
  0x2c   : > { %771 = vmatpush3.bf16.msra.mxu0 %v843_v5  ;;  %809 = vmatpush3.bf16.msra.mxu1 %v843_v5  ;;  %v226_v53 = vld [vmem:[#allocation2 + $0x28] sm:$0xff] }
  0x2d   : > { %772 = vmatprep.subr.bf16.mxu0 %v844_v6  ;;  %802 = vmatprep.subr.bf16.mxu1 %v844_v6  ;;  %v216_v58 = vld [vmem:[#allocation2 + $0x68] sm:$0xff] }
  0x30   : > { %773 = vmatpush3.bf16.msra.mxu0 %v844_v6  ;;  %810 = vmatpush3.bf16.msra.mxu1 %v844_v6 }
  0x31   : > { %774 = vmatprep.subr.bf16.mxu0 %v845_v7  ;;  %803 = vmatprep.subr.bf16.mxu1 %v845_v7 }
  0x34   : > { %775 = vmatpush3.bf16.msra.mxu0 %v845_v7  ;;  %811 = vmatpush3.bf16.msra.mxu1 %v845_v7 }
  0x35   : > { %776 = vmatprep.subr.bf16.mxu0 %v846_v8  ;;  %804 = vmatprep.subr.bf16.mxu1 %v846_v8 }
  0x38   : > { %777 = vmatpush3.bf16.msra.mxu0 %v846_v8  ;;  %812 = vmatpush3.bf16.msra.mxu1 %v846_v8 }
  0x39   : > { %778 = vmatprep.subr.bf16.mxu0 %v847_v9  ;;  %805 = vmatprep.subr.bf16.mxu1 %v847_v9 }
  0x3c   : > { %779 = vmatpush3.bf16.msra.mxu0 %v847_v9  ;;  %813 = vmatpush3.bf16.msra.mxu1 %v847_v9 }
  0x3d   : > { %780 = vmatprep.subr.bf16.mxu0 %v848_v10  ;;  %806 = vmatprep.subr.bf16.mxu1 %v848_v10 }
  0x40   : > { %781 = vmatpush3.bf16.msra.mxu0 %v848_v10  ;;  %814 = vmatpush3.bf16.msra.mxu1 %v848_v10 }
  0x41   : > { %782 = vmatprep.subr.bf16.mxu0 %v849_v11  ;;  %807 = vmatprep.subr.bf16.mxu1 %v849_v11 }
  0x44   : > { %783 = vmatpush3.bf16.msra.mxu0 %v849_v11  ;;  %815 = vmatpush3.bf16.msra.mxu1 %v849_v11 }
  0x47   : > { %785 = vmatmul.mubr.bf16.vlgmr.msra.gmra.mxu0 %v852_v12  ;;  %793 = vmatmul.mubr.bf16.vlgmr.msra.gmra.mxu1 %v853_v13 }
  0x48   : > { %788 = vmatprep.mubr.bf16.mxu0 %v854_v14  ;;  %796 = vmatprep.mubr.bf16.mxu1 %v855_v15 }
  0x4f   : > { %789 = vmatmul.mubr.bf16.gmra.mxu0 %v856_v16  ;;  %797 = vmatmul.mubr.bf16.gmra.mxu1 %v857_v17 }
 0x107   : > { %v786_v20 = vpop.f32.mrf.mxu0  ;;  %v794_v21 = vpop.f32.mrf.mxu1 }
 0x108   : > { %v458_v24 = vadd.f32 %v786_v20, %v213_v18  ;;  %v466_v25 = vadd.f32 %v794_v21, %v221_v19 }
 0x109   : > { %v393_v26 = vpop.f32.mrf.mxu0  ;;  %v425_v27 = vpop.f32.mrf.mxu1 }
 0x10a   : > { %474 = vst [vmem:[#allocation2 + $0x58] sm:$0xff] %v458_v24  ;;  %482 = vst [vmem:[#allocation2 + $0x10] sm:$0xff] %v466_v25  ;;  %v456_v30 = vadd.f32 %v393_v26, %v211_v22  ;;  %v464_v31 = vadd.f32 %v425_v27, %v219_v23 }
 0x10b   : > { %v787_v32 = vpop.f32.mrf.mxu0  ;;  %v795_v33 = vpop.f32.mrf.mxu1 }
 0x10c   : > { %472 = vst [vmem:[#allocation2 + $0x30] sm:$0xff] %v456_v30  ;;  %480 = vst [vmem:[#allocation2 + $0x40] sm:$0xff] %v464_v31  ;;  %v459_v36 = vadd.f32 %v787_v32, %v214_v28  ;;  %v467_v37 = vadd.f32 %v795_v33, %v222_v29 }
 0x10d   : > { %v396_v38 = vpop.f32.mrf.mxu0  ;;  %v428_v39 = vpop.f32.mrf.mxu1 }
 0x10e   : > { %475 = vst [vmem:[#allocation2 + $0x18] sm:$0xff] %v459_v36  ;;  %483 = vst [vmem:[#allocation2 + $0x38] sm:$0xff] %v467_v37  ;;  %v457_v42 = vadd.f32 %v396_v38, %v212_v34  ;;  %v465_v43 = vadd.f32 %v428_v39, %v220_v35 }
 0x10f   : > { %v790_v44 = vpop.f32.mrf.mxu0  ;;  %v798_v45 = vpop.f32.mrf.mxu1 }
 0x110   : > { %473 = vst [vmem:[#allocation2] sm:$0xff] %v457_v42  ;;  %481 = vst [vmem:[#allocation2 + $0x20] sm:$0xff] %v465_v43  ;;  %v462_v48 = vadd.f32 %v790_v44, %v217_v40  ;;  %v470_v49 = vadd.f32 %v798_v45, %v225_v41 }
 0x111   : > { %v409_v50 = vpop.f32.mrf.mxu0  ;;  %v441_v51 = vpop.f32.mrf.mxu1 }
 0x112   : > { %478 = vst [vmem:[#allocation2 + $0x8] sm:$0xff] %v462_v48  ;;  %486 = vst [vmem:[#allocation2 + $0x78] sm:$0xff] %v470_v49  ;;  %v460_v54 = vadd.f32 %v409_v50, %v215_v46  ;;  %v468_v55 = vadd.f32 %v441_v51, %v223_v47 }
 0x113   : > { %v791_v56 = vpop.f32.mrf.mxu0  ;;  %v799_v57 = vpop.f32.mrf.mxu1 }
 0x114   : > { %476 = vst [vmem:[#allocation2 + $0x50] sm:$0xff] %v460_v54  ;;  %484 = vst [vmem:[#allocation2 + $0x60] sm:$0xff] %v468_v55  ;;  %v463_v60 = vadd.f32 %v791_v56, %v218_v52  ;;  %v471_v61 = vadd.f32 %v799_v57, %v226_v53  ;;  %491 = sbr.rel (%p747_p7) target bundleno = 329 (0x149), region = 40 }
 0x115   : > { %v412_v62 = vpop.f32.mrf.mxu0  ;;  %v444_v63 = vpop.f32.mrf.mxu1 }
 0x116   : > { %479 = vst [vmem:[#allocation2 + $0x48] sm:$0xff] %v463_v60  ;;  %487 = vst [vmem:[#allocation2 + $0x28] sm:$0xff] %v471_v61  ;;  %v461_v0 = vadd.f32 %v412_v62, %v216_v58  ;;  %v469_v1 = vadd.f32 %v444_v63, %v224_v59 }
 0x118   : > { %477 = vst [vmem:[#allocation2 + $0x68] sm:$0xff] %v461_v0  ;;  %485 = vst [vmem:[#allocation2 + $0x70] sm:$0xff] %v469_v1 }
 0x119   : > { %v543_v2 = vld [vmem:[#allocation2 + $0x30] sm:$0xff]  ;;  %v544_v3 = vld [vmem:[#allocation2] sm:$0xff]  ;;  %v545_v4 = vld [vmem:[#allocation2 + $0x58] sm:$0xff] }
 0x11a   : > { %v546_v5 = vld [vmem:[#allocation2 + $0x18] sm:$0xff]  ;;  %v608_v6 = vadd.f32 %v544_v3, %v543_v2  ;;  %v632_v7 = vmul.f32 %v543_v2, %v543_v2  ;;  %v633_v8 = vmul.f32 %v544_v3, %v544_v3  ;;  %v634_v9 = vmul.f32 %v545_v4, %v545_v4  ;;  %v549_v18 = vld [vmem:[#allocation2 + $0x8] sm:$0xff]  ;;  %v551_v26 = vld [vmem:[#allocation2 + $0x40] sm:$0xff] }
 0x11b   : > { %v547_v10 = vld [vmem:[#allocation2 + $0x50] sm:$0xff]  ;;  %v635_v12 = vmul.f32 %v546_v5, %v546_v5  ;;  %v638_v24 = vmul.f32 %v549_v18, %v549_v18  ;;  %v552_v30 = vld [vmem:[#allocation2 + $0x20] sm:$0xff]  ;;  %v640_v32 = vmul.f32 %v551_v26, %v551_v26  ;;  %v554_v38 = vld [vmem:[#allocation2 + $0x38] sm:$0xff] }
 0x11c   : > { %v609_v11 = vadd.f32 %v608_v6, %v545_v4  ;;  %v648_v13 = vadd.f32 %v633_v8, %v632_v7  ;;  %v636_v16 = vmul.f32 %v547_v10, %v547_v10  ;;  %v553_v34 = vld [vmem:[#allocation2 + $0x10] sm:$0xff]  ;;  %v641_v36 = vmul.f32 %v552_v30, %v552_v30  ;;  %v555_v42 = vld [vmem:[#allocation2 + $0x60] sm:$0xff]  ;;  %v557_v50 = vld [vmem:[#allocation2 + $0x78] sm:$0xff] }
 0x11d   : > { %v550_v22 = vld [vmem:[#allocation2 + $0x48] sm:$0xff]  ;;  %v642_v40 = vmul.f32 %v553_v34, %v553_v34  ;;  %v643_v44 = vmul.f32 %v554_v38, %v554_v38  ;;  %v644_v48 = vmul.f32 %v555_v42, %v555_v42  ;;  %v646_v56 = vmul.f32 %v557_v50, %v557_v50  ;;  %v607_v8 = vld [vmem:[%s985_s2] sm:$0x1] }
 0x11e   : > { %v610_v15 = vadd.f32 %v609_v11, %v546_v5  ;;  %v649_v17 = vadd.f32 %v648_v13, %v634_v9  ;;  %v639_v28 = vmul.f32 %v550_v22, %v550_v22  ;;  %v558_v54 = vld [vmem:[#allocation2 + $0x28] sm:$0xff]  ;;  %v631_v13 = vld [vmem:[%s986_s3] sm:$0x1] }
 0x11f   : > { %v548_v14 = vld [vmem:[#allocation2 + $0x68] sm:$0xff]  ;;  %v556_v46 = vld [vmem:[#allocation2 + $0x70] sm:$0xff]  ;;  %v647_v59 = vmul.f32 %v558_v54, %v558_v54 }
 0x120   : > { %v611_v19 = vadd.f32 %v610_v15, %v547_v10  ;;  %v637_v20 = vmul.f32 %v548_v14, %v548_v14  ;;  %v650_v21 = vadd.f32 %v649_v17, %v635_v12  ;;  %v645_v52 = vmul.f32 %v556_v46, %v556_v46 }
 0x122   : > { %v612_v23 = vadd.f32 %v611_v19, %v548_v14  ;;  %v651_v25 = vadd.f32 %v650_v21, %v636_v16 }
 0x124   : > { %v613_v27 = vadd.f32 %v612_v23, %v549_v18  ;;  %v652_v29 = vadd.f32 %v651_v25, %v637_v20 }
 0x126   : > { %v614_v31 = vadd.f32 %v613_v27, %v550_v22  ;;  %v653_v33 = vadd.f32 %v652_v29, %v638_v24 }
 0x128   : > { %v615_v35 = vadd.f32 %v614_v31, %v551_v26  ;;  %v654_v37 = vadd.f32 %v653_v33, %v639_v28 }
 0x12a   : > { %v616_v39 = vadd.f32 %v615_v35, %v552_v30  ;;  %v655_v41 = vadd.f32 %v654_v37, %v640_v32 }
 0x12c   : > { %v617_v43 = vadd.f32 %v616_v39, %v553_v34  ;;  %v656_v45 = vadd.f32 %v655_v41, %v641_v36 }
 0x12e   : > { %v618_v47 = vadd.f32 %v617_v43, %v554_v38  ;;  %v657_v49 = vadd.f32 %v656_v45, %v642_v40 }
 0x130   : > { %v619_v51 = vadd.f32 %v618_v47, %v555_v42  ;;  %v658_v53 = vadd.f32 %v657_v49, %v643_v44 }
 0x132   : > { %v620_v55 = vadd.f32 %v619_v51, %v556_v46  ;;  %v659_v57 = vadd.f32 %v658_v53, %v644_v48 }
 0x134   : > { %v621_v58 = vadd.f32 %v620_v55, %v557_v50  ;;  %v660_v60 = vadd.f32 %v659_v57, %v645_v52 }
 0x136   : > { %v622_v61 = vadd.f32 %v621_v58, %v558_v54  ;;  %v661_v62 = vadd.f32 %v660_v60, %v646_v56 }
 0x138   : > { %v623_v63 = vrot.slane %v622_v61, 4  ;;  %v662_v0 = vadd.f32 %v661_v62, %v647_v59 }
 0x13a   : > { %v624_v1 = vadd.f32 %v623_v63, %v622_v61  ;;  %v663_v2 = vrot.slane %v662_v0, 4 }
 0x13c   : > { %v625_v3 = vrot.slane %v624_v1, 2  ;;  %v664_v4 = vadd.f32 %v663_v2, %v662_v0 }
 0x13e   : > { %v626_v5 = vadd.f32 %v625_v3, %v624_v1  ;;  %v665_v6 = vrot.slane %v664_v4, 2 }
 0x140   : > { %v627_v7 = vrot.slane %v626_v5, 1  ;;  %v666_v9 = vadd.f32 %v665_v6, %v664_v4 }
 0x142   : > { %v628_v10 = vadd.f32 %v627_v7, %v626_v5  ;;  %v667_v11 = vrot.slane %v666_v9, 1 }
 0x144   : > { %v629_v12 = vadd.f32 %v628_v10, %v607_v8  ;;  %v668_v14 = vadd.f32 %v667_v11, %v666_v9 }
 0x146   : > { %630 = vst [vmem:[%s985_s2] sm:$0x1] %v629_v12  ;;  %v669_v15 = vadd.f32 %v668_v14, %v631_v13 }
 0x148   : > { %670 = vst [vmem:[%s986_s3] sm:$0x1] %v669_v15 }
 0x149 PF: > { %s14_s14 = sadd.s32 1, %s880_s14   ;;  %s987_s12 = smov %s876_s13 }
 0x14a   : > { %p11_p8 = scmp.ge.s32.totalorder %s14_s14, 11   ;;  %s988_s13 = smov %s990_s15 }
 0x14c   :  { %13 = sbr.rel (!%p11_p8) target bundleno = 2 (0x2), region = 75 }

// kernel: bottleneck_forward.10
= control target key start
LH: loop header
LB: loop body
LE: loop exit
PB: predicated region body
PF: predicated region fallthrough
CT: control target
= control target key end

     0   :  { %v900_v32 = vmov 0.0   ;;  %s1073_s1 = inlined_call_operand.vmem [shape: bf16[128,128], index: 1, kind: input, shape index: {}]   ;;  %s1074_s3 = inlined_call_operand.vmem [shape: bf16[128,128], index: 3, kind: input, shape index: {}]   ;;  %s1075_s0 = inlined_call_operand.vmem [shape: bf16[128,128], index: 0, kind: input, shape index: {}]   ;;  %s1076_s2 = inlined_call_operand.vmem [shape: bf16[128,128], index: 2, kind: input, shape index: {}]   ;;  %s1077_s4 = inlined_call_operand.vmem [shape: f32[1,128], index: 4, kind: output, shape index: {0}]   ;;  %s1078_s5 = inlined_call_operand.vmem [shape: f32[1,128], index: 5, kind: output, shape index: {1}]   ;;  %s1079_s6 = inlined_call_operand.vmem [shape: f32[1,128], index: 6, kind: output, shape index: {2}]   ;;  %s1080_s7 = inlined_call_operand.vmem [shape: f32[1,128], index: 7, kind: output, shape index: {3}]  }
   0x1   :  { %v868_v0 = vld [vmem:[%s1073_s1 + $0x38] sm:$0xff]   ;;  %v870_v2 = vld [vmem:[%s1073_s1 + $0x30] sm:$0xff]   ;;  %v872_v4 = vld [vmem:[%s1073_s1 + $0x28] sm:$0xff]   ;;  %26 = vst [vmem:[%s1077_s4] sm:$0x1] %v900_v32 }
   0x2   :  { %v869_v1 = vld [vmem:[%s1074_s3 + $0x38] sm:$0xff]   ;;  %803 = vmatprep.subr.bf16.mxu0 %v868_v0  ;;  %v871_v3 = vld [vmem:[%s1074_s3 + $0x30] sm:$0xff]   ;;  %v873_v5 = vld [vmem:[%s1074_s3 + $0x28] sm:$0xff]   ;;  %27 = vst [vmem:[%s1078_s5] sm:$0x1] %v900_v32 }
   0x3   :  { %835 = vmatprep.subr.bf16.mxu1 %v869_v1  ;;  %804 = vmatpush3.bf16.msra.mxu0 %v868_v0  ;;  %v874_v6 = vld [vmem:[%s1073_s1 + $0x20] sm:$0xff]   ;;  %v876_v8 = vld [vmem:[%s1073_s1 + $0x18] sm:$0xff]   ;;  %v878_v10 = vld [vmem:[%s1073_s1 + $0x10] sm:$0xff]   ;;  %28 = vst [vmem:[%s1079_s6] sm:$0x1] %v900_v32 }
   0x4   :  { %836 = vmatpush3.bf16.msra.mxu1 %v869_v1  ;;  %805 = vmatprep.subr.bf16.mxu0 %v870_v2  ;;  %v875_v7 = vld [vmem:[%s1074_s3 + $0x20] sm:$0xff]   ;;  %v877_v9 = vld [vmem:[%s1074_s3 + $0x18] sm:$0xff]   ;;  %v879_v11 = vld [vmem:[%s1074_s3 + $0x10] sm:$0xff]   ;;  %29 = vst [vmem:[%s1080_s7] sm:$0x1] %v900_v32 }
   0x5   :  { %837 = vmatprep.subr.bf16.mxu1 %v871_v3  ;;  %v884_v12 = vld [vmem:[%s1075_s0] sm:$0xff]   ;;  %v880_v14 = vld [vmem:[%s1073_s1 + $0x8] sm:$0xff]   ;;  %v888_v20 = vld [vmem:[%s1075_s0 + $0x10] sm:$0xff]  }
   0x6   :  { %v885_v13 = vld [vmem:[%s1076_s2] sm:$0xff]   ;;  %819 = vmatprep.mubr.bf16.mxu0 %v884_v12  ;;  %v881_v15 = vld [vmem:[%s1074_s3 + $0x8] sm:$0xff]   ;;  %v889_v21 = vld [vmem:[%s1076_s2 + $0x10] sm:$0xff]  }
   0x7   :  { %806 = vmatpush3.bf16.msra.mxu0 %v870_v2  ;;  %851 = vmatprep.mubr.bf16.mxu1 %v885_v13  ;;  %v882_v16 = vld [vmem:[%s1073_s1] sm:$0xff]   ;;  %v886_v18 = vld [vmem:[%s1075_s0 + $0x8] sm:$0xff]   ;;  %v890_v22 = vld [vmem:[%s1075_s0 + $0x18] sm:$0xff]  }
   0x8   :  { %838 = vmatpush3.bf16.msra.mxu1 %v871_v3  ;;  %807 = vmatprep.subr.bf16.mxu0 %v872_v4  ;;  %v883_v17 = vld [vmem:[%s1074_s3] sm:$0xff]   ;;  %v887_v19 = vld [vmem:[%s1076_s2 + $0x8] sm:$0xff]   ;;  %v891_v23 = vld [vmem:[%s1076_s2 + $0x18] sm:$0xff]  }
   0x9   :  { %839 = vmatprep.subr.bf16.mxu1 %v873_v5  ;;  %v892_v24 = vld [vmem:[%s1075_s0 + $0x20] sm:$0xff]   ;;  %v894_v26 = vld [vmem:[%s1075_s0 + $0x28] sm:$0xff]   ;;  %v896_v28 = vld [vmem:[%s1075_s0 + $0x30] sm:$0xff]  }
   0xa   :  { %v893_v25 = vld [vmem:[%s1076_s2 + $0x20] sm:$0xff]   ;;  %v895_v27 = vld [vmem:[%s1076_s2 + $0x28] sm:$0xff]   ;;  %v897_v29 = vld [vmem:[%s1076_s2 + $0x30] sm:$0xff]  }
   0xb   :  { %808 = vmatpush3.bf16.msra.mxu0 %v872_v4  ;;  %v898_v30 = vld [vmem:[%s1075_s0 + $0x38] sm:$0xff]  }
   0xc   :  { %840 = vmatpush3.bf16.msra.mxu1 %v873_v5  ;;  %809 = vmatprep.subr.bf16.mxu0 %v874_v6  ;;  %v899_v31 = vld [vmem:[%s1076_s2 + $0x38] sm:$0xff]  }
   0xd   :  { %841 = vmatprep.subr.bf16.mxu1 %v875_v7 }
   0xf   :  { %810 = vmatpush3.bf16.msra.mxu0 %v874_v6 }
  0x10   :  { %842 = vmatpush3.bf16.msra.mxu1 %v875_v7  ;;  %811 = vmatprep.subr.bf16.mxu0 %v876_v8 }
  0x11   :  { %843 = vmatprep.subr.bf16.mxu1 %v877_v9 }
  0x13   :  { %812 = vmatpush3.bf16.msra.mxu0 %v876_v8 }
  0x14   :  { %844 = vmatpush3.bf16.msra.mxu1 %v877_v9  ;;  %813 = vmatprep.subr.bf16.mxu0 %v878_v10 }
  0x15   :  { %845 = vmatprep.subr.bf16.mxu1 %v879_v11 }
  0x17   :  { %814 = vmatpush3.bf16.msra.mxu0 %v878_v10 }
  0x18   :  { %846 = vmatpush3.bf16.msra.mxu1 %v879_v11  ;;  %815 = vmatprep.subr.bf16.mxu0 %v880_v14 }
  0x19   :  { %847 = vmatprep.subr.bf16.mxu1 %v881_v15 }
  0x1b   :  { %816 = vmatpush3.bf16.msra.mxu0 %v880_v14 }
  0x1c   :  { %848 = vmatpush3.bf16.msra.mxu1 %v881_v15  ;;  %817 = vmatprep.subr.bf16.mxu0 %v882_v16 }
  0x1d   :  { %849 = vmatprep.subr.bf16.mxu1 %v883_v17 }
  0x1f   :  { %818 = vmatpush3.bf16.msra.mxu0 %v882_v16 }
  0x20   :  { %850 = vmatpush3.bf16.msra.mxu1 %v883_v17 }
  0x22   :  { %820 = vmatmul.mubr.bf16.vlgmr.msra.gmra.mxu0 %v886_v18 }
  0x23   :  { %852 = vmatmul.mubr.bf16.vlgmr.msra.gmra.mxu1 %v887_v19  ;;  %823 = vmatprep.mubr.bf16.mxu0 %v888_v20 }
  0x24   :  { %855 = vmatprep.mubr.bf16.mxu1 %v889_v21 }
  0x2a   :  { %824 = vmatmul.mubr.bf16.gmra.mxu0 %v890_v22 }
  0x2b   :  { %856 = vmatmul.mubr.bf16.gmra.mxu1 %v891_v23  ;;  %827 = vmatprep.mubr.bf16.mxu0 %v892_v24 }
  0x2c   :  { %859 = vmatprep.mubr.bf16.mxu1 %v893_v25 }
  0x32   :  { %828 = vmatmul.mubr.bf16.gmra.mxu0 %v894_v26 }
  0x33   :  { %860 = vmatmul.mubr.bf16.gmra.mxu1 %v895_v27  ;;  %831 = vmatprep.mubr.bf16.mxu0 %v896_v28 }
  0x34   :  { %863 = vmatprep.mubr.bf16.mxu1 %v897_v29 }
  0x3a   :  { %832 = vmatmul.mubr.bf16.gmra.mxu0 %v898_v30 }
  0x3b   :  { %864 = vmatmul.mubr.bf16.gmra.mxu1 %v899_v31 }
  0xe2   :  { %v821_v33 = vpop.f32.mrf.mxu0 }
  0xe3   :  { %v853_v34 = vpop.f32.mrf.mxu1  ;;  %v381_v48 = vmul.f32 %v821_v33, %v821_v33 }
  0xe4   :  { %v243_v35 = vpop.f32.mrf.mxu0  ;;  %v686_v52 = vmul.f32 %v853_v34, %v853_v34 }
  0xe5   :  { %v580_v36 = vpop.f32.mrf.mxu1  ;;  %v379_v40 = vmul.f32 %v243_v35, %v243_v35 }
  0xe6   :  { %v822_v37 = vpop.f32.mrf.mxu0  ;;  %v684_v44 = vmul.f32 %v580_v36, %v580_v36 }
  0xe7   :  { %v854_v38 = vpop.f32.mrf.mxu1  ;;  %v382_v56 = vmul.f32 %v822_v37, %v822_v37 }
  0xe8   :  { %v246_v39 = vpop.f32.mrf.mxu0  ;;  %v687_v60 = vmul.f32 %v854_v38, %v854_v38 }
  0xe9   :  { %v355_v41 = vadd.f32 %v246_v39, %v243_v35  ;;  %v380_v42 = vmul.f32 %v246_v39, %v246_v39  ;;  %v583_v43 = vpop.f32.mrf.mxu1 }
  0xea   :  { %v660_v45 = vadd.f32 %v583_v43, %v580_v36  ;;  %v685_v46 = vmul.f32 %v583_v43, %v583_v43  ;;  %v825_v47 = vpop.f32.mrf.mxu0 }
  0xeb   :  { %v356_v49 = vadd.f32 %v821_v33, %v355_v41  ;;  %v395_v50 = vadd.f32 %v380_v42, %v379_v40  ;;  %v857_v51 = vpop.f32.mrf.mxu1  ;;  %v385_v16 = vmul.f32 %v825_v47, %v825_v47 }
  0xec   :  { %v661_v53 = vadd.f32 %v853_v34, %v660_v45  ;;  %v700_v54 = vadd.f32 %v685_v46, %v684_v44  ;;  %v259_v55 = vpop.f32.mrf.mxu0  ;;  %v690_v20 = vmul.f32 %v857_v51, %v857_v51 }
  0xed   :  { %v396_v57 = vadd.f32 %v395_v50, %v381_v48  ;;  %v357_v58 = vadd.f32 %v822_v37, %v356_v49  ;;  %v596_v59 = vpop.f32.mrf.mxu1  ;;  %v383_v1 = vmul.f32 %v259_v55, %v259_v55 }
  0xee   :  { %v701_v61 = vadd.f32 %v700_v54, %v686_v52  ;;  %v662_v62 = vadd.f32 %v854_v38, %v661_v53  ;;  %v826_v63 = vpop.f32.mrf.mxu0  ;;  %v688_v5 = vmul.f32 %v596_v59, %v596_v59 }
  0xef   :  { %v358_v0 = vadd.f32 %v357_v58, %v259_v55  ;;  %v397_v2 = vadd.f32 %v396_v57, %v382_v56  ;;  %v858_v3 = vpop.f32.mrf.mxu1  ;;  %v386_v24 = vmul.f32 %v826_v63, %v826_v63 }
  0xf0   :  { %v663_v4 = vadd.f32 %v662_v62, %v596_v59  ;;  %v702_v6 = vadd.f32 %v701_v61, %v687_v60  ;;  %v262_v7 = vpop.f32.mrf.mxu0  ;;  %v691_v28 = vmul.f32 %v858_v3, %v858_v3 }
  0xf1   :  { %v398_v8 = vadd.f32 %v397_v2, %v383_v1  ;;  %v359_v9 = vadd.f32 %v358_v0, %v262_v7  ;;  %v384_v10 = vmul.f32 %v262_v7, %v262_v7  ;;  %v599_v11 = vpop.f32.mrf.mxu1 }
  0xf2   :  { %v703_v12 = vadd.f32 %v702_v6, %v688_v5  ;;  %v664_v13 = vadd.f32 %v663_v4, %v599_v11  ;;  %v689_v14 = vmul.f32 %v599_v11, %v599_v11  ;;  %v829_v15 = vpop.f32.mrf.mxu0 }
  0xf3   :  { %v360_v17 = vadd.f32 %v825_v47, %v359_v9  ;;  %v399_v18 = vadd.f32 %v398_v8, %v384_v10  ;;  %v861_v19 = vpop.f32.mrf.mxu1  ;;  %v389_v48 = vmul.f32 %v829_v15, %v829_v15 }
  0xf4   :  { %v665_v21 = vadd.f32 %v857_v51, %v664_v13  ;;  %v704_v22 = vadd.f32 %v703_v12, %v689_v14  ;;  %v275_v23 = vpop.f32.mrf.mxu0  ;;  %v694_v52 = vmul.f32 %v861_v19, %v861_v19 }
  0xf5   :  { %v400_v25 = vadd.f32 %v399_v18, %v385_v16  ;;  %v361_v26 = vadd.f32 %v826_v63, %v360_v17  ;;  %v612_v27 = vpop.f32.mrf.mxu1  ;;  %v387_v33 = vmul.f32 %v275_v23, %v275_v23 }
  0xf6   :  { %v705_v29 = vadd.f32 %v704_v22, %v690_v20  ;;  %v666_v30 = vadd.f32 %v858_v3, %v665_v21  ;;  %v830_v31 = vpop.f32.mrf.mxu0  ;;  %v692_v37 = vmul.f32 %v612_v27, %v612_v27 }
  0xf7   :  { %v362_v32 = vadd.f32 %v361_v26, %v275_v23  ;;  %v401_v34 = vadd.f32 %v400_v25, %v386_v24  ;;  %v862_v35 = vpop.f32.mrf.mxu1  ;;  %v390_v56 = vmul.f32 %v830_v31, %v830_v31 }
  0xf8   :  { %v667_v36 = vadd.f32 %v666_v30, %v612_v27  ;;  %v706_v38 = vadd.f32 %v705_v29, %v691_v28  ;;  %v278_v39 = vpop.f32.mrf.mxu0  ;;  %v695_v60 = vmul.f32 %v862_v35, %v862_v35 }
  0xf9   :  { %v402_v40 = vadd.f32 %v401_v34, %v387_v33  ;;  %v363_v41 = vadd.f32 %v362_v32, %v278_v39  ;;  %v388_v42 = vmul.f32 %v278_v39, %v278_v39  ;;  %v615_v43 = vpop.f32.mrf.mxu1 }
  0xfa   :  { %v707_v44 = vadd.f32 %v706_v38, %v692_v37  ;;  %v668_v45 = vadd.f32 %v667_v36, %v615_v43  ;;  %v693_v46 = vmul.f32 %v615_v43, %v615_v43  ;;  %v833_v47 = vpop.f32.mrf.mxu0 }
  0xfb   :  { %v364_v49 = vadd.f32 %v829_v15, %v363_v41  ;;  %v403_v50 = vadd.f32 %v402_v40, %v388_v42  ;;  %v865_v51 = vpop.f32.mrf.mxu1  ;;  %v393_v15 = vmul.f32 %v833_v47, %v833_v47 }
  0xfc   :  { %v669_v53 = vadd.f32 %v861_v19, %v668_v45  ;;  %v708_v54 = vadd.f32 %v707_v44, %v693_v46  ;;  %v291_v55 = vpop.f32.mrf.mxu0  ;;  %v698_v18 = vmul.f32 %v865_v51, %v865_v51  ;;  %v354_v45 = vld [vmem:[%s1077_s4] sm:$0x1] }
  0xfd   :  { %v404_v57 = vadd.f32 %v403_v50, %v389_v48  ;;  %v365_v58 = vadd.f32 %v830_v31, %v364_v49  ;;  %v628_v59 = vpop.f32.mrf.mxu1  ;;  %v391_v1 = vmul.f32 %v291_v55, %v291_v55  ;;  %v659_v50 = vld [vmem:[%s1079_s6] sm:$0x1] }
  0xfe   :  { %v709_v61 = vadd.f32 %v708_v54, %v694_v52  ;;  %v670_v62 = vadd.f32 %v862_v35, %v669_v53  ;;  %v834_v63 = vpop.f32.mrf.mxu0  ;;  %v696_v5 = vmul.f32 %v628_v59, %v628_v59 }
  0xff   :  { %v366_v0 = vadd.f32 %v365_v58, %v291_v55  ;;  %v405_v2 = vadd.f32 %v404_v57, %v390_v56  ;;  %v866_v3 = vpop.f32.mrf.mxu1  ;;  %v394_v21 = vmul.f32 %v834_v63, %v834_v63  ;;  %v683_v56 = vld [vmem:[%s1080_s7] sm:$0x1] }
 0x100   :  { %v671_v4 = vadd.f32 %v670_v62, %v628_v59  ;;  %v710_v6 = vadd.f32 %v709_v61, %v695_v60  ;;  %v294_v7 = vpop.f32.mrf.mxu0  ;;  %v699_v24 = vmul.f32 %v866_v3, %v866_v3 }
 0x101   :  { %v406_v8 = vadd.f32 %v405_v2, %v391_v1  ;;  %v367_v9 = vadd.f32 %v366_v0, %v294_v7  ;;  %v392_v10 = vmul.f32 %v294_v7, %v294_v7  ;;  %v631_v11 = vpop.f32.mrf.mxu1 }
 0x102   :  { %v711_v12 = vadd.f32 %v710_v6, %v696_v5  ;;  %v672_v13 = vadd.f32 %v671_v4, %v631_v11  ;;  %v697_v14 = vmul.f32 %v631_v11, %v631_v11 }
 0x103   :  { %v368_v16 = vadd.f32 %v833_v47, %v367_v9  ;;  %v407_v17 = vadd.f32 %v406_v8, %v392_v10 }
 0x104   :  { %v673_v19 = vadd.f32 %v865_v51, %v672_v13  ;;  %v712_v20 = vadd.f32 %v711_v12, %v697_v14  ;;  %v378_v51 = vld [vmem:[%s1078_s5] sm:$0x1] }
 0x105   :  { %v369_v22 = vadd.f32 %v834_v63, %v368_v16  ;;  %v408_v23 = vadd.f32 %v407_v17, %v393_v15 }
 0x106   :  { %v674_v25 = vadd.f32 %v866_v3, %v673_v19  ;;  %v713_v26 = vadd.f32 %v712_v20, %v698_v18 }
 0x107   :  { %v370_v27 = vrot.slane %v369_v22, 4  ;;  %v409_v28 = vadd.f32 %v408_v23, %v394_v21 }
 0x108   :  { %v675_v29 = vrot.slane %v674_v25, 4  ;;  %v714_v30 = vadd.f32 %v713_v26, %v699_v24 }
 0x109   :  { %v371_v31 = vadd.f32 %v370_v27, %v369_v22  ;;  %v410_v32 = vrot.slane %v409_v28, 4 }
 0x10a   :  { %v676_v33 = vadd.f32 %v675_v29, %v674_v25  ;;  %v715_v34 = vrot.slane %v714_v30, 4 }
 0x10b   :  { %v372_v35 = vrot.slane %v371_v31, 2  ;;  %v411_v36 = vadd.f32 %v410_v32, %v409_v28 }
 0x10c   :  { %v677_v37 = vrot.slane %v676_v33, 2  ;;  %v716_v38 = vadd.f32 %v715_v34, %v714_v30 }
 0x10d   :  { %v373_v39 = vadd.f32 %v372_v35, %v371_v31  ;;  %v412_v40 = vrot.slane %v411_v36, 2 }
 0x10e   :  { %v678_v41 = vadd.f32 %v677_v37, %v676_v33  ;;  %v717_v42 = vrot.slane %v716_v38, 2 }
 0x10f   :  { %v374_v43 = vrot.slane %v373_v39, 1  ;;  %v413_v44 = vadd.f32 %v412_v40, %v411_v36 }
 0x110   :  { %v679_v46 = vrot.slane %v678_v41, 1  ;;  %v718_v47 = vadd.f32 %v717_v42, %v716_v38 }
 0x111   :  { %v375_v48 = vadd.f32 %v374_v43, %v373_v39  ;;  %v414_v49 = vrot.slane %v413_v44, 1 }
 0x112   :  { %v680_v52 = vadd.f32 %v679_v46, %v678_v41  ;;  %v719_v53 = vrot.slane %v718_v47, 1 }
 0x113   :  { %v376_v54 = vadd.f32 %v375_v48, %v354_v45  ;;  %v415_v55 = vadd.f32 %v414_v49, %v413_v44 }
 0x114   :  { %v681_v57 = vadd.f32 %v680_v52, %v659_v50  ;;  %v720_v58 = vadd.f32 %v719_v53, %v718_v47 }
 0x115   :  { %377 = vst [vmem:[%s1077_s4] sm:$0x1] %v376_v54  ;;  %v416_v59 = vadd.f32 %v415_v55, %v378_v51 }
 0x116   :  { %682 = vst [vmem:[%s1079_s6] sm:$0x1] %v681_v57  ;;  %v721_v60 = vadd.f32 %v720_v58, %v683_v56 }
 0x117   :  { %417 = vst [vmem:[%s1078_s5] sm:$0x1] %v416_v59 }
 0x118   :  { %722 = vst [vmem:[%s1080_s7] sm:$0x1] %v721_v60 }

// kernel: bottleneck_forward.11
= control target key start
LH: loop header
LB: loop body
LE: loop exit
PB: predicated region body
PF: predicated region fallthrough
CT: control target
= control target key end

     0   :  { %s1187_s0 = inlined_call_operand.vmem [shape: bf16[128,128], index: 0, kind: input, shape index: {}]   ;;  %s1188_s1 = inlined_call_operand.vmem [shape: bf16[128,128], index: 1, kind: input, shape index: {}]   ;;  %s1189_s2 = inlined_call_operand.vmem [shape: bf16[128,128], index: 2, kind: input, shape index: {}]   ;;  %s1190_s3 = inlined_call_operand.vmem [shape: bf16[128,128], index: 3, kind: input, shape index: {}]   ;;  %s1191_s4 = inlined_call_operand.vmem [shape: f32[1,128], index: 4, kind: input, shape index: {}]   ;;  %s1192_s5 = inlined_call_operand.vmem [shape: f32[1,128], index: 5, kind: input, shape index: {}]   ;;  %s1193_s6 = inlined_call_operand.vmem [shape: f32[1,128], index: 6, kind: input, shape index: {}]   ;;  %s1194_s7 = inlined_call_operand.vmem [shape: f32[1,128], index: 7, kind: input, shape index: {}]   ;;  %s1195_s8 = inlined_call_operand.vmem [shape: f32[1,128], index: 8, kind: input, shape index: {}]   ;;  %s1196_s9 = inlined_call_operand.vmem [shape: f32[1,128], index: 9, kind: input, shape index: {}]   ;;  %s1197_s10 = inlined_call_operand.vmem [shape: f32[1,128], index: 10, kind: input, shape index: {}]   ;;  %s1198_s11 = inlined_call_operand.vmem [shape: f32[1,128], index: 11, kind: input, shape index: {}]   ;;  %s1199_s12 = inlined_call_operand.hbm [shape: f32[128,128], index: 12, kind: output, shape index: {}]  }
   0x1   :  { %v834_v0 = vld [vmem:[%s1188_s1 + $0x38] sm:$0xff]   ;;  %v836_v2 = vld [vmem:[%s1188_s1 + $0x30] sm:$0xff]   ;;  %v838_v4 = vld [vmem:[%s1188_s1 + $0x28] sm:$0xff]  }
   0x2   :  { %v835_v1 = vld [vmem:[%s1190_s3 + $0x38] sm:$0xff]   ;;  %767 = vmatprep.subr.bf16.mxu0 %v834_v0  ;;  %v837_v3 = vld [vmem:[%s1190_s3 + $0x30] sm:$0xff]   ;;  %v839_v5 = vld [vmem:[%s1190_s3 + $0x28] sm:$0xff]  }
   0x3   :  { %799 = vmatprep.subr.bf16.mxu1 %v835_v1  ;;  %768 = vmatpush3.bf16.msra.mxu0 %v834_v0  ;;  %v840_v6 = vld [vmem:[%s1188_s1 + $0x20] sm:$0xff]   ;;  %v842_v8 = vld [vmem:[%s1188_s1 + $0x18] sm:$0xff]   ;;  %v844_v10 = vld [vmem:[%s1188_s1 + $0x10] sm:$0xff]  }
   0x4   :  { %800 = vmatpush3.bf16.msra.mxu1 %v835_v1  ;;  %769 = vmatprep.subr.bf16.mxu0 %v836_v2  ;;  %v841_v7 = vld [vmem:[%s1190_s3 + $0x20] sm:$0xff]   ;;  %v843_v9 = vld [vmem:[%s1190_s3 + $0x18] sm:$0xff]   ;;  %v845_v11 = vld [vmem:[%s1190_s3 + $0x10] sm:$0xff]  }
   0x5   :  { %801 = vmatprep.subr.bf16.mxu1 %v837_v3  ;;  %v850_v12 = vld [vmem:[%s1187_s0] sm:$0xff]   ;;  %v846_v14 = vld [vmem:[%s1188_s1 + $0x8] sm:$0xff]   ;;  %v854_v20 = vld [vmem:[%s1187_s0 + $0x10] sm:$0xff]  }
   0x6   :  { %v851_v13 = vld [vmem:[%s1189_s2] sm:$0xff]   ;;  %783 = vmatprep.mubr.bf16.mxu0 %v850_v12  ;;  %v847_v15 = vld [vmem:[%s1190_s3 + $0x8] sm:$0xff]   ;;  %v855_v21 = vld [vmem:[%s1189_s2 + $0x10] sm:$0xff]  }
   0x7   :  { %770 = vmatpush3.bf16.msra.mxu0 %v836_v2  ;;  %815 = vmatprep.mubr.bf16.mxu1 %v851_v13  ;;  %v848_v16 = vld [vmem:[%s1188_s1] sm:$0xff]   ;;  %v852_v18 = vld [vmem:[%s1187_s0 + $0x8] sm:$0xff]  }
   0x8   :  { %802 = vmatpush3.bf16.msra.mxu1 %v837_v3  ;;  %771 = vmatprep.subr.bf16.mxu0 %v838_v4  ;;  %v849_v17 = vld [vmem:[%s1190_s3] sm:$0xff]   ;;  %v853_v19 = vld [vmem:[%s1189_s2 + $0x8] sm:$0xff]  }
   0x9   :  { %803 = vmatprep.subr.bf16.mxu1 %v839_v5 }
   0xb   :  { %772 = vmatpush3.bf16.msra.mxu0 %v838_v4 }
   0xc   :  { %804 = vmatpush3.bf16.msra.mxu1 %v839_v5  ;;  %773 = vmatprep.subr.bf16.mxu0 %v840_v6 }
   0xd   :  { %805 = vmatprep.subr.bf16.mxu1 %v841_v7 }
   0xf   :  { %774 = vmatpush3.bf16.msra.mxu0 %v840_v6 }
  0x10   :  { %806 = vmatpush3.bf16.msra.mxu1 %v841_v7  ;;  %775 = vmatprep.subr.bf16.mxu0 %v842_v8 }
  0x11   :  { %807 = vmatprep.subr.bf16.mxu1 %v843_v9 }
  0x13   :  { %776 = vmatpush3.bf16.msra.mxu0 %v842_v8 }
  0x14   :  { %808 = vmatpush3.bf16.msra.mxu1 %v843_v9  ;;  %777 = vmatprep.subr.bf16.mxu0 %v844_v10 }
  0x15   :  { %809 = vmatprep.subr.bf16.mxu1 %v845_v11 }
  0x17   :  { %778 = vmatpush3.bf16.msra.mxu0 %v844_v10 }
  0x18   :  { %810 = vmatpush3.bf16.msra.mxu1 %v845_v11  ;;  %779 = vmatprep.subr.bf16.mxu0 %v846_v14 }
  0x19   :  { %811 = vmatprep.subr.bf16.mxu1 %v847_v15 }
  0x1b   :  { %780 = vmatpush3.bf16.msra.mxu0 %v846_v14 }
  0x1c   :  { %812 = vmatpush3.bf16.msra.mxu1 %v847_v15  ;;  %781 = vmatprep.subr.bf16.mxu0 %v848_v16 }
  0x1d   :  { %813 = vmatprep.subr.bf16.mxu1 %v849_v17 }
  0x1f   :  { %782 = vmatpush3.bf16.msra.mxu0 %v848_v16 }
  0x20   :  { %814 = vmatpush3.bf16.msra.mxu1 %v849_v17 }
  0x21   :  { %17 = vsyncpa [#allocation3], 0  ;;  %v856_v22 = vld [vmem:[%s1187_s0 + $0x18] sm:$0xff]   ;;  %v858_v24 = vld [vmem:[%s1187_s0 + $0x20] sm:$0xff]   ;;  %v295_v32 = vlaneseq }
  0x22   :  { %784 = vmatmul.mubr.bf16.vlgmr.msra.gmra.mxu0 %v852_v18  ;;  %v857_v23 = vld [vmem:[%s1189_s2 + $0x18] sm:$0xff]   ;;  %v859_v25 = vld [vmem:[%s1189_s2 + $0x20] sm:$0xff]   ;;  %v860_v26 = vld [vmem:[%s1187_s0 + $0x28] sm:$0xff]  }
  0x23   :  { %816 = vmatmul.mubr.bf16.vlgmr.msra.gmra.mxu1 %v853_v19  ;;  %787 = vmatprep.mubr.bf16.mxu0 %v854_v20  ;;  %v861_v27 = vld [vmem:[%s1189_s2 + $0x28] sm:$0xff]   ;;  %v862_v28 = vld [vmem:[%s1187_s0 + $0x30] sm:$0xff]   ;;  %v864_v30 = vld [vmem:[%s1187_s0 + $0x38] sm:$0xff]   ;;  %v296_v33 = vshrl.u32 %v295_v32, 7 }
  0x24   :  { %819 = vmatprep.mubr.bf16.mxu1 %v855_v21  ;;  %v863_v29 = vld [vmem:[%s1189_s2 + $0x30] sm:$0xff]   ;;  %v865_v31 = vld [vmem:[%s1189_s2 + $0x38] sm:$0xff]   ;;  %v291_v34 = vld [vmem:[%s1192_s5] sm:$0x1] }
  0x25   :  { %v292_v35 = vld [vmem:[%s1193_s6] sm:$0x1]  ;;  %v297_v39 = vsub.s32 0, %v296_v33 }
  0x26   :  { %v587_v36 = vld [vmem:[%s1196_s9] sm:$0x1]  ;;  %v293_v38 = vmul.f32 %v292_v35, %v291_v34 }
  0x27   :  { %v588_v37 = vld [vmem:[%s1197_s10] sm:$0x1] }
  0x28   :  { %v589_v40 = vmul.f32 %v588_v37, %v587_v36  ;;  %v1067_v41 = vld [vmem:[%s1191_s4] ss:$0 sm:$0xff]  ;;  %v1069_v42 = vrot.slane %v293_v38, %v297_v39 }
  0x29   :  { %v1074_v43 = vld [vmem:[%s1195_s8] ss:$0 sm:$0xff] }
  0x2a   :  { %788 = vmatmul.mubr.bf16.gmra.mxu0 %v856_v22  ;;  %v1076_v45 = vrot.slane %v589_v40, %v297_v39  ;;  %v1082_v48 = vld [vmem:[%s1194_s7] ss:$0 sm:$0xff]  ;;  %s888_s7 = smov [#allocation2]  }
  0x2b   :  { %820 = vmatmul.mubr.bf16.gmra.mxu1 %v857_v23  ;;  %791 = vmatprep.mubr.bf16.mxu0 %v858_v24  ;;  %v1089_v52 = vld [vmem:[%s1198_s11] ss:$0 sm:$0xff]  ;;  %s688_s8 = sshll.u32 %s888_s7, 4  ;;  %s689_s8 = int_to_ptr.vmem [resolvable:$true] %s688_s8 }
  0x2c   :  { %823 = vmatprep.mubr.bf16.mxu1 %v859_v25  ;;  %s866_s11 = scalar_lea.vmem %s689_s8, 2048  ;;  %p871_p1 = scmp.lt.s32.totalorder %s689_s8, %s689_s8 }
  0x2d   :  { %p867_p0 = scmp.ne.s32.totalorder %s689_s8, %s866_s11  ;;  %p872_p2 = scmp.lt.s32.totalorder %s866_s11, %s866_s11 }
  0x2f   :  { %p873_p3 = por %p872_p2, %p871_p1 }
  0x31   :  { %p874_p4 = pnand %p873_p3, %p867_p0 }
  0x32   :  { %792 = vmatmul.mubr.bf16.gmra.mxu0 %v860_v26 }
  0x33   :  { %824 = vmatmul.mubr.bf16.gmra.mxu1 %v861_v27  ;;  %795 = vmatprep.mubr.bf16.mxu0 %v862_v28 }
  0x34   :  { %827 = vmatprep.mubr.bf16.mxu1 %v863_v29 }
  0x3a   :  { %796 = vmatmul.mubr.bf16.gmra.mxu0 %v864_v30 }
  0x3b   :  { %828 = vmatmul.mubr.bf16.gmra.mxu1 %v865_v31 }
  0xe2   :  { %v785_v44 = vpop.f32.mrf.mxu0 }
  0xe3   :  { %v277_v46 = vsub.f32 %v785_v44, %v1067_v41  ;;  %v817_v47 = vpop.f32.mrf.mxu1 }
  0xe4   :  { %v573_v49 = vsub.f32 %v817_v47, %v1074_v43  ;;  %v205_v50 = vpop.f32.mrf.mxu0 }
  0xe5   :  { %v302_v51 = vmul.f32 %v1069_v42, %v277_v46  ;;  %v275_v53 = vsub.f32 %v205_v50, %v1067_v41  ;;  %v501_v54 = vpop.f32.mrf.mxu1 }
  0xe6   :  { %v598_v55 = vmul.f32 %v1076_v45, %v573_v49  ;;  %v571_v56 = vsub.f32 %v501_v54, %v1074_v43  ;;  %v786_v57 = vpop.f32.mrf.mxu0 }
  0xe7   :  { %v325_v58 = vadd.f32 %v1082_v48, %v302_v51  ;;  %v300_v59 = vmul.f32 %v1069_v42, %v275_v53  ;;  %v278_v60 = vsub.f32 %v786_v57, %v1067_v41  ;;  %v818_v61 = vpop.f32.mrf.mxu1 }
  0xe8   :  { %v621_v62 = vadd.f32 %v1089_v52, %v598_v55  ;;  %v596_v63 = vmul.f32 %v1076_v45, %v571_v56  ;;  %v574_v0 = vsub.f32 %v818_v61, %v1074_v43  ;;  %v208_v1 = vpop.f32.mrf.mxu0 }
  0xe9   :  { %v323_v2 = vadd.f32 %v1082_v48, %v300_v59  ;;  %v303_v3 = vmul.f32 %v1069_v42, %v278_v60  ;;  %v276_v4 = vsub.f32 %v208_v1, %v1067_v41  ;;  %v504_v5 = vpop.f32.mrf.mxu1 }
  0xea   :  { %v637_v6 = vadd.f32 %v621_v62, %v325_v58  ;;  %v619_v7 = vadd.f32 %v1089_v52, %v596_v63  ;;  %v599_v8 = vmul.f32 %v1076_v45, %v574_v0  ;;  %v572_v9 = vsub.f32 %v504_v5, %v1074_v43  ;;  %v789_v10 = vpop.f32.mrf.mxu0 }
  0xeb   :  { %v326_v11 = vadd.f32 %v1082_v48, %v303_v3  ;;  %v301_v12 = vmul.f32 %v1069_v42, %v276_v4  ;;  %v281_v13 = vsub.f32 %v789_v10, %v1067_v41  ;;  %v821_v14 = vpop.f32.mrf.mxu1 }
  0xec   :  { %v653_v15 = vmax.f32 %v637_v6, 0.0  ;;  %v635_v16 = vadd.f32 %v619_v7, %v323_v2  ;;  %v622_v17 = vadd.f32 %v1089_v52, %v599_v8  ;;  %v597_v18 = vmul.f32 %v1076_v45, %v572_v9  ;;  %v221_v19 = vpop.f32.mrf.mxu0 }
  0xed   :  { %v324_v20 = vadd.f32 %v1082_v48, %v301_v12  ;;  %v306_v21 = vmul.f32 %v1069_v42, %v281_v13  ;;  %v577_v22 = vsub.f32 %v821_v14, %v1074_v43  ;;  %v279_v23 = vsub.f32 %v221_v19, %v1067_v41  ;;  %v517_v24 = vpop.f32.mrf.mxu1 }
  0xee   :  { %669 = vst [vmem:[#allocation2 + $0x10] sm:$0xff] %v653_v15  ;;  %v651_v25 = vmax.f32 %v635_v16, 0.0  ;;  %v638_v26 = vadd.f32 %v622_v17, %v326_v11  ;;  %v620_v27 = vadd.f32 %v1089_v52, %v597_v18  ;;  %v575_v28 = vsub.f32 %v517_v24, %v1074_v43  ;;  %v790_v29 = vpop.f32.mrf.mxu0 }
  0xef   :  { %v329_v30 = vadd.f32 %v1082_v48, %v306_v21  ;;  %v602_v31 = vmul.f32 %v1076_v45, %v577_v22  ;;  %v304_v32 = vmul.f32 %v1069_v42, %v279_v23  ;;  %v282_v33 = vsub.f32 %v790_v29, %v1067_v41  ;;  %v822_v34 = vpop.f32.mrf.mxu1 }
  0xf0   :  { %667 = vst [vmem:[#allocation2] sm:$0xff] %v651_v25  ;;  %v654_v35 = vmax.f32 %v638_v26, 0.0  ;;  %v636_v36 = vadd.f32 %v620_v27, %v324_v20  ;;  %v600_v37 = vmul.f32 %v1076_v45, %v575_v28  ;;  %v578_v38 = vsub.f32 %v822_v34, %v1074_v43  ;;  %v224_v39 = vpop.f32.mrf.mxu0 }
  0xf1   :  { %v625_v40 = vadd.f32 %v1089_v52, %v602_v31  ;;  %v327_v44 = vadd.f32 %v1082_v48, %v304_v32  ;;  %v307_v46 = vmul.f32 %v1069_v42, %v282_v33  ;;  %v280_v47 = vsub.f32 %v224_v39, %v1067_v41  ;;  %v520_v49 = vpop.f32.mrf.mxu1 }
  0xf2   :  { %670 = vst [vmem:[#allocation2 + $0x18] sm:$0xff] %v654_v35  ;;  %v652_v50 = vmax.f32 %v636_v36, 0.0  ;;  %v623_v51 = vadd.f32 %v1089_v52, %v600_v37  ;;  %v603_v53 = vmul.f32 %v1076_v45, %v578_v38  ;;  %v576_v54 = vsub.f32 %v520_v49, %v1074_v43  ;;  %v793_v55 = vpop.f32.mrf.mxu0 }
  0xf3   :  { %v641_v56 = vadd.f32 %v625_v40, %v329_v30  ;;  %v330_v57 = vadd.f32 %v1082_v48, %v307_v46  ;;  %v305_v58 = vmul.f32 %v1069_v42, %v280_v47  ;;  %v285_v59 = vsub.f32 %v793_v55, %v1067_v41  ;;  %v825_v60 = vpop.f32.mrf.mxu1 }
  0xf4   :  { %668 = vst [vmem:[#allocation2 + $0x8] sm:$0xff] %v652_v50  ;;  %v639_v61 = vadd.f32 %v623_v51, %v327_v44  ;;  %v626_v62 = vadd.f32 %v1089_v52, %v603_v53  ;;  %v601_v63 = vmul.f32 %v1076_v45, %v576_v54  ;;  %v581_v0 = vsub.f32 %v825_v60, %v1074_v43  ;;  %v237_v1 = vpop.f32.mrf.mxu0 }
  0xf5   :  { %v657_v2 = vmax.f32 %v641_v56, 0.0  ;;  %v328_v3 = vadd.f32 %v1082_v48, %v305_v58  ;;  %v310_v4 = vmul.f32 %v1069_v42, %v285_v59  ;;  %v283_v5 = vsub.f32 %v237_v1, %v1067_v41  ;;  %v533_v6 = vpop.f32.mrf.mxu1 }
  0xf6   :  { %v655_v7 = vmax.f32 %v639_v61, 0.0  ;;  %v642_v8 = vadd.f32 %v626_v62, %v330_v57  ;;  %v624_v9 = vadd.f32 %v1089_v52, %v601_v63  ;;  %v606_v10 = vmul.f32 %v1076_v45, %v581_v0  ;;  %v794_v11 = vpop.f32.mrf.mxu0 }
  0xf7   :  { %673 = vst [vmem:[#allocation2 + $0x30] sm:$0xff] %v657_v2  ;;  %v333_v12 = vadd.f32 %v1082_v48, %v310_v4  ;;  %v308_v13 = vmul.f32 %v1069_v42, %v283_v5  ;;  %v579_v14 = vsub.f32 %v533_v6, %v1074_v43  ;;  %v286_v15 = vsub.f32 %v794_v11, %v1067_v41  ;;  %v826_v16 = vpop.f32.mrf.mxu1 }
  0xf8   :  { %671 = vst [vmem:[#allocation2 + $0x20] sm:$0xff] %v655_v7  ;;  %v658_v17 = vmax.f32 %v642_v8, 0.0  ;;  %v640_v18 = vadd.f32 %v624_v9, %v328_v3  ;;  %v629_v19 = vadd.f32 %v1089_v52, %v606_v10  ;;  %v582_v20 = vsub.f32 %v826_v16, %v1074_v43  ;;  %v240_v21 = vpop.f32.mrf.mxu0 }
  0xf9   :  { %v331_v22 = vadd.f32 %v1082_v48, %v308_v13  ;;  %v604_v23 = vmul.f32 %v1076_v45, %v579_v14  ;;  %v311_v24 = vmul.f32 %v1069_v42, %v286_v15  ;;  %v284_v25 = vsub.f32 %v240_v21, %v1067_v41  ;;  %v536_v26 = vpop.f32.mrf.mxu1 }
  0xfa   :  { %674 = vst [vmem:[#allocation2 + $0x38] sm:$0xff] %v658_v17  ;;  %v656_v27 = vmax.f32 %v640_v18, 0.0  ;;  %v645_v28 = vadd.f32 %v629_v19, %v333_v12  ;;  %v607_v29 = vmul.f32 %v1076_v45, %v582_v20  ;;  %v580_v30 = vsub.f32 %v536_v26, %v1074_v43  ;;  %v797_v31 = vpop.f32.mrf.mxu0 }
  0xfb   :  { %v627_v32 = vadd.f32 %v1089_v52, %v604_v23  ;;  %v334_v33 = vadd.f32 %v1082_v48, %v311_v24  ;;  %v309_v34 = vmul.f32 %v1069_v42, %v284_v25  ;;  %v289_v35 = vsub.f32 %v797_v31, %v1067_v41  ;;  %v829_v36 = vpop.f32.mrf.mxu1 }
  0xfc   :  { %672 = vst [vmem:[#allocation2 + $0x28] sm:$0xff] %v656_v27  ;;  %v661_v37 = vmax.f32 %v645_v28, 0.0  ;;  %v630_v38 = vadd.f32 %v1089_v52, %v607_v29  ;;  %v605_v39 = vmul.f32 %v1076_v45, %v580_v30  ;;  %v585_v40 = vsub.f32 %v829_v36, %v1074_v43  ;;  %v253_v44 = vpop.f32.mrf.mxu0 }
  0xfd   :  { %v643_v46 = vadd.f32 %v627_v32, %v331_v22  ;;  %v332_v47 = vadd.f32 %v1082_v48, %v309_v34  ;;  %v314_v49 = vmul.f32 %v1069_v42, %v289_v35  ;;  %v287_v50 = vsub.f32 %v253_v44, %v1067_v41  ;;  %v549_v51 = vpop.f32.mrf.mxu1 }
  0xfe   :  { %677 = vst [vmem:[#allocation2 + $0x50] sm:$0xff] %v661_v37  ;;  %v646_v53 = vadd.f32 %v630_v38, %v334_v33  ;;  %v628_v54 = vadd.f32 %v1089_v52, %v605_v39  ;;  %v610_v55 = vmul.f32 %v1076_v45, %v585_v40  ;;  %v583_v56 = vsub.f32 %v549_v51, %v1074_v43  ;;  %v798_v57 = vpop.f32.mrf.mxu0 }
  0xff   :  { %v659_v58 = vmax.f32 %v643_v46, 0.0  ;;  %v337_v59 = vadd.f32 %v1082_v48, %v314_v49  ;;  %v312_v60 = vmul.f32 %v1069_v42, %v287_v50  ;;  %v290_v61 = vsub.f32 %v798_v57, %v1067_v41  ;;  %v830_v62 = vpop.f32.mrf.mxu1 }
 0x100   :  { %v662_v63 = vmax.f32 %v646_v53, 0.0  ;;  %v644_v0 = vadd.f32 %v628_v54, %v332_v47  ;;  %v633_v1 = vadd.f32 %v1089_v52, %v610_v55  ;;  %v608_v2 = vmul.f32 %v1076_v45, %v583_v56  ;;  %v256_v3 = vpop.f32.mrf.mxu0 }
 0x101   :  { %675 = vst [vmem:[#allocation2 + $0x40] sm:$0xff] %v659_v58  ;;  %v335_v4 = vadd.f32 %v1082_v48, %v312_v60  ;;  %v315_v5 = vmul.f32 %v1069_v42, %v290_v61  ;;  %v586_v6 = vsub.f32 %v830_v62, %v1074_v43  ;;  %v288_v7 = vsub.f32 %v256_v3, %v1067_v41  ;;  %v552_v8 = vpop.f32.mrf.mxu1 }
 0x102   :  { %678 = vst [vmem:[#allocation2 + $0x58] sm:$0xff] %v662_v63  ;;  %v660_v9 = vmax.f32 %v644_v0, 0.0  ;;  %v649_v10 = vadd.f32 %v633_v1, %v337_v59  ;;  %v631_v11 = vadd.f32 %v1089_v52, %v608_v2  ;;  %v584_v12 = vsub.f32 %v552_v8, %v1074_v43 }
 0x103   :  { %v338_v13 = vadd.f32 %v1082_v48, %v315_v5  ;;  %v611_v14 = vmul.f32 %v1076_v45, %v586_v6  ;;  %v313_v15 = vmul.f32 %v1069_v42, %v288_v7 }
 0x104   :  { %676 = vst [vmem:[#allocation2 + $0x48] sm:$0xff] %v660_v9  ;;  %v665_v16 = vmax.f32 %v649_v10, 0.0  ;;  %v647_v17 = vadd.f32 %v631_v11, %v335_v4  ;;  %v609_v18 = vmul.f32 %v1076_v45, %v584_v12 }
 0x105   :  { %v634_v41 = vadd.f32 %v1089_v52, %v611_v14  ;;  %v336_v19 = vadd.f32 %v1082_v48, %v313_v15 }
 0x106   :  { %681 = vst [vmem:[#allocation2 + $0x70] sm:$0xff] %v665_v16  ;;  %v663_v20 = vmax.f32 %v647_v17, 0.0  ;;  %v632_v21 = vadd.f32 %v1089_v52, %v609_v18 }
 0x107   :  { %v650_v43 = vadd.f32 %v634_v41, %v338_v13 }
 0x108   :  { %679 = vst [vmem:[#allocation2 + $0x60] sm:$0xff] %v663_v20  ;;  %v648_v22 = vadd.f32 %v632_v21, %v336_v19 }
 0x109   :  { %v666_v23 = vmax.f32 %v650_v43, 0.0 }
 0x10a   :  { %v664_v42 = vmax.f32 %v648_v22, 0.0 }
 0x10b   :  { %682 = vst [vmem:[#allocation2 + $0x78] sm:$0xff] %v666_v23 }
 0x10c   :  { %680 = vst [vmem:[#allocation2 + $0x68] sm:$0xff] %v664_v42 }
 0x10d   :  { %877 = shalt.err (!%p874_p4)
}
 0x10e   :  { %s889_s18 = smov 128   ;;  %s890_s19 = smov 8  }
 0x10f   :  { %694 = dma.vmem_to_hbm [thread:$0]  %s689_s8, 2048, %s1199_s12, [#allocation3], %s889_s18, %s889_s18, %s890_s19  }
 0x110   :  { %886 = dma.done.wait [#allocation3], 2048  }
 0x111   :  { %887 = vsyncadd [#allocation3], 4294965248 }
 0x112   :  { %698 = vsyncpa [#allocation3], 1 }

</bundles_post_ra>
